<compile_context>
chip_gen: v5e
topology: v5e:2x2
jax: 0.10.0
libtpu: 0.0.40
codegen_flags: <defaults>
</compile_context>

<pallas_src>
import jax
import jax.numpy as jnp
from jax import lax
from jax.experimental import pallas as pl
from jax.experimental.pallas import tpu as pltpu

EPS = 1e-5          # torch.nn.GroupNorm default eps
NUM_GROUPS = 16     # the module hardcodes GroupNorm(16, channels)


# ----------------------------------------------------------------------------
# In-kernel GroupNorm over a (HW, C) activation, with the channel->group
# membership matrices supplied as precomputed inputs (hoisted to prepare_params).
# ----------------------------------------------------------------------------
def _group_norm_2d(y, gamma, beta, gmat, gmat_t):
    hw, c = y.shape
    groups = gmat.shape[1]
    inv_cnt = 1.0 / float(hw * (c // groups))

    s = jnp.sum(y, axis=0, keepdims=True)                                    # (1, C)
    mean_g = jnp.dot(s, gmat, preferred_element_type=jnp.float32) * inv_cnt  # (1, G)
    mean_c = jnp.dot(mean_g, gmat_t, preferred_element_type=jnp.float32)     # (1, C)
    d = y - mean_c
    ssd = jnp.sum(d * d, axis=0, keepdims=True)                              # (1, C)
    var_g = jnp.dot(ssd, gmat, preferred_element_type=jnp.float32) * inv_cnt # (1, G)
    inv_g = lax.rsqrt(var_g + EPS)          # centered variance: always >= 0
    inv_c = jnp.dot(inv_g, gmat_t, preferred_element_type=jnp.float32)       # (1, C)
    return d * inv_c * gamma + beta


# ----------------------------------------------------------------------------
# Pallas kernel: one batch sample per grid step, fully fused forward pass.
# ----------------------------------------------------------------------------
def _parallel_block_adapter_kernel(
    x_ref,       # (1, H+2, W+2, Cin)      bf16  zero-padded NHWC input (one sample)
    wcat_ref,    # (9*Cin, Cout+width)     bf16  fused [residual 3x3 | grouped 3x3] weight
    bres_ref,    # (1, Cout)               f32   residual conv bias
    g1_ref,      # (1, width)              f32   GroupNorm1 gamma
    b1_ref,      # (1, width)              f32   GroupNorm1 beta
    gm1_ref,     # (width, G)              f32   GN1 channel->group membership
    gm1t_ref,    # (G, width)              f32   GN1 group->channel membership
    w2_ref,      # (width, Cout)           bf16  adapter 1x1 conv
    g2_ref,      # (1, Cout)               f32   GroupNorm2 gamma
    b2_ref,      # (1, Cout)               f32   GroupNorm2 beta
    gm2_ref,     # (Cout, G)               f32   GN2 channel->group membership
    gm2t_ref,    # (G, Cout)               f32   GN2 group->channel membership
    se_ref,      # (1, Cout)               f32   adapter se scale
    out_ref,     # (1, HW, Cout)           bf16
):
    hp, wp, cin = x_ref.shape[1], x_ref.shape[2], x_ref.shape[3]
    h_dim, w_dim = hp - 2, wp - 2
    hw = h_dim * w_dim
    cout = bres_ref.shape[1]

    # Load the padded sample once, in bf16 (no f32 up-cast of the block).
    x = x_ref[0]                                             # (H+2, W+2, Cin) bf16

    # In-VMEM im2col: nine bf16 shifted-window slices concatenated along the lane
    # axis.  tap t = ky*3 + kx matches the (9, Cin, :) -> (9*Cin, :) weight layout.
    taps = [
        x[ky:ky + h_dim, kx:kx + w_dim, :].reshape(hw, cin)
        for ky in range(3) for kx in range(3)
    ]
    im2col = jnp.concatenate(taps, axis=-1)                  # (HW, 9*Cin) bf16

    # Single fused matmul (K = 9*Cin) computing residual 3x3 conv AND the
    # adapter's grouped 3x3 conv together, f32 MXU accumulation.
    acc = jnp.dot(im2col, wcat_ref[...],
                  preferred_element_type=jnp.float32)        # (HW, Cout+width) f32

    # ---- residual branch: 3x3 conv + bias + ReLU
    res = jnp.maximum(acc[:, :cout] + bres_ref[...], 0.0)    # (HW, Cout)

    # ---- adapter branch
    h1 = acc[:, cout:]                                       # (HW, width)
    h1 = jnp.maximum(
        _group_norm_2d(h1, g1_ref[...], b1_ref[...], gm1_ref[...], gm1t_ref[...]),
        0.0)
    a = jnp.dot(h1.astype(jnp.bfloat16), w2_ref[...],
                preferred_element_type=jnp.float32)          # (HW, Cout)
    a = jnp.maximum(
        _group_norm_2d(a, g2_ref[...], b2_ref[...], gm2_ref[...], gm2t_ref[...]),
        0.0)
    a = a * se_ref[...]

    # ---- parallel residual add (bf16 store halves HBM writeback)
    out_ref[0] = (res + a).astype(out_ref.dtype)


# ----------------------------------------------------------------------------
# One-time parameter preparation (hoisted out of the forward path).
# ----------------------------------------------------------------------------
def _group_membership(c, groups):
    cpg = c // groups
    ch = jnp.arange(c, dtype=jnp.int32)[:, None]
    gr = jnp.arange(groups, dtype=jnp.int32)[None, :]
    return (ch // cpg == gr).astype(jnp.float32)             # (C, G)


def prepare_params(params, num_groups=NUM_GROUPS):
    wres, bres = params["wres"], params["bres"]   # (Cout, Cin, 3, 3), (Cout,)
    w1, w2 = params["w1"], params["w2"]           # (width, Cin//width, 3, 3), (Cout, width, 1, 1)
    g1, b1 = params["g1"], params["b1"]
    g2, b2, se = params["g2"], params["b2"], params["se"]

    cout, cin = wres.shape[0], wres.shape[1]
    width = w1.shape[0]
    cin_pg = cin // width
    assert cin % width == 0, "grouped conv requires Cin % width == 0"
    assert width % num_groups == 0 and cout % num_groups == 0, \
        "GroupNorm(16, .) requires width and Cout to be multiples of 16"

    # residual 3x3 conv taps: (Cout, Cin, 3, 3) -> (9, Cin, Cout), tap t = ky*3 + kx
    wres_t = jnp.transpose(wres, (2, 3, 1, 0)).reshape(9, cin, cout)

    # grouped 3x3 conv (groups == width) expanded ONCE to block-diagonal dense taps:
    #   dense[t, o*cin_pg + j, o] = w1[o, j, ky, kx]
    w1_t = jnp.transpose(w1, (2, 3, 0, 1)).reshape(9, width, cin_pg)
    eye = jnp.eye(width, dtype=w1.dtype)
    w1_dense = (w1_t[:, :, :, None] * eye[:, None, :]).reshape(9, cin, width)

    # Fused weight, flattened to (9*Cin, Cout+width) so the kernel runs one matmul.
    w_cat = jnp.concatenate([wres_t, w1_dense], axis=-1).reshape(9 * cin, cout + width)

    gm1 = _group_membership(width, num_groups)
    gm2 = _group_membership(cout, num_groups)

    return {
        "w_cat": w_cat.astype(jnp.bfloat16),
        "bres": bres.reshape(1, cout).astype(jnp.float32),
        "g1": g1.reshape(1, width).astype(jnp.float32),
        "b1": b1.reshape(1, width).astype(jnp.float32),
        "gm1": gm1, "gm1t": gm1.T,
        "w2": jnp.transpose(w2[:, :, 0, 0], (1, 0)).astype(jnp.bfloat16),  # (width, Cout)
        "g2": g2.reshape(1, cout).astype(jnp.float32),
        "b2": b2.reshape(1, cout).astype(jnp.float32),
        "gm2": gm2, "gm2t": gm2.T,
        "se": se.reshape(1, cout).astype(jnp.float32),
    }


# ----------------------------------------------------------------------------
# Forward wrapper (layout conversion at the NCHW module boundary + pallas_call).
# ----------------------------------------------------------------------------
def parallel_block_adapter(x_nchw, prep):
    n, cin, h, w = x_nchw.shape
    cout = prep["bres"].shape[1]
    width = prep["g1"].shape[1]
    ngroups = prep["gm1"].shape[1]
    nout = cout + width
    hw = h * w

    # NCHW -> zero-padded bf16 NHWC (module interface is NCHW; conversion stays
    # at the boundary, the kernel works lane-major on channels).
    x_nhwc = jnp.transpose(x_nchw, (0, 2, 3, 1))
    xp = jnp.pad(x_nhwc, ((0, 0), (1, 1), (1, 1), (0, 0))).astype(jnp.bfloat16)

    const = lambda *_: None  # noqa: E731  (readability only)

    out = pl.pallas_call(
        _parallel_block_adapter_kernel,
        out_shape=jax.ShapeDtypeStruct((n, hw, cout), jnp.bfloat16),
        grid_spec=pltpu.PrefetchScalarGridSpec(
            num_scalar_prefetch=0,
            grid=(n,),
            in_specs=[
                pl.BlockSpec((1, h + 2, w + 2, cin), lambda i: (i, 0, 0, 0)),
                pl.BlockSpec((9 * cin, nout), lambda i: (0, 0)),
                pl.BlockSpec((1, cout), lambda i: (0, 0)),
                pl.BlockSpec((1, width), lambda i: (0, 0)),
                pl.BlockSpec((1, width), lambda i: (0, 0)),
                pl.BlockSpec((width, ngroups), lambda i: (0, 0)),
                pl.BlockSpec((ngroups, width), lambda i: (0, 0)),
                pl.BlockSpec((width, cout), lambda i: (0, 0)),
                pl.BlockSpec((1, cout), lambda i: (0, 0)),
                pl.BlockSpec((1, cout), lambda i: (0, 0)),
                pl.BlockSpec((cout, ngroups), lambda i: (0, 0)),
                pl.BlockSpec((ngroups, cout), lambda i: (0, 0)),
                pl.BlockSpec((1, cout), lambda i: (0, 0)),
            ],
            out_specs=pl.BlockSpec((1, hw, cout), lambda i: (i, 0, 0)),
        ),
        compiler_params=pltpu.CompilerParams(
            dimension_semantics=("parallel",),
            vmem_limit_bytes=32 * 1024 * 1024,
        ),
    )(xp, prep["w_cat"], prep["bres"], prep["g1"], prep["b1"],
      prep["gm1"], prep["gm1t"], prep["w2"], prep["g2"], prep["b2"],
      prep["gm2"], prep["gm2t"], prep["se"])

    # (N, HW, Cout) -> NCHW f32 to match the PyTorch module's interface.
    return jnp.transpose(out.reshape(n, h, w, cout), (0, 3, 1, 2)).astype(jnp.float32)


# ----------------------------------------------------------------------------
# Pure-JAX reference.  Inputs/conv-weights are rounded to bf16 (to match the
# kernel's storage precision); all math runs in f32.
# ----------------------------------------------------------------------------
def _group_norm_ref(x, num_groups, gamma, beta, eps=EPS):
    n, c, h, w = x.shape
    xg = x.reshape(n, num_groups, c // num_groups, h, w)
    mean = xg.mean(axis=(2, 3, 4), keepdims=True)
    var = xg.var(axis=(2, 3, 4), keepdims=True)          # biased, like torch
    xn = ((xg - mean) / jnp.sqrt(var + eps)).reshape(n, c, h, w)
    return xn * gamma.reshape(1, c, 1, 1) + beta.reshape(1, c, 1, 1)


def reference(x, params):
    q = lambda t: t.astype(jnp.bfloat16).astype(jnp.float32)
    xq = q(x)
    wres, w1, w2 = q(params["wres"]), q(params["w1"]), q(params["w2"])
    bres, g1, b1 = params["bres"], params["g1"], params["b1"]
    g2, b2, se = params["g2"], params["b2"], params["se"]
    width = w1.shape[0]
    dn = ("NCHW", "OIHW", "NCHW")
    hp = lax.Precision.HIGHEST

    res = lax.conv_general_dilated(xq, wres, (1, 1), ((1, 1), (1, 1)),
                                   dimension_numbers=dn, precision=hp)
    res = jax.nn.relu(res + bres.reshape(1, -1, 1, 1))

    h = lax.conv_general_dilated(xq, w1, (1, 1), ((1, 1), (1, 1)),
                                 dimension_numbers=dn, feature_group_count=width,
                                 precision=hp)
    h = jax.nn.relu(_group_norm_ref(h, NUM_GROUPS, g1, b1))
    a = lax.conv_general_dilated(h, w2, (1, 1), ((0, 0), (0, 0)),
                                 dimension_numbers=dn, precision=hp)
    a = jax.nn.relu(_group_norm_ref(a, NUM_GROUPS, g2, b2))
    a = a * se.reshape(1, -1, 1, 1)
    return res + a


# ----------------------------------------------------------------------------
def init_params(key, Cin, Cout, bottleneck_ratio):
    width = Cin // bottleneck_ratio
    ks = jax.random.split(key, 5)
    return {
        # synthetic residual block: Conv2d(Cin, Cout, 3, pad=1) + bias (+ ReLU)
        "wres": jax.random.normal(ks[0], (Cout, Cin, 3, 3), jnp.float32) * 0.1,
        "bres": jax.random.normal(ks[1], (Cout,), jnp.float32) * 0.1,
        # adapter conv1: Conv2d(Cin, width, 3, groups=width, pad=1, bias=False)
        "w1": jax.random.normal(ks[2], (width, Cin // width, 3, 3), jnp.float32) * 0.2,
        # adapter conv2: Conv2d(width, Cout, 1, bias=False)
        "w2": jax.random.normal(ks[3], (Cout, width, 1, 1), jnp.float32) * 0.2,
        # GroupNorm affine params (torch default init: gamma=1, beta=0)
        "g1": jnp.ones((width,), jnp.float32),
        "b1": jnp.zeros((width,), jnp.float32),
        "g2": jnp.ones((Cout,), jnp.float32),
        "b2": jnp.zeros((Cout,), jnp.float32),
        # se: torch init is zeros; use non-zero values so the adapter path is exercised
        "se": jax.random.normal(ks[4], (Cout,), jnp.float32) * 0.5,
    }


if __name__ == "__main__":
    key = jax.random.PRNGKey(0)
    kx, kp = jax.random.split(key)

    # Small shapes consistent with the module (GroupNorm(16, .) needs multiples of 16).
    # Spatial 16x16 -> HW = 256 MXU rows per grid step (not per-step-overhead bound).
    N, Cin, Cout, H, W = 2, 32, 32, 16, 16
    bottleneck_ratio = 2  # width = 16

    x = jax.random.normal(kx, (N, Cin, H, W), jnp.float32)
    params = init_params(kp, Cin, Cout, bottleneck_ratio)

    prep = jax.block_until_ready(prepare_params(params))   # one-time weight prep
    fwd = jax.jit(parallel_block_adapter)
    out = jax.block_until_ready(fwd(x, prep))

    ref = jax.block_until_ready(reference(x, params))
    assert out.shape == ref.shape == (N, Cout, H, W)
    assert jnp.all(jnp.isfinite(out))
    assert jnp.allclose(out, ref, atol=2e-2, rtol=2e-2), (
        float(jnp.max(jnp.abs(out - ref))))

    print("KERNEL_OK")
</pallas_src>

<mosaic_0001>
module attributes {stable_mosaic.version = 11 : i64} {
  func.func @_parallel_block_adapter_kernel(%arg0: i32, %arg1: memref<1x18x18x32xbf16, #tpu.memory_space<vmem>>, %arg2: memref<288x48xbf16, #tpu.memory_space<vmem>>, %arg3: memref<1x32xf32, #tpu.memory_space<vmem>>, %arg4: memref<1x16xf32, #tpu.memory_space<vmem>>, %arg5: memref<1x16xf32, #tpu.memory_space<vmem>>, %arg6: memref<16x16xf32, #tpu.memory_space<vmem>>, %arg7: memref<16x16xf32, #tpu.memory_space<vmem>>, %arg8: memref<16x32xbf16, #tpu.memory_space<vmem>>, %arg9: memref<1x32xf32, #tpu.memory_space<vmem>>, %arg10: memref<1x32xf32, #tpu.memory_space<vmem>>, %arg11: memref<32x16xf32, #tpu.memory_space<vmem>>, %arg12: memref<16x32xf32, #tpu.memory_space<vmem>>, %arg13: memref<1x32xf32, #tpu.memory_space<vmem>>, %arg14: memref<1x256x32xbf16, #tpu.memory_space<vmem>>) attributes {dimension_semantics = [#tpu.dimension_semantics<parallel>], iteration_bounds = array<i64: 2>, scalar_prefetch = 0 : i64, scratch_operands = 0 : i64, tpu.core_type = #tpu.core_type<tc>, window_params = [{transform_indices = @transform_0, window_bounds = array<i64: 1, 18, 18, 32>}, {pipeline_mode = #tpu.pipeline_mode<synchronous>, transform_indices = @transform_1, window_bounds = array<i64: 288, 48>}, {pipeline_mode = #tpu.pipeline_mode<synchronous>, transform_indices = @transform_2, window_bounds = array<i64: 1, 32>}, {pipeline_mode = #tpu.pipeline_mode<synchronous>, transform_indices = @transform_3, window_bounds = array<i64: 1, 16>}, {pipeline_mode = #tpu.pipeline_mode<synchronous>, transform_indices = @transform_4, window_bounds = array<i64: 1, 16>}, {pipeline_mode = #tpu.pipeline_mode<synchronous>, transform_indices = @transform_5, window_bounds = array<i64: 16, 16>}, {pipeline_mode = #tpu.pipeline_mode<synchronous>, transform_indices = @transform_6, window_bounds = array<i64: 16, 16>}, {pipeline_mode = #tpu.pipeline_mode<synchronous>, transform_indices = @transform_7, window_bounds = array<i64: 16, 32>}, {pipeline_mode = #tpu.pipeline_mode<synchronous>, transform_indices = @transform_8, window_bounds = array<i64: 1, 32>}, {pipeline_mode = #tpu.pipeline_mode<synchronous>, transform_indices = @transform_9, window_bounds = array<i64: 1, 32>}, {pipeline_mode = #tpu.pipeline_mode<synchronous>, transform_indices = @transform_10, window_bounds = array<i64: 32, 16>}, {pipeline_mode = #tpu.pipeline_mode<synchronous>, transform_indices = @transform_11, window_bounds = array<i64: 16, 32>}, {pipeline_mode = #tpu.pipeline_mode<synchronous>, transform_indices = @transform_12, window_bounds = array<i64: 1, 32>}, {transform_indices = @transform_13, window_bounds = array<i64: 1, 256, 32>}]} {
    %c0 = arith.constant 0 : index
    %c0_0 = arith.constant 0 : index
    %c0_1 = arith.constant 0 : index
    %c0_2 = arith.constant 0 : index
    %0 = vector.load %arg1[%c0, %c0_0, %c0_1, %c0_2] : memref<1x18x18x32xbf16, #tpu.memory_space<vmem>>, vector<1x18x18x32xbf16>
    %1 = vector.shape_cast %0 : vector<1x18x18x32xbf16> to vector<18x18x32xbf16>
    %2 = vector.extract_strided_slice %1 {offsets = [0, 0, 0], sizes = [16, 16, 32], strides = [1, 1, 1]} : vector<18x18x32xbf16> to vector<16x16x32xbf16>
    %3 = vector.shape_cast %2 : vector<16x16x32xbf16> to vector<256x32xbf16>
    %4 = vector.extract_strided_slice %1 {offsets = [0, 1, 0], sizes = [16, 16, 32], strides = [1, 1, 1]} : vector<18x18x32xbf16> to vector<16x16x32xbf16>
    %5 = vector.shape_cast %4 : vector<16x16x32xbf16> to vector<256x32xbf16>
    %6 = vector.extract_strided_slice %1 {offsets = [0, 2, 0], sizes = [16, 16, 32], strides = [1, 1, 1]} : vector<18x18x32xbf16> to vector<16x16x32xbf16>
    %7 = vector.shape_cast %6 : vector<16x16x32xbf16> to vector<256x32xbf16>
    %8 = vector.extract_strided_slice %1 {offsets = [1, 0, 0], sizes = [16, 16, 32], strides = [1, 1, 1]} : vector<18x18x32xbf16> to vector<16x16x32xbf16>
    %9 = vector.shape_cast %8 : vector<16x16x32xbf16> to vector<256x32xbf16>
    %10 = vector.extract_strided_slice %1 {offsets = [1, 1, 0], sizes = [16, 16, 32], strides = [1, 1, 1]} : vector<18x18x32xbf16> to vector<16x16x32xbf16>
    %11 = vector.shape_cast %10 : vector<16x16x32xbf16> to vector<256x32xbf16>
    %12 = vector.extract_strided_slice %1 {offsets = [1, 2, 0], sizes = [16, 16, 32], strides = [1, 1, 1]} : vector<18x18x32xbf16> to vector<16x16x32xbf16>
    %13 = vector.shape_cast %12 : vector<16x16x32xbf16> to vector<256x32xbf16>
    %14 = vector.extract_strided_slice %1 {offsets = [2, 0, 0], sizes = [16, 16, 32], strides = [1, 1, 1]} : vector<18x18x32xbf16> to vector<16x16x32xbf16>
    %15 = vector.shape_cast %14 : vector<16x16x32xbf16> to vector<256x32xbf16>
    %16 = vector.extract_strided_slice %1 {offsets = [2, 1, 0], sizes = [16, 16, 32], strides = [1, 1, 1]} : vector<18x18x32xbf16> to vector<16x16x32xbf16>
    %17 = vector.shape_cast %16 : vector<16x16x32xbf16> to vector<256x32xbf16>
    %18 = vector.extract_strided_slice %1 {offsets = [2, 2, 0], sizes = [16, 16, 32], strides = [1, 1, 1]} : vector<18x18x32xbf16> to vector<16x16x32xbf16>
    %19 = vector.shape_cast %18 : vector<16x16x32xbf16> to vector<256x32xbf16>
    %20 = tpu.concatenate %3, %5, %7, %9, %11, %13, %15, %17, %19 in 1 : vector<256x32xbf16>, vector<256x32xbf16>, vector<256x32xbf16>, vector<256x32xbf16>, vector<256x32xbf16>, vector<256x32xbf16>, vector<256x32xbf16>, vector<256x32xbf16>, vector<256x32xbf16> -> vector<256x288xbf16>
    %c0_3 = arith.constant 0 : index
    %c0_4 = arith.constant 0 : index
    %21 = vector.load %arg2[%c0_3, %c0_4] : memref<288x48xbf16, #tpu.memory_space<vmem>>, vector<288x48xbf16>
    %cst = arith.constant dense<0.000000e+00> : vector<256x48xf32>
    %22 = tpu.matmul %20, %21, %cst {dimension_numbers = #tpu.dot_dimension_numbers<[1], [0], [0], [1], [0, 0, 1, 1], [], []>} : vector<256x288xbf16>, vector<288x48xbf16>, vector<256x48xf32> -> vector<256x48xf32>
    %23 = vector.extract_strided_slice %22 {offsets = [0, 0], sizes = [256, 32], strides = [1, 1]} : vector<256x48xf32> to vector<256x32xf32>
    %c0_5 = arith.constant 0 : index
    %c0_6 = arith.constant 0 : index
    %24 = vector.load %arg3[%c0_5, %c0_6] : memref<1x32xf32, #tpu.memory_space<vmem>>, vector<1x32xf32>
    %25 = vector.broadcast %24 : vector<1x32xf32> to vector<256x32xf32>
    %26 = arith.addf %23, %25 : vector<256x32xf32>
    %cst_7 = arith.constant 0.000000e+00 : f32
    %27 = vector.broadcast %cst_7 : f32 to vector<256x32xf32>
    %28 = arith.maximumf %26, %27 : vector<256x32xf32>
    %29 = vector.extract_strided_slice %22 {offsets = [0, 32], sizes = [256, 16], strides = [1, 1]} : vector<256x48xf32> to vector<256x16xf32>
    %c0_8 = arith.constant 0 : index
    %c0_9 = arith.constant 0 : index
    %30 = vector.load %arg4[%c0_8, %c0_9] : memref<1x16xf32, #tpu.memory_space<vmem>>, vector<1x16xf32>
    %c0_10 = arith.constant 0 : index
    %c0_11 = arith.constant 0 : index
    %31 = vector.load %arg5[%c0_10, %c0_11] : memref<1x16xf32, #tpu.memory_space<vmem>>, vector<1x16xf32>
    %c0_12 = arith.constant 0 : index
    %c0_13 = arith.constant 0 : index
    %32 = vector.load %arg6[%c0_12, %c0_13] : memref<16x16xf32, #tpu.memory_space<vmem>>, vector<16x16xf32>
    %c0_14 = arith.constant 0 : index
    %c0_15 = arith.constant 0 : index
    %33 = vector.load %arg7[%c0_14, %c0_15] : memref<16x16xf32, #tpu.memory_space<vmem>>, vector<16x16xf32>
    %cst_16 = arith.constant dense<0.000000e+00> : vector<16xf32>
    %34 = vector.multi_reduction <add>, %29, %cst_16 [0] : vector<256x16xf32> to vector<16xf32>
    %35 = vector.shape_cast %34 : vector<16xf32> to vector<1x16xf32>
    %cst_17 = arith.constant dense<0.000000e+00> : vector<1x16xf32>
    %36 = tpu.matmul %35, %32, %cst_17 {dimension_numbers = #tpu.dot_dimension_numbers<[1], [0], [0], [1], [0, 0, 1, 1], [], []>} : vector<1x16xf32>, vector<16x16xf32>, vector<1x16xf32> -> vector<1x16xf32>
    %cst_18 = arith.constant 3.906250e-03 : f32
    %37 = vector.broadcast %cst_18 : f32 to vector<1x16xf32>
    %38 = arith.mulf %36, %37 : vector<1x16xf32>
    %cst_19 = arith.constant dense<0.000000e+00> : vector<1x16xf32>
    %39 = tpu.matmul %38, %33, %cst_19 {dimension_numbers = #tpu.dot_dimension_numbers<[1], [0], [0], [1], [0, 0, 1, 1], [], []>} : vector<1x16xf32>, vector<16x16xf32>, vector<1x16xf32> -> vector<1x16xf32>
    %40 = vector.broadcast %39 : vector<1x16xf32> to vector<256x16xf32>
    %41 = arith.subf %29, %40 : vector<256x16xf32>
    %42 = arith.mulf %41, %41 : vector<256x16xf32>
    %cst_20 = arith.constant dense<0.000000e+00> : vector<16xf32>
    %43 = vector.multi_reduction <add>, %42, %cst_20 [0] : vector<256x16xf32> to vector<16xf32>
    %44 = vector.shape_cast %43 : vector<16xf32> to vector<1x16xf32>
    %cst_21 = arith.constant dense<0.000000e+00> : vector<1x16xf32>
    %45 = tpu.matmul %44, %32, %cst_21 {dimension_numbers = #tpu.dot_dimension_numbers<[1], [0], [0], [1], [0, 0, 1, 1], [], []>} : vector<1x16xf32>, vector<16x16xf32>, vector<1x16xf32> -> vector<1x16xf32>
    %cst_22 = arith.constant 3.906250e-03 : f32
    %46 = vector.broadcast %cst_22 : f32 to vector<1x16xf32>
    %47 = arith.mulf %45, %46 : vector<1x16xf32>
    %cst_23 = arith.constant 9.99999974E-6 : f32
    %48 = vector.broadcast %cst_23 : f32 to vector<1x16xf32>
    %49 = arith.addf %47, %48 : vector<1x16xf32>
    %50 = math.rsqrt %49 : vector<1x16xf32>
    %cst_24 = arith.constant dense<0.000000e+00> : vector<1x16xf32>
    %51 = tpu.matmul %50, %33, %cst_24 {dimension_numbers = #tpu.dot_dimension_numbers<[1], [0], [0], [1], [0, 0, 1, 1], [], []>} : vector<1x16xf32>, vector<16x16xf32>, vector<1x16xf32> -> vector<1x16xf32>
    %52 = vector.broadcast %51 : vector<1x16xf32> to vector<256x16xf32>
    %53 = arith.mulf %41, %52 : vector<256x16xf32>
    %54 = vector.broadcast %30 : vector<1x16xf32> to vector<256x16xf32>
    %55 = arith.mulf %53, %54 : vector<256x16xf32>
    %56 = vector.broadcast %31 : vector<1x16xf32> to vector<256x16xf32>
    %57 = arith.addf %55, %56 : vector<256x16xf32>
    %cst_25 = arith.constant 0.000000e+00 : f32
    %58 = vector.broadcast %cst_25 : f32 to vector<256x16xf32>
    %59 = arith.maximumf %57, %58 : vector<256x16xf32>
    %60 = arith.truncf %59 : vector<256x16xf32> to vector<256x16xbf16>
    %c0_26 = arith.constant 0 : index
    %c0_27 = arith.constant 0 : index
    %61 = vector.load %arg8[%c0_26, %c0_27] : memref<16x32xbf16, #tpu.memory_space<vmem>>, vector<16x32xbf16>
    %cst_28 = arith.constant dense<0.000000e+00> : vector<256x32xf32>
    %62 = tpu.matmul %60, %61, %cst_28 {dimension_numbers = #tpu.dot_dimension_numbers<[1], [0], [0], [1], [0, 0, 1, 1], [], []>} : vector<256x16xbf16>, vector<16x32xbf16>, vector<256x32xf32> -> vector<256x32xf32>
    %c0_29 = arith.constant 0 : index
    %c0_30 = arith.constant 0 : index
    %63 = vector.load %arg9[%c0_29, %c0_30] : memref<1x32xf32, #tpu.memory_space<vmem>>, vector<1x32xf32>
    %c0_31 = arith.constant 0 : index
    %c0_32 = arith.constant 0 : index
    %64 = vector.load %arg10[%c0_31, %c0_32] : memref<1x32xf32, #tpu.memory_space<vmem>>, vector<1x32xf32>
    %c0_33 = arith.constant 0 : index
    %c0_34 = arith.constant 0 : index
    %65 = vector.load %arg11[%c0_33, %c0_34] : memref<32x16xf32, #tpu.memory_space<vmem>>, vector<32x16xf32>
    %c0_35 = arith.constant 0 : index
    %c0_36 = arith.constant 0 : index
    %66 = vector.load %arg12[%c0_35, %c0_36] : memref<16x32xf32, #tpu.memory_space<vmem>>, vector<16x32xf32>
    %cst_37 = arith.constant dense<0.000000e+00> : vector<32xf32>
    %67 = vector.multi_reduction <add>, %62, %cst_37 [0] : vector<256x32xf32> to vector<32xf32>
    %68 = vector.shape_cast %67 : vector<32xf32> to vector<1x32xf32>
    %cst_38 = arith.constant dense<0.000000e+00> : vector<1x16xf32>
    %69 = tpu.matmul %68, %65, %cst_38 {dimension_numbers = #tpu.dot_dimension_numbers<[1], [0], [0], [1], [0, 0, 1, 1], [], []>} : vector<1x32xf32>, vector<32x16xf32>, vector<1x16xf32> -> vector<1x16xf32>
    %cst_39 = arith.constant 0.001953125 : f32
    %70 = vector.broadcast %cst_39 : f32 to vector<1x16xf32>
    %71 = arith.mulf %69, %70 : vector<1x16xf32>
    %cst_40 = arith.constant dense<0.000000e+00> : vector<1x32xf32>
    %72 = tpu.matmul %71, %66, %cst_40 {dimension_numbers = #tpu.dot_dimension_numbers<[1], [0], [0], [1], [0, 0, 1, 1], [], []>} : vector<1x16xf32>, vector<16x32xf32>, vector<1x32xf32> -> vector<1x32xf32>
    %73 = vector.broadcast %72 : vector<1x32xf32> to vector<256x32xf32>
    %74 = arith.subf %62, %73 : vector<256x32xf32>
    %75 = arith.mulf %74, %74 : vector<256x32xf32>
    %cst_41 = arith.constant dense<0.000000e+00> : vector<32xf32>
    %76 = vector.multi_reduction <add>, %75, %cst_41 [0] : vector<256x32xf32> to vector<32xf32>
    %77 = vector.shape_cast %76 : vector<32xf32> to vector<1x32xf32>
    %cst_42 = arith.constant dense<0.000000e+00> : vector<1x16xf32>
    %78 = tpu.matmul %77, %65, %cst_42 {dimension_numbers = #tpu.dot_dimension_numbers<[1], [0], [0], [1], [0, 0, 1, 1], [], []>} : vector<1x32xf32>, vector<32x16xf32>, vector<1x16xf32> -> vector<1x16xf32>
    %cst_43 = arith.constant 0.001953125 : f32
    %79 = vector.broadcast %cst_43 : f32 to vector<1x16xf32>
    %80 = arith.mulf %78, %79 : vector<1x16xf32>
    %cst_44 = arith.constant 9.99999974E-6 : f32
    %81 = vector.broadcast %cst_44 : f32 to vector<1x16xf32>
    %82 = arith.addf %80, %81 : vector<1x16xf32>
    %83 = math.rsqrt %82 : vector<1x16xf32>
    %cst_45 = arith.constant dense<0.000000e+00> : vector<1x32xf32>
    %84 = tpu.matmul %83, %66, %cst_45 {dimension_numbers = #tpu.dot_dimension_numbers<[1], [0], [0], [1], [0, 0, 1, 1], [], []>} : vector<1x16xf32>, vector<16x32xf32>, vector<1x32xf32> -> vector<1x32xf32>
    %85 = vector.broadcast %84 : vector<1x32xf32> to vector<256x32xf32>
    %86 = arith.mulf %74, %85 : vector<256x32xf32>
    %87 = vector.broadcast %63 : vector<1x32xf32> to vector<256x32xf32>
    %88 = arith.mulf %86, %87 : vector<256x32xf32>
    %89 = vector.broadcast %64 : vector<1x32xf32> to vector<256x32xf32>
    %90 = arith.addf %88, %89 : vector<256x32xf32>
    %cst_46 = arith.constant 0.000000e+00 : f32
    %91 = vector.broadcast %cst_46 : f32 to vector<256x32xf32>
    %92 = arith.maximumf %90, %91 : vector<256x32xf32>
    %c0_47 = arith.constant 0 : index
    %c0_48 = arith.constant 0 : index
    %93 = vector.load %arg13[%c0_47, %c0_48] : memref<1x32xf32, #tpu.memory_space<vmem>>, vector<1x32xf32>
    %94 = vector.broadcast %93 : vector<1x32xf32> to vector<256x32xf32>
    %95 = arith.mulf %92, %94 : vector<256x32xf32>
    %96 = arith.addf %28, %95 : vector<256x32xf32>
    %97 = arith.truncf %96 : vector<256x32xf32> to vector<256x32xbf16>
    %c0_49 = arith.constant 0 : index
    %c0_50 = arith.constant 0 : index
    %c0_51 = arith.constant 0 : index
    %98 = vector.load %arg14[%c0_49, %c0_50, %c0_51] : memref<1x256x32xbf16, #tpu.memory_space<vmem>>, vector<1x256x32xbf16>
    %99 = vector.shape_cast %98 : vector<1x256x32xbf16> to vector<256x32xbf16>
    %100 = vector.shape_cast %97 : vector<256x32xbf16> to vector<1x256x32xbf16>
    tpu.vector_store %arg14[%c0_49, %c0_50, %c0_51], %100 {strides = array<i32>} : memref<1x256x32xbf16, #tpu.memory_space<vmem>>, vector<1x256x32xbf16>,
    return
  }
  func.func @transform_0(%arg0: i32) -> (i32, i32, i32, i32) {
    %c0_i32 = arith.constant 0 : i32
    %c0_i32_0 = arith.constant 0 : i32
    %c0_i32_1 = arith.constant 0 : i32
    %c0_i32_2 = arith.constant 0 : i32
    return %arg0, %c0_i32, %c0_i32_0, %c0_i32_1 : i32, i32, i32, i32
  }
  func.func @transform_1(%arg0: i32) -> (i32, i32) {
    %c0_i32 = arith.constant 0 : i32
    %c0_i32_0 = arith.constant 0 : i32
    %c0_i32_1 = arith.constant 0 : i32
    return %c0_i32, %c0_i32_0 : i32, i32
  }
  func.func @transform_2(%arg0: i32) -> (i32, i32) {
    %c0_i32 = arith.constant 0 : i32
    %c0_i32_0 = arith.constant 0 : i32
    %c0_i32_1 = arith.constant 0 : i32
    return %c0_i32, %c0_i32_0 : i32, i32
  }
  func.func @transform_3(%arg0: i32) -> (i32, i32) {
    %c0_i32 = arith.constant 0 : i32
    %c0_i32_0 = arith.constant 0 : i32
    %c0_i32_1 = arith.constant 0 : i32
    return %c0_i32, %c0_i32_0 : i32, i32
  }
  func.func @transform_4(%arg0: i32) -> (i32, i32) {
    %c0_i32 = arith.constant 0 : i32
    %c0_i32_0 = arith.constant 0 : i32
    %c0_i32_1 = arith.constant 0 : i32
    return %c0_i32, %c0_i32_0 : i32, i32
  }
  func.func @transform_5(%arg0: i32) -> (i32, i32) {
    %c0_i32 = arith.constant 0 : i32
    %c0_i32_0 = arith.constant 0 : i32
    %c0_i32_1 = arith.constant 0 : i32
    return %c0_i32, %c0_i32_0 : i32, i32
  }
  func.func @transform_6(%arg0: i32) -> (i32, i32) {
    %c0_i32 = arith.constant 0 : i32
    %c0_i32_0 = arith.constant 0 : i32
    %c0_i32_1 = arith.constant 0 : i32
    return %c0_i32, %c0_i32_0 : i32, i32
  }
  func.func @transform_7(%arg0: i32) -> (i32, i32) {
    %c0_i32 = arith.constant 0 : i32
    %c0_i32_0 = arith.constant 0 : i32
    %c0_i32_1 = arith.constant 0 : i32
    return %c0_i32, %c0_i32_0 : i32, i32
  }
  func.func @transform_8(%arg0: i32) -> (i32, i32) {
    %c0_i32 = arith.constant 0 : i32
    %c0_i32_0 = arith.constant 0 : i32
    %c0_i32_1 = arith.constant 0 : i32
    return %c0_i32, %c0_i32_0 : i32, i32
  }
  func.func @transform_9(%arg0: i32) -> (i32, i32) {
    %c0_i32 = arith.constant 0 : i32
    %c0_i32_0 = arith.constant 0 : i32
    %c0_i32_1 = arith.constant 0 : i32
    return %c0_i32, %c0_i32_0 : i32, i32
  }
  func.func @transform_10(%arg0: i32) -> (i32, i32) {
    %c0_i32 = arith.constant 0 : i32
    %c0_i32_0 = arith.constant 0 : i32
    %c0_i32_1 = arith.constant 0 : i32
    return %c0_i32, %c0_i32_0 : i32, i32
  }
  func.func @transform_11(%arg0: i32) -> (i32, i32) {
    %c0_i32 = arith.constant 0 : i32
    %c0_i32_0 = arith.constant 0 : i32
    %c0_i32_1 = arith.constant 0 : i32
    return %c0_i32, %c0_i32_0 : i32, i32
  }
  func.func @transform_12(%arg0: i32) -> (i32, i32) {
    %c0_i32 = arith.constant 0 : i32
    %c0_i32_0 = arith.constant 0 : i32
    %c0_i32_1 = arith.constant 0 : i32
    return %c0_i32, %c0_i32_0 : i32, i32
  }
  func.func @transform_13(%arg0: i32) -> (i32, i32, i32) {
    %c0_i32 = arith.constant 0 : i32
    %c0_i32_0 = arith.constant 0 : i32
    %c0_i32_1 = arith.constant 0 : i32
    return %arg0, %c0_i32, %c0_i32_0 : i32, i32, i32
  }
}

</mosaic_0001>

<bundles_post_ra>
// kernel: parallel_block_adapter.1
= control target key start
LH: loop header
LB: loop body
LE: loop exit
PB: predicated region body
PF: predicated region fallthrough
CT: control target
= control target key end

     0   :  { %s3926_s25 = smov 0   ;;  %s6181_s0 = inlined_call_operand.vmem [shape: bf16[2,18,18,32], index: 0, kind: input, shape index: {}]   ;;  %s6182_s1 = inlined_call_operand.vmem [shape: bf16[288,48], index: 1, kind: input, shape index: {}]   ;;  %s6183_s2 = inlined_call_operand.vmem [shape: f32[1,32], index: 2, kind: input, shape index: {}]   ;;  %s6184_s3 = inlined_call_operand.vmem [shape: f32[1,16], index: 3, kind: input, shape index: {}]   ;;  %s6185_s4 = inlined_call_operand.vmem [shape: f32[1,16], index: 4, kind: input, shape index: {}]   ;;  %s6186_s5 = inlined_call_operand.vmem [shape: f32[16,16], index: 5, kind: input, shape index: {}]   ;;  %s6187_s6 = inlined_call_operand.vmem [shape: f32[16,16], index: 6, kind: input, shape index: {}]   ;;  %s6188_s7 = inlined_call_operand.vmem [shape: bf16[16,32], index: 7, kind: input, shape index: {}]   ;;  %s6189_s8 = inlined_call_operand.vmem [shape: f32[1,32], index: 8, kind: input, shape index: {}]   ;;  %s6190_s9 = inlined_call_operand.vmem [shape: f32[1,32], index: 9, kind: input, shape index: {}]   ;;  %s6191_s10 = inlined_call_operand.vmem [shape: f32[32,16], index: 10, kind: input, shape index: {}]   ;;  %s6192_s11 = inlined_call_operand.vmem [shape: f32[16,32], index: 11, kind: input, shape index: {}]   ;;  %s6193_s12 = inlined_call_operand.vmem [shape: f32[1,32], index: 12, kind: input, shape index: {}]   ;;  %s6194_s13 = inlined_call_operand.vmem [shape: bf16[2,256,32], index: 13, kind: output, shape index: {}]  }
   0x1 LB: > { %s3569_s26 = sadd.s32 4294967295, %s3851_s25   ;;  %p3573_p0 = scmp.ge.s32.totalorder %s3851_s25, 1  ;;  %s3851_s25 = sphi %s3926_s25, %s23_s25  }
   0x2   : > { %p387_p1 = scmp.lt.s32.totalorder %s3851_s25, 3 }
   0x4   : > { %p388_p2 = pnand %p3573_p0, %p387_p1 }
   0x6   : > { %391 = sbr.rel (%p388_p2) target bundleno = 2843 (0xb1b), region = 72 }
   0xb   : > { %p431_p3 = scmp.lt.s32.totalorder %s3569_s26, 1  ;;  %vm931_vm0 = vcmask 1042432   ;;  %vm932_vm1 = vcmask 1046532   ;;  %vm496_vm3 = vsmask.f32 3328  ;;  %s3853_s14 = smov 96  }
   0xc   : > { %vm3942_vm2 = vmor %vm931_vm0, %vm932_vm1  ;;  %vm497_vm4 = vsmask.f32 7440  ;;  %s3854_s15 = smov 64   ;;  %s3855_s16 = smov 32   ;;  %vm1468_vm6 = vcmask 261120   ;;  %vm1517_vm7 = vcmask 523264  }
   0xd   : > { %s6344_s26 = smov (!%p431_p3, %s3569_s26), 1  ;;  %vm3964_vm5 = vmor %vm496_vm3, %vm497_vm4  ;;  %vm1550_vm8 = vcmask 785408   ;;  %vm2260_vm9 = vcmask 392448   ;;  %vm2333_vm10 = vcmask 130048   ;;  %vm3481_vm1 = vcmask 257024  }
   0xe   : > { %s3823_s27 = smul.u32 216, %s6344_s26  ;;  %s3785_s22 = sshll.u32 %s6344_s26, 7 }
   0xf   : > { %s6019_s24 = scalar_lea.vmem %s6194_s13, %s3785_s22 }
  0x10   : > { %s3940_s30 = scalar_lea.vmem %s6181_s0, %s3823_s27 }
  0x11   : > { %v442_v1 = vld [vmem:[%s3940_s30] sm:$0xf]  ;;  %v443_v2 = vld [vmem:[%s3940_s30 + $0x4] sm:$0xf]  ;;  %v444_v3 = vld [vmem:[%s3940_s30 + $0x8] sm:$0x1] }
  0x12   : > { %v3577_v4 = vrot.slane %v442_v1, 9  ;;  %v936_v5 = vrot.slane %v443_v2, 5  ;;  %v939_v6 = vrot.slane %v444_v3, 5  ;;  %v500_v7 = vshrl.u32 %v442_v1, 16  ;;  %v445_v15 = vld [vmem:[%s3940_s30 + $0xc] sm:$0xf] }
  0x13   : > { %v503_v8 = vshll.u32 %v442_v1, 16  ;;  %v509_v9 = vshll.u32 %v443_v2, 16  ;;  %v513_v10 = vshrl.u32 %v443_v2, 16  ;;  %v519_v11 = vshll.u32 %v444_v3, 16  ;;  %v446_v16 = vld [vmem:[%s3940_s30 + $0x10] sm:$0xf] }
  0x14   : > { %v937_v12 = vsel %vm3942_vm2, %v3577_v4, %v936_v5  ;;  %v938_v13 = vrot.slane %v936_v5, 4  ;;  %v502_v14 = vrot.slane %v500_v7, 4  ;;  %v447_v21 = vld [vmem:[%s3940_s30 + $0x14] sm:$0x1]  ;;  %v943_v23 = vrot.slane %v446_v16, 5  ;;  %v3960_v29 = vld [vmem:[%s3940_s30 + $0xc] sm:$0xff] }
  0x15   : > { %v1242_v17 = vunpack.c.l.b16 %v937_v12  ;;  %v505_v18 = vrot.slane %v503_v8, 5  ;;  %v511_v19 = vrot.slane %v509_v9, 5  ;;  %v515_v20 = vrot.slane %v513_v10, 4  ;;  %v3957_v24 = vld [vmem:[%s3940_s30 + $0x1c] sm:$0xf]  ;;  %1325 = vrot.lane.b32.xlu2 %v3960_v29, %s3853_s14 }
  0x16   : > { %v940_v22 = vsel %vm3942_vm2, %v938_v13, %v939_v6  ;;  %v521_v28 = vrot.slane %v519_v11, 5  ;;  %v3578_v31 = vrot.slane %v445_v15, 9  ;;  %v946_v32 = vrot.slane %v447_v21, 5  ;;  %v448_v33 = vld [vmem:[%s3940_s30 + $0x18] sm:$0xf] }
  0x17   : > { %v1243_v25 = vunpack.c.l.b16 %v940_v22  ;;  %v506_v26 = vor.u32 %v505_v18, %v502_v14  ;;  %v516_v27 = vor.u32 %v515_v20, %v511_v19  ;;  %v950_v34 = vrot.slane %v3957_v24, 5  ;;  %v450_v39 = vld [vmem:[%s3940_s30 + $0x20] sm:$0x1]  ;;  %v3983_v56 = vld [vmem:[%s3940_s30 + $0x18] sm:$0xff]  ;;  %v451_v22 = vld [vmem:[%s3940_s30 + $0x24] sm:$0xf] }
  0x18   : > { %v945_v38 = vrot.slane %v943_v23, 4  ;;  %v3579_v42 = vrot.slane %v448_v33, 9  ;;  %v953_v46 = vrot.slane %v450_v39, 5  ;;  %v524_v47 = vshrl.u32 %v445_v15, 16 }
  0x19   : > { %v1274_v35 = vpack.c.b16 %v1243_v25, %v1242_v17  ;;  %v507_v36 = vrot.slane %v506_v26, 4  ;;  %v517_v37 = vrot.slane %v516_v27, 4  ;;  %v952_v43 = vrot.slane %v950_v34, 4  ;;  %v453_v25 = vld [vmem:[%s3940_s30 + $0x2c] sm:$0x1] }
  0x1a   : > { %v944_v48 = vsel %vm3942_vm2, %v3578_v31, %v943_v23  ;;  %v947_v49 = vsel %vm3942_vm2, %v945_v38, %v946_v32  ;;  %v527_v50 = vshll.u32 %v445_v15, 16  ;;  %v533_v51 = vshll.u32 %v446_v16, 16  ;;  %v452_v15 = vld [vmem:[%s3940_s30 + $0x28] sm:$0xf] }
  0x1b   : > { %1290 = vrot.lane.b32.xlu1 %v1274_v35, %s3854_s15  ;;  %v512_v40 = vsel %vm3964_vm5, %v507_v36, %v511_v19  ;;  %v522_v41 = vsel %vm3964_vm5, %v517_v37, %v521_v28  ;;  %v526_v53 = vrot.slane %v524_v47, 4  ;;  %v537_v54 = vshrl.u32 %v446_v16, 16 }
  0x1c   : > { %v1162_v44 = vunpack.c.l.b16 %v512_v40  ;;  %v1163_v45 = vunpack.c.l.b16 %v522_v41  ;;  %v543_v55 = vshll.u32 %v447_v21, 16  ;;  %v951_v57 = vsel %vm3942_vm2, %v3579_v42, %v950_v34 }
  0x1d   : > { %v529_v58 = vrot.slane %v527_v50, 5  ;;  %v535_v59 = vrot.slane %v533_v51, 5  ;;  %v1244_v60 = vunpack.c.l.b16 %v944_v48  ;;  %v1245_v61 = vunpack.c.l.b16 %v947_v49 }
  0x1e   : > { %v1194_v52 = vpack.c.b16 %v1163_v45, %v1162_v44  ;;  %v954_v62 = vsel %vm3942_vm2, %v952_v43, %v953_v46  ;;  %v539_v63 = vrot.slane %v537_v54, 4  ;;  %v548_v2 = vshrl.u32 %v448_v33, 16 }
  0x1f   : > { %v530_v1 = vor.u32 %v529_v58, %v526_v53  ;;  %v551_v3 = vshll.u32 %v448_v33, 16  ;;  %v557_v4 = vshll.u32 %v3957_v24, 16  ;;  %v1246_v5 = vunpack.c.l.b16 %v951_v57 }
  0x20   : > { %1210 = vrot.lane.b32.xlu0 %v1194_v52, %s3855_s16  ;;  %v540_v6 = vor.u32 %v539_v63, %v535_v59  ;;  %v545_v7 = vrot.slane %v543_v55, 5  ;;  %v561_v8 = vshrl.u32 %v3957_v24, 16  ;;  %v1247_v9 = vunpack.c.l.b16 %v954_v62  ;;  %v455_v62 = vld [vmem:[%s3940_s30 + $0x34] sm:$0xf] }
  0x21   : > { %v531_v10 = vrot.slane %v530_v1, 4  ;;  %v550_v11 = vrot.slane %v548_v2, 4  ;;  %v553_v12 = vrot.slane %v551_v3, 5  ;;  %v3994_v13 = vpack.c.b16 %v1245_v61, %v1244_v60  ;;  %v454_v61 = vld [vmem:[%s3940_s30 + $0x30] sm:$0xf] }
  0x22   : > { %v541_v14 = vrot.slane %v540_v6, 4  ;;  %v559_v16 = vrot.slane %v557_v4, 5  ;;  %v563_v17 = vrot.slane %v561_v8, 4  ;;  %v567_v20 = vshll.u32 %v450_v39, 16  ;;  %v4030_v4 = vld [vmem:[%s3940_s30 + $0x24] sm:$0xff] }
  0x23   : > { %1398 = vrot.lane.b32.xlu1 %v3983_v56, %s3854_s15  ;;  %v536_v18 = vsel %vm3964_vm5, %v531_v10, %v535_v59  ;;  %v554_v19 = vor.u32 %v553_v12, %v550_v11  ;;  %v4002_v24 = vpack.c.b16 %v1247_v9, %v1246_v5  ;;  %v957_v26 = vrot.slane %v452_v15, 5  ;;  %v456_v12 = vld [vmem:[%s3940_s30 + $0x38] sm:$0x1] }
  0x24   : > { %v546_v21 = vsel %vm3964_vm5, %v541_v14, %v545_v7  ;;  %v564_v23 = vor.u32 %v563_v17, %v559_v16  ;;  %v569_v28 = vrot.slane %v567_v20, 5  ;;  %v1164_v31 = vunpack.c.l.b16 %v536_v18 }
  0x25   : > { %v555_v27 = vrot.slane %v554_v19, 4  ;;  %v1165_v32 = vunpack.c.l.b16 %v546_v21  ;;  %v572_v34 = vshrl.u32 %v451_v22, 16  ;;  %v575_v36 = vshll.u32 %v451_v22, 16 }
  0x26   : > { %v565_v33 = vrot.slane %v564_v23, 4  ;;  %v581_v37 = vshll.u32 %v452_v15, 16  ;;  %v3580_v38 = vrot.slane %v451_v22, 9  ;;  %v960_v39 = vrot.slane %v453_v25, 5 }
  0x27   : > { %v560_v35 = vsel %vm3964_vm5, %v555_v27, %v559_v16  ;;  %v959_v42 = vrot.slane %v957_v26, 4  ;;  %v574_v44 = vrot.slane %v572_v34, 4  ;;  %v577_v45 = vrot.slane %v575_v36, 5  ;;  %v457_v34 = vld [vmem:[%s3940_s30 + $0x3c] sm:$0xf] }
  0x28   : > { %1363 = vrot.lane.b32.xlu0 %v3994_v13, %s3855_s16  ;;  %v570_v40 = vsel %vm3964_vm5, %v565_v33, %v569_v28  ;;  %v1166_v41 = vunpack.c.l.b16 %v560_v35  ;;  %v4013_v46 = vpack.c.b16 %v1165_v32, %v1164_v31  ;;  %v583_v47 = vrot.slane %v581_v37, 5  ;;  %v458_v35 = vld [vmem:[%s3940_s30 + $0x40] sm:$0xf] }
  0x29   : > { %v1167_v43 = vunpack.c.l.b16 %v570_v40  ;;  %v585_v48 = vshrl.u32 %v452_v15, 16  ;;  %v591_v49 = vshll.u32 %v453_v25, 16  ;;  %v578_v51 = vor.u32 %v577_v45, %v574_v44 }
  0x2a   : > { %v958_v53 = vsel %vm3942_vm2, %v3580_v38, %v957_v26  ;;  %v961_v54 = vsel %vm3942_vm2, %v959_v42, %v960_v39  ;;  %v596_v1 = vshrl.u32 %v454_v61, 16  ;;  %v599_v2 = vshll.u32 %v454_v61, 16 }
  0x2b   : > { %1365 = vrot.lane.b32.xlu1 %v4002_v24, %s3855_s16  ;;  %v4015_v50 = vpack.c.b16 %v1167_v43, %v1166_v41  ;;  %v587_v52 = vrot.slane %v585_v48, 4  ;;  %v579_v55 = vrot.slane %v578_v51, 4  ;;  %v593_v58 = vrot.slane %v591_v49, 5  ;;  %v4064_v41 = vld [vmem:[%s3940_s30 + $0x30] sm:$0xff] }
  0x2c   : > { %v1248_v59 = vunpack.c.l.b16 %v958_v53  ;;  %v1249_v60 = vunpack.c.l.b16 %v961_v54  ;;  %v605_v3 = vshll.u32 %v455_v62, 16  ;;  %v609_v7 = vshrl.u32 %v455_v62, 16  ;;  %v459_v53 = vld [vmem:[%s3940_s30 + $0x44] sm:$0x1] }
  0x2d   : > { %1433 = vrot.lane.b32.xlu2 %v4015_v50, %s3853_s14  ;;  %v588_v57 = vor.u32 %v587_v52, %v583_v47  ;;  %v584_v5 = vsel %vm3964_vm5, %v579_v55, %v583_v47  ;;  %v964_v9 = vrot.slane %v455_v62, 5  ;;  %v598_v10 = vrot.slane %v596_v1, 4 }
  0x2e   : > { %v4036_v8 = vpack.c.b16 %v1249_v60, %v1248_v59  ;;  %v601_v11 = vrot.slane %v599_v2, 5  ;;  %v1168_v14 = vunpack.c.l.b16 %v584_v5  ;;  %v607_v16 = vrot.slane %v605_v3, 5 }
  0x2f   : > { %v589_v63 = vrot.slane %v588_v57, 4  ;;  %v611_v17 = vrot.slane %v609_v7, 4  ;;  %v3581_v18 = vrot.slane %v454_v61, 9  ;;  %v967_v19 = vrot.slane %v456_v12, 5  ;;  %v460_v7 = vld [vmem:[%s3940_s30 + $0x48] sm:$0xf] }
  0x30   : > { %1212 = vrot.lane.b32.xlu0 %v4013_v46, %s3855_s16  ;;  %v602_v20 = vor.u32 %v601_v11, %v598_v10  ;;  %v966_v21 = vrot.slane %v964_v9, 4  ;;  %v615_v23 = vshll.u32 %v456_v12, 16  ;;  %v620_v38 = vshrl.u32 %v457_v34, 16  ;;  %v3811_v12 = vld [vmem:[%s6182_s1 + $0x38] sm:$0xff] }
  0x31   : > { %v594_v6 = vsel %vm3964_vm5, %v589_v63, %v593_v58  ;;  %v965_v26 = vsel %vm3942_vm2, %v3581_v18, %v964_v9  ;;  %v623_v39 = vshll.u32 %v457_v34, 16  ;;  %v629_v40 = vshll.u32 %v458_v35, 16  ;;  %v461_v9 = vld [vmem:[%s3940_s30 + $0x4c] sm:$0xf]  ;;  %1919 = vmatpush.bf16.msra.mxu0 %v3811_v12  ;;  %v3806_v12 = vld [vmem:[%s6182_s1 + $0x10] sm:$0xff] }
  0x32   : > { %v1169_v15 = vunpack.c.l.b16 %v594_v6  ;;  %v603_v25 = vrot.slane %v602_v20, 4  ;;  %v968_v27 = vsel %vm3942_vm2, %v966_v21, %v967_v19  ;;  %v617_v31 = vrot.slane %v615_v23, 5  ;;  %v462_v20 = vld [vmem:[%s3940_s30 + $0x50] sm:$0x1] }
  0x33   : > { %1327 = vrot.lane.b32.xlu1 %v3983_v56, %s3853_s14  ;;  %v1250_v32 = vunpack.c.l.b16 %v965_v26  ;;  %v1251_v33 = vunpack.c.l.b16 %v968_v27  ;;  %v633_v42 = vshrl.u32 %v458_v35, 16  ;;  %v622_v47 = vrot.slane %v620_v38, 4 }
  0x34   : > { %v4045_v22 = vpack.c.b16 %v1169_v15, %v1168_v14  ;;  %v608_v36 = vsel %vm3964_vm5, %v603_v25, %v607_v16  ;;  %v625_v48 = vrot.slane %v623_v39, 5  ;;  %v631_v49 = vrot.slane %v629_v40, 5  ;;  %v4097_v14 = vld [vmem:[%s3940_s30 + $0x3c] sm:$0xff]  ;;  %v3810_v25 = vld [vmem:[%s6182_s1 + $0x30] sm:$0xff] }
  0x35   : > { %1292 = vrot.lane.b32.xlu2 %v3994_v13, %s3854_s15  ;;  %v612_v13 = vor.u32 %v611_v17, %v607_v16  ;;  %v4066_v43 = vpack.c.b16 %v1251_v33, %v1250_v32  ;;  %v1170_v44 = vunpack.c.l.b16 %v608_v36  ;;  %v635_v51 = vrot.slane %v633_v42, 4  ;;  %1920 = vmatpush.bf16.msra.mxu0 %v3810_v25  ;;  %v3809_v36 = vld [vmem:[%s6182_s1 + $0x28] sm:$0xff] }
  0x36   : > { %v971_v52 = vrot.slane %v458_v35, 5  ;;  %v626_v55 = vor.u32 %v625_v48, %v622_v47  ;;  %v639_v58 = vshll.u32 %v459_v53, 16  ;;  %v3582_v59 = vrot.slane %v457_v34, 9 }
  0x37   : > { %v613_v28 = vrot.slane %v612_v13, 4  ;;  %v636_v57 = vor.u32 %v635_v51, %v631_v49  ;;  %v974_v61 = vrot.slane %v459_v53, 5  ;;  %v644_v15 = vshrl.u32 %v460_v7, 16  ;;  %v3818_v51 = vld [vmem:[%s6182_s1 + $0x70] sm:$0xff] }
  0x38   : > { %1400 = vrot.lane.b32.xlu0 %v4030_v4, %s3854_s15  ;;  %v973_v60 = vrot.slane %v971_v52, 4  ;;  %v627_v62 = vrot.slane %v626_v55, 4  ;;  %v641_v1 = vrot.slane %v639_v58, 5  ;;  %v972_v2 = vsel %vm3942_vm2, %v3582_v59, %v971_v52  ;;  %v463_v55 = vld [vmem:[%s3940_s30 + $0x54] sm:$0xf]  ;;  %v3807_v58 = vld [vmem:[%s6182_s1 + $0x18] sm:$0xff] }
  0x39   : > { %v618_v37 = vsel %vm3964_vm5, %v613_v28, %v617_v31  ;;  %v637_v63 = vrot.slane %v636_v57, 4  ;;  %v1252_v5 = vunpack.c.l.b16 %v972_v2  ;;  %v647_v16 = vshll.u32 %v460_v7, 16  ;;  %1921 = vmatpush.bf16.msra.mxu0 %v3809_v36  ;;  %v464_v57 = vld [vmem:[%s3940_s30 + $0x58] sm:$0xf]  ;;  %v3817_v59 = vld [vmem:[%s6182_s1 + $0x68] sm:$0xff] }
  0x3a   : > { %v1171_v45 = vunpack.c.l.b16 %v618_v37  ;;  %v975_v3 = vsel %vm3942_vm2, %v973_v60, %v974_v61  ;;  %v632_v10 = vsel %vm3964_vm5, %v627_v62, %v631_v49  ;;  %v653_v17 = vshll.u32 %v461_v9, 16  ;;  %v3819_v37 = vld [vmem:[%s6182_s1 + $0x78] sm:$0xff]  ;;  %v3808_v49 = vld [vmem:[%s6182_s1 + $0x20] sm:$0xff]  ;;  %v4144_v62 = vld [vmem:[%s3940_s30 + $0x48] sm:$0xff] }
  0x3b   : > { %1367 = vrot.lane.b32.xlu1 %v4036_v8, %s3855_s16  ;;  %v1253_v6 = vunpack.c.l.b16 %v975_v3  ;;  %v642_v11 = vsel %vm3964_vm5, %v637_v63, %v641_v1  ;;  %v657_v18 = vshrl.u32 %v461_v9, 16  ;;  %v978_v21 = vrot.slane %v461_v9, 5  ;;  %2008 = vmatpush.bf16.msra.mxu1 %v3819_v37 }
  0x3c   : > { %v4075_v54 = vpack.c.b16 %v1171_v45, %v1170_v44  ;;  %v1172_v13 = vunpack.c.l.b16 %v632_v10  ;;  %v1173_v23 = vunpack.c.l.b16 %v642_v11  ;;  %v646_v26 = vrot.slane %v644_v15, 4  ;;  %v3816_v15 = vld [vmem:[%s6182_s1 + $0x60] sm:$0xff] }
  0x3d   : > { %1435 = vrot.lane.b32.xlu2 %v4045_v22, %s3853_s14  ;;  %v4099_v19 = vpack.c.b16 %v1253_v6, %v1252_v5  ;;  %v649_v27 = vrot.slane %v647_v16, 5  ;;  %v655_v28 = vrot.slane %v653_v17, 5  ;;  %v659_v31 = vrot.slane %v657_v18, 4  ;;  %1922 = vmatpush.bf16.msra.mxu0 %v3808_v49  ;;  %v3821_v16 = vld [vmem:[%s6182_s1 + $0x88] sm:$0xff] }
  0x3e   : > { %v3583_v32 = vrot.slane %v460_v7, 9  ;;  %v980_v33 = vrot.slane %v978_v21, 4  ;;  %v981_v34 = vrot.slane %v462_v20, 5  ;;  %v4111_v35 = vpack.c.b16 %v1173_v23, %v1172_v13  ;;  %2103 = vmatpush.bf16.msra.mxu2 %v3821_v16 }
  0x3f   : > { %v650_v38 = vor.u32 %v649_v27, %v646_v26  ;;  %v660_v39 = vor.u32 %v659_v31, %v655_v28  ;;  %v663_v40 = vshll.u32 %v462_v20, 16  ;;  %2009 = vmatpush.bf16.msra.mxu1 %v3818_v51  ;;  %v668_v60 = vshrl.u32 %v463_v55, 16  ;;  %v465_v20 = vld [vmem:[%s3940_s30 + $0x5c] sm:$0x1]  ;;  %v3805_v31 = vld [vmem:[%s6182_s1 + $0x8] sm:$0xff]  ;;  %v4200_v51 = vld [vmem:[%s3940_s30 + $0x54] sm:$0xff] }
  0x40   : > { %1214 = vrot.lane.b32.xlu0 %v4015_v50, %s3855_s16  ;;  %v979_v42 = vsel %vm3942_vm2, %v3583_v32, %v978_v21  ;;  %v982_v44 = vsel %vm3942_vm2, %v980_v33, %v981_v34  ;;  %v671_v61 = vshll.u32 %v463_v55, 16  ;;  %v677_v2 = vshll.u32 %v464_v57, 16  ;;  %v3815_v32 = vld [vmem:[%s6182_s1 + $0x58] sm:$0xff]  ;;  %v3820_v33 = vld [vmem:[%s6182_s1 + $0x80] sm:$0xff] }
  0x41   : > { %v651_v45 = vrot.slane %v650_v38, 4  ;;  %v661_v47 = vrot.slane %v660_v39, 4  ;;  %v665_v48 = vrot.slane %v663_v40, 5  ;;  %v1254_v52 = vunpack.c.l.b16 %v979_v42  ;;  %1923 = vmatpush.bf16.msra.mxu0 %v3807_v58  ;;  %v3804_v40 = vld [vmem:[%s6182_s1] sm:$0xff]  ;;  %v3814_v42 = vld [vmem:[%s6182_s1 + $0x50] sm:$0xff]  ;;  %v3813_v58 = vld [vmem:[%s6182_s1 + $0x48] sm:$0xff] }
  0x42   : > { %v1255_v53 = vunpack.c.l.b16 %v982_v44  ;;  %v681_v3 = vshrl.u32 %v464_v57, 16  ;;  %v670_v9 = vrot.slane %v668_v60, 4  ;;  %v673_v10 = vrot.slane %v671_v61, 5  ;;  %2104 = vmatpush.bf16.msra.mxu2 %v3820_v33  ;;  %v470_v33 = vld [vmem:[%s3940_s30 + $0x70] sm:$0xf] }
  0x43   : > { %1329 = vrot.lane.b32.xlu1 %v4030_v4, %s3853_s14  ;;  %v656_v63 = vsel %vm3964_vm5, %v651_v45, %v655_v28  ;;  %v666_v1 = vsel %vm3964_vm5, %v661_v47, %v665_v48  ;;  %2010 = vmatpush.bf16.msra.mxu1 %v3817_v59  ;;  %v985_v11 = vrot.slane %v464_v57, 5  ;;  %v679_v17 = vrot.slane %v677_v2, 5  ;;  %v466_v47 = vld [vmem:[%s3940_s30 + $0x60] sm:$0xf]  ;;  %v467_v48 = vld [vmem:[%s3940_s30 + $0x64] sm:$0xf] }
  0x44   : > { %v4150_v5 = vpack.c.b16 %v1255_v53, %v1254_v52  ;;  %v1174_v6 = vunpack.c.l.b16 %v656_v63  ;;  %v1175_v7 = vunpack.c.l.b16 %v666_v1  ;;  %v683_v18 = vrot.slane %v681_v3, 4 }
  0x45   : > { %1294 = vrot.lane.b32.xlu2 %v4002_v24, %s3854_s15  ;;  %1924 = vmatpush.bf16.msra.mxu0 %v3806_v12  ;;  %v3584_v21 = vrot.slane %v463_v55, 9  ;;  %v674_v23 = vor.u32 %v673_v10, %v670_v9  ;;  %v987_v25 = vrot.slane %v985_v11, 4  ;;  %v988_v26 = vrot.slane %v465_v20, 5  ;;  %v3812_v9 = vld [vmem:[%s6182_s1 + $0x40] sm:$0xff] }
  0x46   : > { %v4168_v13 = vpack.c.b16 %v1175_v7, %v1174_v6  ;;  %v684_v27 = vor.u32 %v683_v18, %v679_v17  ;;  %v687_v28 = vshll.u32 %v465_v20, 16  ;;  %3739 = vmatmul.msk.bf16.vlgmr.msra.gmra.mxu2 %vm1468_vm6, %v4002_v24  ;;  %v692_v53 = vshrl.u32 %v466_v47, 16  ;;  %v468_v24 = vld [vmem:[%s3940_s30 + $0x68] sm:$0x1] }
  0x47   : > { %2011 = vmatpush.bf16.msra.mxu1 %v3816_v15  ;;  %v675_v34 = vrot.slane %v674_v23, 4  ;;  %v986_v36 = vsel %vm3942_vm2, %v3584_v21, %v985_v11  ;;  %v989_v37 = vsel %vm3942_vm2, %v987_v25, %v988_v26  ;;  %v695_v55 = vshll.u32 %v466_v47, 16 }
  0x48   : > { %1402 = vrot.lane.b32.xlu0 %v4064_v41, %s3854_s15  ;;  %v685_v38 = vrot.slane %v684_v27, 4  ;;  %v689_v39 = vrot.slane %v687_v28, 5  ;;  %v1256_v44 = vunpack.c.l.b16 %v986_v36  ;;  %v1257_v45 = vunpack.c.l.b16 %v989_v37  ;;  %v4238_v37 = vld [vmem:[%s3940_s30 + $0x60] sm:$0xff] }
  0x49   : > { %1925 = vmatpush.bf16.msra.mxu0 %v3805_v31  ;;  %v680_v49 = vsel %vm3964_vm5, %v675_v34, %v679_v17  ;;  %v701_v57 = vshll.u32 %v467_v48, 16  ;;  %v705_v59 = vshrl.u32 %v467_v48, 16  ;;  %v992_v61 = vrot.slane %v467_v48, 5 }
  0x4a   : > { %v690_v52 = vsel %vm3964_vm5, %v685_v38, %v689_v39  ;;  %v4209_v60 = vpack.c.b16 %v1257_v45, %v1256_v44  ;;  %v1176_v63 = vunpack.c.l.b16 %v680_v49  ;;  %v694_v2 = vrot.slane %v692_v53, 4  ;;  %v471_v53 = vld [vmem:[%s3940_s30 + $0x74] sm:$0x1] }
  0x4b   : > { %1369 = vrot.lane.b32.xlu1 %v4066_v43, %s3855_s16  ;;  %2012 = vmatpush.bf16.msra.mxu1 %v3815_v32  ;;  %v1177_v1 = vunpack.c.l.b16 %v690_v52  ;;  %v697_v3 = vrot.slane %v695_v55, 5  ;;  %v703_v6 = vrot.slane %v701_v57, 5  ;;  %v707_v7 = vrot.slane %v705_v59, 4  ;;  %v469_v32 = vld [vmem:[%s3940_s30 + $0x6c] sm:$0xf] }
  0x4c   : > { %v3585_v10 = vrot.slane %v466_v47, 9  ;;  %v994_v11 = vrot.slane %v992_v61, 4  ;;  %v995_v12 = vrot.slane %v468_v24, 5  ;;  %v711_v18 = vshll.u32 %v468_v24, 16 }
  0x4d   : > { %1437 = vrot.lane.b32.xlu2 %v4075_v54, %s3853_s14  ;;  %1926 = vmatpush.bf16.msra.mxu0 %v3804_v40  ;;  %v4221_v15 = vpack.c.b16 %v1177_v1, %v1176_v63  ;;  %v698_v16 = vor.u32 %v697_v3, %v694_v2  ;;  %v708_v17 = vor.u32 %v707_v7, %v703_v6  ;;  %v716_v34 = vshrl.u32 %v469_v32, 16 }
  0x4e   : > { %v993_v20 = vsel %vm3942_vm2, %v3585_v10, %v992_v61  ;;  %v996_v21 = vsel %vm3942_vm2, %v994_v11, %v995_v12  ;;  %v713_v27 = vrot.slane %v711_v18, 5  ;;  %v719_v36 = vshll.u32 %v469_v32, 16 }
  0x4f   : > { %2013 = vmatpush.bf16.msra.mxu1 %v3814_v42  ;;  %v699_v25 = vrot.slane %v698_v16, 4  ;;  %v709_v26 = vrot.slane %v708_v17, 4  ;;  %v1258_v28 = vunpack.c.l.b16 %v993_v20  ;;  %v1259_v31 = vunpack.c.l.b16 %v996_v21  ;;  %v472_v21 = vld [vmem:[%s3940_s30 + $0x78] sm:$0xf] }
  0x50   : > { %1216 = vrot.lane.b32.xlu0 %v4045_v22, %s3855_s16  ;;  %v725_v40 = vshll.u32 %v470_v33, 16  ;;  %v729_v42 = vshrl.u32 %v470_v33, 16  ;;  %v999_v45 = vrot.slane %v470_v33, 5  ;;  %v718_v49 = vrot.slane %v716_v34, 4  ;;  %v4279_v33 = vld [vmem:[%s3940_s30 + $0x6c] sm:$0xff] }
  0x51   : > { %v704_v38 = vsel %vm3964_vm5, %v699_v25, %v703_v6  ;;  %v714_v39 = vsel %vm3964_vm5, %v709_v26, %v713_v27  ;;  %v4246_v44 = vpack.c.b16 %v1259_v31, %v1258_v28  ;;  %v721_v52 = vrot.slane %v719_v36, 5  ;;  %v3786_v6 = vld [vmem:[%s3940_s30] sm:$0xff]  ;;  %v473_v26 = vld [vmem:[%s3940_s30 + $0x7c] sm:$0xf] }
  0x52   : > { %v1178_v47 = vunpack.c.l.b16 %v704_v38  ;;  %v1179_v48 = vunpack.c.l.b16 %v714_v39  ;;  %v727_v55 = vrot.slane %v725_v40, 5  ;;  %v731_v57 = vrot.slane %v729_v42, 4 }
  0x53   : > { %1331 = vrot.lane.b32.xlu1 %v4064_v41, %s3853_s14  ;;  %2014 = vmatpush.bf16.msra.mxu1 %v3813_v58  ;;  %v3586_v58 = vrot.slane %v469_v32, 9  ;;  %v1001_v59 = vrot.slane %v999_v45, 4  ;;  %v1002_v61 = vrot.slane %v471_v53, 5  ;;  %v722_v1 = vor.u32 %v721_v52, %v718_v49 }
  0x54   : > { %v4257_v63 = vpack.c.b16 %v1179_v48, %v1178_v47  ;;  %v732_v24 = vor.u32 %v731_v57, %v727_v55  ;;  %v735_v2 = vshll.u32 %v471_v53, 16  ;;  %v740_v28 = vshrl.u32 %v472_v21, 16 }
  0x55   : > { %1296 = vrot.lane.b32.xlu2 %v4036_v8, %s3854_s15  ;;  %v1000_v7 = vsel %vm3942_vm2, %v3586_v58, %v999_v45  ;;  %v723_v10 = vrot.slane %v722_v1, 4  ;;  %v743_v31 = vshll.u32 %v472_v21, 16  ;;  %v749_v36 = vshll.u32 %v473_v26, 16 }
  0x56   : > { %3740 = vmatmul.msk.bf16.gmra.mxu2 %vm1468_vm6, %v4036_v8  ;;  %v733_v11 = vrot.slane %v732_v24, 4  ;;  %v737_v12 = vrot.slane %v735_v2, 5  ;;  %v1260_v18 = vunpack.c.l.b16 %v1000_v7  ;;  %v753_v38 = vshrl.u32 %v473_v26, 16 }
  0x57   : > { %2015 = vmatpush.bf16.msra.mxu1 %v3812_v9  ;;  %v1003_v9 = vsel %vm3942_vm2, %v1001_v59, %v1002_v61  ;;  %v728_v27 = vsel %vm3964_vm5, %v723_v10, %v727_v55  ;;  %v1006_v45 = vrot.slane %v473_v26, 5  ;;  %v742_v49 = vrot.slane %v740_v28, 4  ;;  %v475_v26 = vld [vmem:[%s3940_s30 + $0x84] sm:$0xf]  ;;  %v476_v28 = vld [vmem:[%s3940_s30 + $0x88] sm:$0xf] }
  0x58   : > { %1404 = vrot.lane.b32.xlu0 %v4097_v14, %s3854_s15  ;;  %v1261_v20 = vunpack.c.l.b16 %v1003_v9  ;;  %v738_v34 = vsel %vm3964_vm5, %v733_v11, %v737_v12  ;;  %v1180_v47 = vunpack.c.l.b16 %v728_v27  ;;  %v745_v52 = vrot.slane %v743_v31, 5 }
  0x59   : > { %v1181_v48 = vunpack.c.l.b16 %v738_v34  ;;  %v751_v53 = vrot.slane %v749_v36, 5  ;;  %v755_v55 = vrot.slane %v753_v38, 4  ;;  %v3587_v58 = vrot.slane %v472_v21, 9  ;;  %v4326_v38 = vld [vmem:[%s3940_s30 + $0x78] sm:$0xff] }
  0x5a   : > { %v4287_v42 = vpack.c.b16 %v1261_v20, %v1260_v18  ;;  %v1008_v59 = vrot.slane %v1006_v45, 4  ;;  %v746_v2 = vor.u32 %v745_v52, %v742_v49  ;;  %v767_v34 = vshll.u32 %v475_v26, 16 }
  0x5b   : > { %1371 = vrot.lane.b32.xlu1 %v4099_v19, %s3855_s16  ;;  %v4300_v24 = vpack.c.b16 %v1181_v48, %v1180_v47  ;;  %v1013_v49 = vrot.slane %v476_v28, 5 }
  0x5c   : > { %v747_v12 = vrot.slane %v746_v2, 4 }
  0x5d   : > { %1439 = vrot.lane.b32.xlu2 %v4111_v35, %s3853_s14  ;;  %v1015_v2 = vrot.slane %v1013_v49, 4 }
  0x5e   : > { %v752_v31 = vsel %vm3964_vm5, %v747_v12, %v751_v53 }
  0x60   : > { %1218 = vrot.lane.b32.xlu0 %v4075_v54, %s3855_s16 }
  0x63   : > { %1333 = vrot.lane.b32.xlu1 %v4097_v14, %s3853_s14 }
  0x65   : > { %1298 = vrot.lane.b32.xlu2 %v4066_v43, %s3854_s15 }
  0x66   : > { %3741 = vmatmul.msk.bf16.gmra.mxu2 %vm1468_vm6, %v4066_v43  ;;  %v474_v43 = vld [vmem:[%s3940_s30 + $0x80] sm:$0x1] }
  0x67   : > { %v1009_v1 = vrot.slane %v474_v43, 5  ;;  %v759_v7 = vshll.u32 %v474_v43, 16 }
  0x68   : > { %1406 = vrot.lane.b32.xlu0 %v4144_v62, %s3854_s15 }
  0x69   : > { %v1010_v11 = vsel %vm3942_vm2, %v1008_v59, %v1009_v1  ;;  %v761_v18 = vrot.slane %v759_v7, 5  ;;  %v3588_v1 = vrot.slane %v475_v26, 9 }
  0x6b   : > { %1373 = vrot.lane.b32.xlu1 %v4150_v5, %s3855_s16 }
  0x6d   : > { %1441 = vrot.lane.b32.xlu2 %v4168_v13, %s3853_s14 }
  0x6f   : > { %v4229_v23 = vpop.permute.xlu2 %1325 }
  0x70   : > { %1220 = vrot.lane.b32.xlu0 %v4111_v35, %s3855_s16 }
  0x73   : > { %1335 = vrot.lane.b32.xlu1 %v4144_v62, %s3853_s14 }
  0x75   : > { %1300 = vrot.lane.b32.xlu2 %v4099_v19, %s3854_s15 }
  0x76   : > { %3742 = vmatmul.msk.bf16.gmra.mxu2 %vm1468_vm6, %v4099_v19  ;;  %v477_v19 = vld [vmem:[%s3940_s30 + $0x8c] sm:$0x1] }
  0x77   : > { %v783_v12 = vshll.u32 %v477_v19, 16 }
  0x78   : > { %1408 = vrot.lane.b32.xlu0 %v4200_v51, %s3854_s15 }
  0x7b   : > { %1375 = vrot.lane.b32.xlu1 %v4209_v60, %s3855_s16 }
  0x7d   : > { %1443 = vrot.lane.b32.xlu2 %v4221_v15, %s3853_s14 }
  0x80   : > { %1222 = vrot.lane.b32.xlu0 %v4168_v13, %s3855_s16 }
  0x83   : > { %1337 = vrot.lane.b32.xlu1 %v4200_v51, %s3853_s14 }
  0x85   : > { %1302 = vrot.lane.b32.xlu2 %v4150_v5, %s3854_s15 }
  0x86   : > { %3743 = vmatmul.msk.bf16.gmra.mxu2 %vm1468_vm6, %v4150_v5  ;;  %v480_v5 = vld [vmem:[%s3940_s30 + $0x98] sm:$0x1] }
  0x87   : > { %v4253_v8 = vpop.permute.xlu2 %1433 }
  0x88   : > { %1410 = vrot.lane.b32.xlu0 %v4238_v37, %s3854_s15 }
  0x8b   : > { %1377 = vrot.lane.b32.xlu1 %v4246_v44, %s3855_s16 }
  0x8d   : > { %v1291_v3 = vpop.permute.xlu1 %1290  ;;  %1445 = vrot.lane.b32.xlu2 %v4257_v63, %s3853_s14 }
  0x8f   : > { %v4268_v16 = vpop.permute.xlu2 %1292 }
  0x90   : > { %1224 = vrot.lane.b32.xlu0 %v4221_v15, %s3855_s16 }
  0x92   : > { %v1211_v17 = vpop.permute.xlu0 %1210 }
  0x93   : > { %v1471_v25 = vsel %vm1468_vm6, %v3786_v6, %v1211_v17  ;;  %1339 = vrot.lane.b32.xlu1 %v4238_v37, %s3853_s14  ;;  %v756_v6 = vor.u32 %v755_v55, %v751_v53  ;;  %v769_v53 = vrot.slane %v767_v34, 5 }
  0x94   : > { %v1519_v32 = vsel %vm1517_vm7, %v1471_v25, %v1291_v3  ;;  %v1263_v25 = vunpack.c.l.b16 %v1010_v11 }
  0x95   : > { %v1399_v39 = vpop.permute.xlu1 %1398  ;;  %v1552_v40 = vsel %vm1550_vm8, %v1519_v32, %v4229_v23  ;;  %1304 = vrot.lane.b32.xlu2 %v4209_v60, %s3854_s15  ;;  %v757_v17 = vrot.slane %v756_v6, 4  ;;  %v764_v32 = vshrl.u32 %v475_v26, 16  ;;  %v1016_v6 = vrot.slane %v477_v19, 5 }
  0x96   : > { %1927 = vmatmul.bf16.vlgmr.msra.gmra.mxu0 %v1552_v40  ;;  %v777_v40 = vshrl.u32 %v476_v28, 16  ;;  %3744 = vmatmul.msk.bf16.gmra.mxu2 %vm1468_vm6, %v4209_v60 }
  0x97   : > { %v4294_v57 = vpop.permute.xlu2 %1435  ;;  %v766_v43 = vrot.slane %v764_v32, 4  ;;  %v479_v32 = vld [vmem:[%s3940_s30 + $0x94] sm:$0xf] }
  0x98   : > { %1412 = vrot.lane.b32.xlu0 %v4279_v33, %s3854_s15 }
  0x9a   : > { %v1364_v23 = vpop.permute.xlu0 %1363 }
  0x9b   : > { %v1601_v61 = vsel %vm1468_vm6, %v4013_v46, %v1364_v23  ;;  %1379 = vrot.lane.b32.xlu1 %v4287_v42, %s3855_s16  ;;  %v1007_v46 = vsel %vm3942_vm2, %v3587_v58, %v1006_v45  ;;  %v779_v23 = vrot.slane %v777_v40, 4  ;;  %v4372_v40 = vld [vmem:[%s3940_s30 + $0x84] sm:$0xff] }
  0x9c   : > { %v1648_v3 = vsel %vm1517_vm7, %v1601_v61, %v1399_v39  ;;  %v1262_v21 = vunpack.c.l.b16 %v1007_v46  ;;  %v762_v39 = vsel %vm3964_vm5, %v757_v17, %v761_v18 }
  0x9d   : > { %v1366_v9 = vpop.permute.xlu1 %1365  ;;  %v1680_v10 = vsel %vm1550_vm8, %v1648_v3, %v4253_v8  ;;  %1447 = vrot.lane.b32.xlu2 %v4300_v24, %s3853_s14  ;;  %v1183_v52 = vunpack.c.l.b16 %v762_v39 }
  0x9e   : > { %2016 = vmatmul.bf16.vlgmr.msra.gmra.mxu1 %v1680_v10  ;;  %v4333_v48 = vpack.c.b16 %v1263_v25, %v1262_v21  ;;  %v1604_v59 = vsel %vm1468_vm6, %v4015_v50, %v1366_v9  ;;  %v770_v10 = vor.u32 %v769_v53, %v766_v43  ;;  %v1014_v50 = vsel %vm3942_vm2, %v3588_v1, %v1013_v49 }
  0x9f   : > { %v4313_v20 = vpop.permute.xlu2 %1294  ;;  %v1017_v9 = vsel %vm3942_vm2, %v1015_v2, %v1016_v6  ;;  %v1264_v26 = vunpack.c.l.b16 %v1014_v50  ;;  %v1020_v43 = vrot.slane %v479_v32, 5 }
  0xa0   : > { %1226 = vrot.lane.b32.xlu0 %v4257_v63, %s3855_s16  ;;  %v771_v18 = vrot.slane %v770_v10, 4 }
  0xa1   : > { %v1022_v6 = vrot.slane %v1020_v43, 4 }
  0xa2   : > { %v1213_v8 = vpop.permute.xlu0 %1212 }
  0xa3   : > { %v1474_v27 = vsel %vm1468_vm6, %v3960_v29, %v1213_v8  ;;  %1341 = vrot.lane.b32.xlu1 %v4279_v33, %s3853_s14  ;;  %v773_v29 = vshll.u32 %v476_v28, 16  ;;  %v785_v8 = vrot.slane %v783_v12, 5  ;;  %v478_v28 = vld [vmem:[%s3940_s30 + $0x90] sm:$0xf] }
  0xa4   : > { %v1521_v36 = vsel %vm1517_vm7, %v1474_v27, %v4268_v16  ;;  %v1182_v16 = vunpack.c.l.b16 %v752_v31  ;;  %v1265_v27 = vunpack.c.l.b16 %v1017_v9  ;;  %v791_v39 = vshll.u32 %v478_v28, 16 }
  0xa5   : > { %v1328_v45 = vpop.permute.xlu1 %1327  ;;  %1306 = vrot.lane.b32.xlu2 %v4246_v44, %s3854_s15  ;;  %v775_v55 = vrot.slane %v773_v29, 5 }
  0xa6   : > { %v1555_v47 = vsel %vm1550_vm8, %v1521_v36, %v1328_v45  ;;  %v4347_v7 = vpack.c.b16 %v1183_v52, %v1182_v16  ;;  %v788_v36 = vshrl.u32 %v478_v28, 16  ;;  %v4379_v52 = vpack.c.b16 %v1265_v27, %v1264_v26  ;;  %3745 = vmatmul.msk.bf16.gmra.mxu2 %vm1468_vm6, %v4246_v44 }
  0xa7   : > { %1932 = vmatmul.bf16.gmra.mxu0 %v1555_v47  ;;  %v4340_v58 = vpop.permute.xlu2 %1437  ;;  %v780_v11 = vor.u32 %v779_v23, %v775_v55  ;;  %v776_v34 = vsel %vm3964_vm5, %v771_v18, %v775_v55  ;;  %v801_v47 = vshrl.u32 %v479_v32, 16  ;;  %v793_v55 = vrot.slane %v791_v39, 5 }
  0xa8   : > { %1414 = vrot.lane.b32.xlu0 %v4326_v38, %s3854_s15  ;;  %v790_v19 = vrot.slane %v788_v36, 4  ;;  %v807_v18 = vshll.u32 %v480_v5, 16  ;;  %v482_v36 = vld [vmem:[%s3940_s30 + $0xa0] sm:$0xf] }
  0xaa   : > { %v1401_v61 = vpop.permute.xlu0 %1400  ;;  %v794_v12 = vor.u32 %v793_v55, %v790_v19  ;;  %v1027_v19 = vrot.slane %v482_v36, 5 }
  0xab   : > { %v1650_v3 = vsel %vm1517_vm7, %v1604_v59, %v1401_v61  ;;  %1381 = vrot.lane.b32.xlu1 %v4333_v48, %s3855_s16  ;;  %v803_v59 = vrot.slane %v801_v47, 4  ;;  %v4418_v47 = vld [vmem:[%s3940_s30 + $0x90] sm:$0xff] }
  0xac   : > { %v1683_v46 = vsel %vm1550_vm8, %v1650_v3, %v4294_v57  ;;  %v781_v57 = vrot.slane %v780_v11, 4  ;;  %v3589_v3 = vrot.slane %v478_v28, 9 }
  0xad   : > { %v1368_v17 = vpop.permute.xlu1 %1367  ;;  %1449 = vrot.lane.b32.xlu2 %v4347_v7, %s3853_s14 }
  0xae   : > { %2021 = vmatmul.bf16.gmra.mxu1 %v1683_v46  ;;  %v786_v45 = vsel %vm3964_vm5, %v781_v57, %v785_v8  ;;  %v1607_v1 = vsel %vm1468_vm6, %v4045_v22, %v1368_v17  ;;  %v1023_v46 = vrot.slane %v480_v5, 5  ;;  %v1021_v22 = vsel %vm3942_vm2, %v3589_v3, %v1020_v43 }
  0xaf   : > { %v4359_v21 = vpop.permute.xlu2 %1296  ;;  %v1185_v53 = vunpack.c.l.b16 %v786_v45  ;;  %v795_v8 = vrot.slane %v794_v12, 4  ;;  %v1266_v28 = vunpack.c.l.b16 %v1021_v22 }
  0xb0   : > { %1228 = vrot.lane.b32.xlu0 %v4300_v24, %s3855_s16  ;;  %v1024_v17 = vsel %vm3942_vm2, %v1022_v6, %v1023_v46  ;;  %v1029_v46 = vrot.slane %v1027_v19, 4 }
  0xb2   : > { %v1215_v25 = vpop.permute.xlu0 %1214 }
  0xb3   : > { %v1477_v31 = vsel %vm1468_vm6, %v3983_v56, %v1215_v25  ;;  %1343 = vrot.lane.b32.xlu1 %v4326_v38, %s3853_s14  ;;  %v797_v56 = vshll.u32 %v479_v32, 16  ;;  %v809_v25 = vrot.slane %v807_v18, 5  ;;  %v481_v32 = vld [vmem:[%s3940_s30 + $0x9c] sm:$0xf] }
  0xb4   : > { %v1523_v29 = vsel %vm1517_vm7, %v1477_v31, %v4313_v20  ;;  %v1184_v20 = vunpack.c.l.b16 %v776_v34  ;;  %v1267_v31 = vunpack.c.l.b16 %v1024_v17  ;;  %v815_v45 = vshll.u32 %v481_v32, 16 }
  0xb5   : > { %v1330_v49 = vpop.permute.xlu1 %1329  ;;  %1308 = vrot.lane.b32.xlu2 %v4287_v42, %s3854_s15  ;;  %v799_v23 = vrot.slane %v797_v56, 5 }
  0xb6   : > { %v1558_v16 = vsel %vm1550_vm8, %v1523_v29, %v1330_v49  ;;  %v4393_v11 = vpack.c.b16 %v1185_v53, %v1184_v20  ;;  %v812_v29 = vshrl.u32 %v481_v32, 16  ;;  %v4425_v53 = vpack.c.b16 %v1267_v31, %v1266_v28  ;;  %3746 = vmatmul.msk.bf16.gmra.mxu2 %vm1468_vm6, %v4287_v42 }
  0xb7   : > { %1937 = vmatmul.bf16.gmra.mxu0 %v1558_v16  ;;  %v4386_v61 = vpop.permute.xlu2 %1439  ;;  %v804_v9 = vor.u32 %v803_v59, %v799_v23  ;;  %v800_v39 = vsel %vm3964_vm5, %v795_v8, %v799_v23  ;;  %v825_v16 = vshrl.u32 %v482_v36, 16  ;;  %v817_v59 = vrot.slane %v815_v45, 5 }
  0xb8   : > { %1416 = vrot.lane.b32.xlu0 %v4372_v40, %s3854_s15  ;;  %v1186_v55 = vunpack.c.l.b16 %v800_v39  ;;  %v814_v23 = vrot.slane %v812_v29, 4  ;;  %v485_v29 = vld [vmem:[%s3940_s30 + $0xac] sm:$0xf] }
  0xba   : > { %v1403_v2 = vpop.permute.xlu0 %1402  ;;  %v818_v18 = vor.u32 %v817_v59, %v814_v23 }
  0xbb   : > { %v1652_v10 = vsel %vm1517_vm7, %v1607_v1, %v1403_v2  ;;  %1383 = vrot.lane.b32.xlu1 %v4379_v52, %s3855_s16  ;;  %v827_v1 = vrot.slane %v825_v16, 4  ;;  %v4464_v16 = vld [vmem:[%s3940_s30 + $0x9c] sm:$0xff] }
  0xbc   : > { %v1686_v50 = vsel %vm1550_vm8, %v1652_v10, %v4340_v58  ;;  %v805_v58 = vrot.slane %v804_v9, 4  ;;  %v3590_v10 = vrot.slane %v481_v32, 9 }
  0xbd   : > { %v1370_v57 = vpop.permute.xlu1 %1369  ;;  %1451 = vrot.lane.b32.xlu2 %v4393_v11, %s3853_s14 }
  0xbe   : > { %2026 = vmatmul.bf16.gmra.mxu1 %v1686_v50  ;;  %v810_v49 = vsel %vm3964_vm5, %v805_v58, %v809_v25  ;;  %v1610_v3 = vsel %vm1468_vm6, %v4075_v54, %v1370_v57  ;;  %v1028_v54 = vsel %vm3942_vm2, %v3590_v10, %v1027_v19  ;;  %v819_v25 = vrot.slane %v818_v18, 4 }
  0xbf   : > { %v4405_v26 = vpop.permute.xlu2 %1298  ;;  %v1187_v5 = vunpack.c.l.b16 %v810_v49  ;;  %v1268_v28 = vunpack.c.l.b16 %v1028_v54 }
  0xc0   : > { %1230 = vrot.lane.b32.xlu0 %v4347_v7, %s3855_s16 }
  0xc1   : > { %v4439_v9 = vpack.c.b16 %v1187_v5, %v1186_v55  ;;  %v1034_v5 = vrot.slane %v485_v29, 5 }
  0xc2   : > { %v1217_v27 = vpop.permute.xlu0 %1216 }
  0xc3   : > { %v1480_v34 = vsel %vm1468_vm6, %v4030_v4, %v1217_v27  ;;  %1345 = vrot.lane.b32.xlu1 %v4372_v40, %s3853_s14  ;;  %v821_v4 = vshll.u32 %v482_v36, 16  ;;  %v484_v36 = vld [vmem:[%s3940_s30 + $0xa8] sm:$0xf] }
  0xc4   : > { %v1525_v56 = vsel %vm1517_vm7, %v1480_v34, %v4359_v21  ;;  %v483_v21 = vld [vmem:[%s3940_s30 + $0xa4] sm:$0x1]  ;;  %v839_v49 = vshll.u32 %v484_v36, 16  ;;  %v3591_v10 = vrot.slane %v484_v36, 9 }
  0xc5   : > { %v1332_v43 = vpop.permute.xlu1 %1331  ;;  %1310 = vrot.lane.b32.xlu2 %v4333_v48, %s3854_s15  ;;  %v823_v60 = vrot.slane %v821_v4, 5  ;;  %v1030_v12 = vrot.slane %v483_v21, 5  ;;  %v831_v8 = vshll.u32 %v483_v21, 16 }
  0xc6   : > { %v1561_v20 = vsel %vm1550_vm8, %v1525_v56, %v1332_v43  ;;  %v836_v56 = vshrl.u32 %v484_v36, 16  ;;  %v841_v59 = vrot.slane %v839_v49, 5  ;;  %v488_v49 = vld [vmem:[%s3940_s30 + $0xb8] sm:$0xf]  ;;  %3747 = vmatmul.msk.bf16.gmra.mxu2 %vm1468_vm6, %v4333_v48 }
  0xc7   : > { %1942 = vmatmul.bf16.gmra.mxu0 %v1561_v20  ;;  %v4432_v2 = vpop.permute.xlu2 %1441  ;;  %v828_v17 = vor.u32 %v827_v1, %v823_v60  ;;  %v1031_v57 = vsel %vm3942_vm2, %v1029_v46, %v1030_v12  ;;  %v833_v27 = vrot.slane %v831_v8, 5  ;;  %v824_v45 = vsel %vm3964_vm5, %v819_v25, %v823_v60 }
  0xc8   : > { %1418 = vrot.lane.b32.xlu0 %v4418_v47, %s3854_s15  ;;  %v1269_v31 = vunpack.c.l.b16 %v1031_v57  ;;  %v849_v20 = vshrl.u32 %v485_v29, 16  ;;  %v838_v23 = vrot.slane %v836_v56, 4  ;;  %v1188_v60 = vunpack.c.l.b16 %v824_v45 }
  0xca   : > { %v1405_v6 = vpop.permute.xlu0 %1404  ;;  %v4470_v21 = vpack.c.b16 %v1269_v31, %v1268_v28 }
  0xcb   : > { %v1654_v50 = vsel %vm1517_vm7, %v1610_v3, %v1405_v6  ;;  %1385 = vrot.lane.b32.xlu1 %v4425_v53, %s3855_s16  ;;  %v851_v6 = vrot.slane %v849_v20, 4 }
  0xcc   : > { %v1689_v22 = vsel %vm1550_vm8, %v1654_v50, %v4386_v61  ;;  %v829_v61 = vrot.slane %v828_v17, 4  ;;  %v1036_v50 = vrot.slane %v1034_v5, 4 }
  0xcd   : > { %v1372_v58 = vpop.permute.xlu1 %1371  ;;  %1453 = vrot.lane.b32.xlu2 %v4439_v9, %s3853_s14 }
  0xce   : > { %2031 = vmatmul.bf16.gmra.mxu1 %v1689_v22  ;;  %v834_v43 = vsel %vm3964_vm5, %v829_v61, %v833_v27  ;;  %v1613_v46 = vsel %vm1468_vm6, %v4111_v35, %v1372_v58  ;;  %v842_v22 = vor.u32 %v841_v59, %v838_v23  ;;  %v1035_v35 = vsel %vm3942_vm2, %v3591_v10, %v1034_v5 }
  0xcf   : > { %v4451_v32 = vpop.permute.xlu2 %1300  ;;  %v1189_v1 = vunpack.c.l.b16 %v834_v43 }
  0xd0   : > { %1232 = vrot.lane.b32.xlu0 %v4393_v11, %s3855_s16  ;;  %v843_v27 = vrot.slane %v842_v22, 4 }
  0xd1   : > { %v4485_v8 = vpack.c.b16 %v1189_v1, %v1188_v60 }
  0xd2   : > { %v1219_v34 = vpop.permute.xlu0 %1218 }
  0xd3   : > { %v1483_v39 = vsel %vm1468_vm6, %v4064_v41, %v1219_v34  ;;  %1347 = vrot.lane.b32.xlu1 %v4418_v47, %s3853_s14  ;;  %v845_v41 = vshll.u32 %v485_v29, 16  ;;  %v487_v29 = vld [vmem:[%s3940_s30 + $0xb4] sm:$0xf] }
  0xd4   : > { %v1527_v4 = vsel %vm1517_vm7, %v1483_v39, %v4405_v26  ;;  %v486_v26 = vld [vmem:[%s3940_s30 + $0xb0] sm:$0x1]  ;;  %v860_v43 = vshrl.u32 %v487_v29, 16 }
  0xd5   : > { %v1334_v19 = vpop.permute.xlu1 %1333  ;;  %1312 = vrot.lane.b32.xlu2 %v4379_v52, %s3854_s15  ;;  %v847_v3 = vrot.slane %v845_v41, 5  ;;  %v1037_v18 = vrot.slane %v486_v26, 5  ;;  %v855_v57 = vshll.u32 %v486_v26, 16  ;;  %v863_v41 = vshll.u32 %v487_v29, 16 }
  0xd6   : > { %v1564_v55 = vsel %vm1550_vm8, %v1527_v4, %v1334_v19  ;;  %v4510_v19 = vld [vmem:[%s3940_s30 + $0xa8] sm:$0xff]  ;;  %v1041_v26 = vrot.slane %v488_v49, 5  ;;  %3748 = vmatmul.msk.bf16.gmra.mxu2 %vm1468_vm6, %v4379_v52 }
  0xd7   : > { %1947 = vmatmul.bf16.gmra.mxu0 %v1564_v55  ;;  %v4478_v44 = vpop.permute.xlu2 %1443  ;;  %v852_v54 = vor.u32 %v851_v6, %v847_v3  ;;  %v1038_v58 = vsel %vm3942_vm2, %v1036_v50, %v1037_v18  ;;  %v857_v31 = vrot.slane %v855_v57, 5  ;;  %v848_v45 = vsel %vm3964_vm5, %v843_v27, %v847_v3 }
  0xd8   : > { %1420 = vrot.lane.b32.xlu0 %v4464_v16, %s3854_s15  ;;  %v1271_v34 = vunpack.c.l.b16 %v1038_v58  ;;  %v869_v55 = vshll.u32 %v488_v49, 16  ;;  %v1190_v60 = vunpack.c.l.b16 %v848_v45  ;;  %v862_v3 = vrot.slane %v860_v43, 4 }
  0xd9   : > { %v853_v28 = vrot.slane %v852_v54, 4  ;;  %v865_v6 = vrot.slane %v863_v41, 5  ;;  %v1043_v22 = vrot.slane %v1041_v26, 4 }
  0xda   : > { %v1407_v12 = vpop.permute.xlu0 %1406  ;;  %v871_v10 = vrot.slane %v869_v55, 5  ;;  %v4555_v55 = vld [vmem:[%s3940_s30 + $0xb4] sm:$0xff] }
  0xdb   : > { %v1656_v17 = vsel %vm1517_vm7, %v1613_v46, %v1407_v12  ;;  %1387 = vrot.lane.b32.xlu1 %v4470_v21, %s3855_s16  ;;  %v858_v4 = vsel %vm3964_vm5, %v853_v28, %v857_v31  ;;  %v3592_v12 = vrot.slane %v487_v29, 9 }
  0xdc   : > { %v1692_v25 = vsel %vm1550_vm8, %v1656_v17, %v4432_v2  ;;  %v1270_v2 = vunpack.c.l.b16 %v1035_v35  ;;  %v1191_v1 = vunpack.c.l.b16 %v858_v4  ;;  %v491_v4 = vld [vmem:[%s3940_s30 + $0xc4] sm:$0xf] }
  0xdd   : > { %v1374_v61 = vpop.permute.xlu1 %1373  ;;  %1455 = vrot.lane.b32.xlu2 %v4485_v8, %s3853_s14 }
  0xde   : > { %2036 = vmatmul.bf16.gmra.mxu1 %v1692_v25  ;;  %v4514_v23 = vpack.c.b16 %v1271_v34, %v1270_v2  ;;  %v1616_v50 = vsel %vm1468_vm6, %v4168_v13, %v1374_v61  ;;  %v4526_v54 = vpack.c.b16 %v1191_v1, %v1190_v60  ;;  %v866_v25 = vor.u32 %v865_v6, %v862_v3 }
  0xdf   : > { %v1303_v36 = vpop.permute.xlu2 %1302  ;;  %v1042_v13 = vsel %vm3942_vm2, %v3592_v12, %v1041_v26  ;;  %v1060_v26 = vshrl.u32 %v491_v4, 16  ;;  %v1075_v12 = vrot.slane %v491_v4, 5 }
  0xe0   : > { %1234 = vrot.lane.b32.xlu0 %v4439_v9, %s3855_s16  ;;  %v867_v31 = vrot.slane %v866_v25, 4  ;;  %v1272_v29 = vunpack.c.l.b16 %v1042_v13 }
  0xe2   : > { %v1221_v39 = vpop.permute.xlu0 %1220  ;;  %v872_v43 = vsel %vm3964_vm5, %v867_v31, %v871_v10  ;;  %v1077_v31 = vrot.slane %v1075_v12, 4 }
  0xe3   : > { %v1486_v56 = vsel %vm1468_vm6, %v4097_v14, %v1221_v39  ;;  %1349 = vrot.lane.b32.xlu1 %v4464_v16, %s3853_s14  ;;  %v873_v14 = vshrl.u32 %v488_v49, 16  ;;  %v490_v49 = vld [vmem:[%s3940_s30 + $0xc0] sm:$0xf] }
  0xe4   : > { %v1529_v20 = vsel %vm1517_vm7, %v1486_v56, %v4451_v32  ;;  %v489_v32 = vld [vmem:[%s3940_s30 + $0xbc] sm:$0x1] }
  0xe5   : > { %v1336_v5 = vpop.permute.xlu1 %1335  ;;  %1314 = vrot.lane.b32.xlu2 %v4425_v53, %s3854_s15  ;;  %v875_v46 = vrot.slane %v873_v14, 4  ;;  %v1044_v17 = vrot.slane %v489_v32, 5  ;;  %v879_v58 = vshll.u32 %v489_v32, 16  ;;  %v1047_v14 = vshrl.u32 %v490_v49, 16 }
  0xe6   : > { %v1567_v59 = vsel %vm1550_vm8, %v1529_v20, %v1336_v5  ;;  %v1056_v5 = vshll.u32 %v491_v4, 16  ;;  %v1192_v32 = vunpack.c.l.b16 %v872_v43  ;;  %3749 = vmatmul.msk.bf16.gmra.mxu2 %vm1468_vm6, %v4425_v53 }
  0xe7   : > { %1952 = vmatmul.bf16.gmra.mxu0 %v1567_v59  ;;  %v4522_v42 = vpop.permute.xlu2 %1445  ;;  %v876_v35 = vor.u32 %v875_v46, %v871_v10  ;;  %v1045_v61 = vsel %vm3942_vm2, %v1043_v22, %v1044_v17  ;;  %v881_v34 = vrot.slane %v879_v58, 5  ;;  %v1049_v6 = vrot.slane %v1047_v14, 4 }
  0xe8   : > { %1422 = vrot.lane.b32.xlu0 %v4510_v19, %s3854_s15  ;;  %v1273_v45 = vunpack.c.l.b16 %v1045_v61  ;;  %v1058_v10 = vrot.slane %v1056_v5, 5  ;;  %v1062_v46 = vrot.slane %v1060_v26, 4  ;;  %v4600_v5 = vld [vmem:[%s3940_s30 + $0xd0] sm:$0xf]  ;;  %v3802_v26 = vld [vmem:[%s3940_s30 + $0xc0] sm:$0xff] }
  0xe9   : > { %v877_v2 = vrot.slane %v876_v35, 4 }
  0xea   : > { %v1409_v18 = vpop.permute.xlu0 %1408  ;;  %v4560_v1 = vpack.c.b16 %v1273_v45, %v1272_v29 }
  0xeb   : > { %v1658_v57 = vsel %vm1517_vm7, %v1616_v50, %v1409_v18  ;;  %1389 = vrot.lane.b32.xlu1 %v4514_v23, %s3855_s16  ;;  %v882_v41 = vsel %vm3964_vm5, %v877_v2, %v881_v34  ;;  %v492_v18 = vld [vmem:[%s3940_s30 + $0xc8] sm:$0x1] }
  0xec   : > { %v1695_v27 = vsel %vm1550_vm8, %v1658_v57, %v4478_v44  ;;  %v1193_v3 = vunpack.c.l.b16 %v882_v41  ;;  %v3593_v57 = vrot.slane %v490_v49, 9  ;;  %v1066_v13 = vshll.u32 %v492_v18, 16 }
  0xed   : > { %v1376_v28 = vpop.permute.xlu1 %1375  ;;  %1457 = vrot.lane.b32.xlu2 %v4526_v54, %s3853_s14  ;;  %v1078_v2 = vrot.slane %v492_v18, 5 }
  0xee   : > { %2041 = vmatmul.bf16.gmra.mxu1 %v1695_v27  ;;  %v1619_v22 = vsel %vm1468_vm6, %v4221_v15, %v1376_v28  ;;  %v4571_v25 = vpack.c.b16 %v1193_v3, %v1192_v32  ;;  %v1063_v27 = vor.u32 %v1062_v46, %v1058_v10  ;;  %v1076_v15 = vsel %vm3942_vm2, %v3593_v57, %v1075_v12 }
  0xef   : > { %v4541_v44 = vpop.permute.xlu2 %1304  ;;  %v1068_v45 = vrot.slane %v1066_v13, 5  ;;  %v1360_v4 = vunpack.c.l.b16 %v1076_v15  ;;  %v1090_v32 = vshll.u32 %v4600_v5, 16 }
  0xf0   : > { %1236 = vrot.lane.b32.xlu0 %v4485_v8, %s3855_s16  ;;  %v1064_v29 = vrot.slane %v1063_v27, 4 }
  0xf2   : > { %v1223_v39 = vpop.permute.xlu0 %1222  ;;  %v1069_v14 = vsel %vm3964_vm5, %v1064_v29, %v1068_v45 }
  0xf3   : > { %v1489_v56 = vsel %vm1468_vm6, %v4144_v62, %v1223_v39  ;;  %1351 = vrot.lane.b32.xlu1 %v4510_v19, %s3853_s14  ;;  %v1050_v62 = vshll.u32 %v490_v49, 16  ;;  %v1358_v52 = vunpack.c.l.b16 %v1069_v14 }
  0xf4   : > { %v1531_v20 = vsel %vm1517_vm7, %v1489_v56, %v1303_v36  ;;  %v4564_v36 = vpop.f32.mrf.mxu2 }
  0xf5   : > { %v1338_v59 = vpop.permute.xlu1 %1337  ;;  %1316 = vrot.lane.b32.xlu2 %v4470_v21, %s3854_s15  ;;  %v1052_v48 = vrot.slane %v1050_v62, 5  ;;  %v4597_v62 = vld [vmem:[%s3940_s30 + $0xcc] sm:$0xf] }
  0xf6   : > { %v1570_v60 = vsel %vm1550_vm8, %v1531_v20, %v1338_v59  ;;  %3750 = vmatmul.msk.bf16.gmra.mxu2 %vm1468_vm6, %v4470_v21 }
  0xf7   : > { %1957 = vmatmul.bf16.gmra.mxu0 %v1570_v60  ;;  %v1448_v50 = vpop.permute.xlu2 %1447  ;;  %v1053_v58 = vor.u32 %v1052_v48, %v1049_v6  ;;  %v1084_v60 = vshll.u32 %v4597_v62, 16  ;;  %v1094_v6 = vshrl.u32 %v4600_v5, 16 }
  0xf8   : > { %1424 = vrot.lane.b32.xlu0 %v4555_v55, %s3854_s15 }
  0xf9   : > { %v1054_v39 = vrot.slane %v1053_v58, 4  ;;  %v1086_v18 = vrot.slane %v1084_v60, 5 }
  0xfa   : > { %v1411_v17 = vpop.permute.xlu0 %1410 }
  0xfb   : > { %v1660_v35 = vsel %vm1517_vm7, %v1619_v22, %v1411_v17  ;;  %1391 = vrot.lane.b32.xlu1 %v4560_v1, %s3855_s16  ;;  %v1059_v20 = vsel %vm3964_vm5, %v1054_v39, %v1058_v10  ;;  %v1092_v22 = vrot.slane %v1090_v32, 5  ;;  %v1096_v17 = vrot.slane %v1094_v6, 4 }
  0xfc   : > { %v1698_v61 = vsel %vm1550_vm8, %v1660_v35, %v4522_v42  ;;  %v4582_v28 = vpop.f32.mrf.mxu2  ;;  %v1079_v42 = vsel %vm3942_vm2, %v1077_v31, %v1078_v2  ;;  %v4620_v35 = vld [vmem:[%s3940_s30 + $0xd4] sm:$0x1] }
  0xfd   : > { %v1378_v34 = vpop.permute.xlu1 %1377  ;;  %1459 = vrot.lane.b32.xlu2 %v4571_v25, %s3853_s14  ;;  %v1361_v41 = vunpack.c.l.b16 %v1079_v42  ;;  %v1097_v15 = vor.u32 %v1096_v17, %v1092_v22  ;;  %v1100_v39 = vshll.u32 %v4620_v35, 16 }
  0xfe   : > { %2046 = vmatmul.bf16.gmra.mxu1 %v1698_v61  ;;  %v1622_v58 = vsel %vm1468_vm6, %v4257_v63, %v1378_v34 }
  0xff   : > { %v1307_v56 = vpop.permute.xlu2 %1306  ;;  %v4612_v10 = vpack.c.b16 %v1361_v41, %v1360_v4  ;;  %v1098_v45 = vrot.slane %v1097_v15, 4  ;;  %v1102_v42 = vrot.slane %v1100_v39, 5 }
 0x100   : > { %1238 = vrot.lane.b32.xlu0 %v4526_v54, %s3855_s16 }
 0x102   : > { %v1225_v49 = vpop.permute.xlu0 %1224 }
 0x103   : > { %v1492_v43 = vsel %vm1468_vm6, %v4200_v51, %v1225_v49  ;;  %1353 = vrot.lane.b32.xlu1 %v4555_v55, %s3853_s14  ;;  %v1081_v51 = vshrl.u32 %v4597_v62, 16 }
 0x104   : > { %v1533_v59 = vsel %vm1517_vm7, %v1492_v43, %v4541_v44  ;;  %v1357_v44 = vunpack.c.l.b16 %v1059_v20  ;;  %v4616_v46 = vpop.f32.mrf.mxu2  ;;  %v3803_v20 = vld [vmem:[%s3940_s30 + $0xcc] sm:$0xff] }
 0x105   : > { %v1340_v3 = vpop.permute.xlu1 %1339  ;;  %1318 = vrot.lane.b32.xlu2 %v4514_v23, %s3854_s15  ;;  %v1083_v12 = vrot.slane %v1081_v51, 4 }
 0x106   : > { %v1573_v48 = vsel %vm1550_vm8, %v1533_v59, %v1340_v3  ;;  %v4627_v61 = vpack.c.b16 %v1358_v52, %v1357_v44  ;;  %v1103_v59 = vsel %vm3964_vm5, %v1098_v45, %v1102_v42  ;;  %3751 = vmatmul.msk.bf16.gmra.mxu2 %vm1468_vm6, %v4514_v23 }
 0x107   : > { %1962 = vmatmul.bf16.gmra.mxu0 %v1573_v48  ;;  %v1450_v57 = vpop.permute.xlu2 %1449  ;;  %v1087_v2 = vor.u32 %v1086_v18, %v1083_v12 }
 0x108   : > { %1426 = vrot.lane.b32.xlu0 %v3802_v26, %s3854_s15 }
 0x109   : > { %v1088_v34 = vrot.slane %v1087_v2, 4 }
 0x10a   : > { %v1413_v27 = vpop.permute.xlu0 %1412 }
 0x10b   : > { %v1662_v13 = vsel %vm1517_vm7, %v1622_v58, %v1413_v27  ;;  %1393 = vrot.lane.b32.xlu1 %v4612_v10, %s3855_s16  ;;  %v1093_v14 = vsel %vm3964_vm5, %v1088_v34, %v1092_v22 }
 0x10c   : > { %v1701_v31 = vsel %vm1550_vm8, %v1662_v13, %v1448_v50  ;;  %v4633_v63 = vpop.f32.mrf.mxu2 }
 0x10d   : > { %v1380_v29 = vpop.permute.xlu1 %1379  ;;  %1461 = vrot.lane.b32.xlu2 %v4627_v61, %s3853_s14 }
 0x10e   : > { %2051 = vmatmul.bf16.gmra.mxu1 %v1701_v31  ;;  %v1625_v30 = vsel %vm1468_vm6, %v4300_v24, %v1380_v29 }
 0x10f   : > { %v1309_v49 = vpop.permute.xlu2 %1308 }
 0x110   : > { %1240 = vrot.lane.b32.xlu0 %v4571_v25, %s3855_s16 }
 0x112   : > { %v1227_v50 = vpop.permute.xlu0 %1226 }
 0x113   : > { %v1495_v4 = vsel %vm1468_vm6, %v4238_v37, %v1227_v50  ;;  %v1928_v43 = vpop.f32.mrf.mxu0  ;;  %1355 = vrot.lane.b32.xlu1 %v3802_v26, %s3853_s14  ;;  %v1430_v37 = vunpack.c.l.b16 %v1093_v14  ;;  %v1431_v26 = vunpack.c.l.b16 %v1103_v59 }
 0x114   : > { %v1535_v41 = vsel %vm1517_vm7, %v1495_v4, %v1307_v56  ;;  %v4651_v56 = vpop.f32.mrf.mxu2 }
 0x115   : > { %v1342_v51 = vpop.permute.xlu1 %1341  ;;  %1320 = vrot.lane.b32.xlu2 %v4560_v1, %s3854_s15  ;;  %v1432_v48 = vpack.c.b16 %v1431_v26, %v1430_v37 }
 0x116   : > { %v1576_v60 = vsel %vm1550_vm8, %v1535_v41, %v1342_v51  ;;  %3752 = vmatmul.msk.bf16.gmra.mxu2 %vm1468_vm6, %v4560_v1 }
 0x117   : > { %1967 = vmatmul.bf16.gmra.mxu0 %v1576_v60  ;;  %v1452_v32 = vpop.permute.xlu2 %1451 }
 0x118   : > { %1428 = vrot.lane.b32.xlu0 %v3803_v20, %s3854_s15 }
 0x11a   : > { %v1415_v3 = vpop.permute.xlu0 %1414 }
 0x11b   : > { %v1664_v53 = vsel %vm1517_vm7, %v1625_v30, %v1415_v3  ;;  %v2017_v6 = vpop.f32.mrf.mxu1  ;;  %v1930_v44 = vpop.f32.mrf.mxu0 }
 0x11c   : > { %v2018_v52 = vadd.f32 %v2017_v6, %v1928_v43  ;;  %v1704_v12 = vsel %vm1550_vm8, %v1664_v53, %v1450_v57  ;;  %v2118_v17 = vpop.f32.mrf.mxu2 }
 0x11d   : > { %v1382_v18 = vpop.permute.xlu1 %1381  ;;  %1463 = vrot.lane.b32.xlu2 %v1432_v48, %s3853_s14 }
 0x11e   : > { %v4659_v22 = vadd.f32 %v4564_v36, %v2018_v52  ;;  %2056 = vmatmul.bf16.gmra.mxu1 %v1704_v12 }
 0x11f   : > { %v1311_v58 = vpop.permute.xlu2 %1310 }
 0x122   : > { %v1229_v27 = vpop.permute.xlu0 %1228 }
 0x123   : > { %v1498_v24 = vsel %vm1468_vm6, %v4279_v33, %v1229_v27  ;;  %v2019_v13 = vpop.f32.mrf.mxu1  ;;  %v1628_v33 = vsel %vm1468_vm6, %v4347_v7, %v1382_v18 }
 0x124   : > { %v1537_v31 = vsel %vm1517_vm7, %v1498_v24, %v1309_v49  ;;  %v2020_v2 = vadd.f32 %v2019_v13, %v1930_v44  ;;  %v1933_v15 = vpop.f32.mrf.mxu0  ;;  %v2121_v29 = vpop.f32.mrf.mxu2 }
 0x125   : > { %v1344_v57 = vpop.permute.xlu1 %1343 }
 0x126   : > { %v4668_v36 = vadd.f32 %v4582_v28, %v2020_v2  ;;  %v1579_v39 = vsel %vm1550_vm8, %v1537_v31, %v1344_v57  ;;  %3753 = vmatmul.msk.bf16.gmra.mxu2 %vm1468_vm6, %v4612_v10  ;;  %v3594_v10 = vrot.slane %v4597_v62, 9 }
 0x127   : > { %1972 = vmatmul.bf16.gmra.mxu0 %v1579_v39  ;;  %v1454_v34 = vpop.permute.xlu2 %1453 }
 0x12a   : > { %v1417_v45 = vpop.permute.xlu0 %1416 }
 0x12b   : > { %v1666_v42 = vsel %vm1517_vm7, %v1628_v33, %v1417_v45  ;;  %v2022_v49 = vpop.f32.mrf.mxu1 }
 0x12c   : > { %v2023_v50 = vadd.f32 %v2022_v49, %v1933_v15  ;;  %v1935_v4 = vpop.f32.mrf.mxu0  ;;  %v1707_v21 = vsel %vm1550_vm8, %v1666_v42, %v1452_v32  ;;  %v2123_v41 = vpop.f32.mrf.mxu2 }
 0x12d   : > { %v1384_v43 = vpop.permute.xlu1 %1383 }
 0x12e   : > { %v4676_v28 = vadd.f32 %v4616_v46, %v2023_v50  ;;  %2061 = vmatmul.bf16.gmra.mxu1 %v1707_v21 }
 0x12f   : > { %v1313_v20 = vpop.permute.xlu2 %1312 }
 0x132   : > { %v1231_v14 = vpop.permute.xlu0 %1230 }
 0x133   : > { %v1501_v59 = vsel %vm1468_vm6, %v4326_v38, %v1231_v14  ;;  %v2024_v7 = vpop.f32.mrf.mxu1  ;;  %v1631_v38 = vsel %vm1468_vm6, %v4393_v11, %v1384_v43 }
 0x134   : > { %v1539_v51 = vsel %vm1517_vm7, %v1501_v59, %v1311_v58  ;;  %v2025_v60 = vadd.f32 %v2024_v7, %v1935_v4  ;;  %v1938_v37 = vpop.f32.mrf.mxu0  ;;  %v4687_v30 = vpop.f32.mrf.mxu2 }
 0x135   : > { %v1346_v26 = vpop.permute.xlu1 %1345 }
 0x136   : > { %v4684_v32 = vadd.f32 %v4633_v63, %v2025_v60  ;;  %v1582_v46 = vsel %vm1550_vm8, %v1539_v51, %v1346_v26 }
 0x137   : > { %1977 = vmatmul.bf16.gmra.mxu0 %v1582_v46  ;;  %v1456_v3 = vpop.permute.xlu2 %1455  ;;  %v1112_v46 = vrot.slane %v4620_v35, 5 }
 0x13a   : > { %v1419_v53 = vpop.permute.xlu0 %1418 }
 0x13b   : > { %v1668_v6 = vsel %vm1517_vm7, %v1631_v38, %v1419_v53  ;;  %v2027_v48 = vpop.f32.mrf.mxu1 }
 0x13c   : > { %v2028_v44 = vadd.f32 %v2027_v48, %v1938_v37  ;;  %v1940_v52 = vpop.f32.mrf.mxu0  ;;  %v1710_v23 = vsel %vm1550_vm8, %v1668_v6, %v1454_v34  ;;  %v4696_v18 = vpop.f32.mrf.mxu2 }
 0x13d   : > { %v1386_v12 = vpop.permute.xlu1 %1385 }
 0x13e   : > { %v4694_v63 = vadd.f32 %v4651_v56, %v2028_v44  ;;  %2066 = vmatmul.bf16.gmra.mxu1 %v1710_v23  ;;  %v1634_v34 = vsel %vm1468_vm6, %v4439_v9, %v1386_v12 }
 0x13f   : > { %v1315_v27 = vpop.permute.xlu2 %1314 }
 0x142   : > { %v1233_v58 = vpop.permute.xlu0 %1232 }
 0x143   : > { %v1504_v11 = vsel %vm1468_vm6, %v4372_v40, %v1233_v58  ;;  %v2029_v24 = vpop.f32.mrf.mxu1 }
 0x144   : > { %v1541_v13 = vsel %vm1517_vm7, %v1504_v11, %v1313_v20  ;;  %v2030_v31 = vadd.f32 %v2029_v24, %v1940_v52  ;;  %v1943_v2 = vpop.f32.mrf.mxu0  ;;  %v4706_v39 = vpop.f32.mrf.mxu2 }
 0x145   : > { %v1348_v15 = vpop.permute.xlu1 %1347 }
 0x146   : > { %v4703_v57 = vadd.f32 %v2118_v17, %v2030_v31  ;;  %v1585_v56 = vsel %vm1550_vm8, %v1541_v13, %v1348_v15 }
 0x147   : > { %1982 = vmatmul.bf16.gmra.mxu0 %v1585_v56  ;;  %v1458_v1 = vpop.permute.xlu2 %1457 }
 0x14a   : > { %v1421_v40 = vpop.permute.xlu0 %1420 }
 0x14b   : > { %v1670_v33 = vsel %vm1517_vm7, %v1634_v34, %v1421_v40  ;;  %v2032_v45 = vpop.f32.mrf.mxu1 }
 0x14c   : > { %v2033_v42 = vadd.f32 %v2032_v45, %v1943_v2  ;;  %v1945_v49 = vpop.f32.mrf.mxu0  ;;  %v1713_v50 = vsel %vm1550_vm8, %v1670_v33, %v1456_v3  ;;  %v4714_v21 = vpop.f32.mrf.mxu2 }
 0x14d   : > { %v1388_v4 = vpop.permute.xlu1 %1387 }
 0x14e   : > { %v4712_v17 = vadd.f32 %v2121_v29, %v2033_v42  ;;  %2071 = vmatmul.bf16.gmra.mxu1 %v1713_v50  ;;  %v1637_v3 = vsel %vm1468_vm6, %v4485_v8, %v1388_v4 }
 0x14f   : > { %v1317_v37 = vpop.permute.xlu2 %1316 }
 0x152   : > { %v1235_v43 = vpop.permute.xlu0 %1234 }
 0x153   : > { %v1507_v20 = vsel %vm1468_vm6, %v4418_v47, %v1235_v43  ;;  %v2034_v9 = vpop.f32.mrf.mxu1  ;;  %v1109_v47 = vrot.slane %v4600_v5, 5 }
 0x154   : > { %v1543_v14 = vsel %vm1517_vm7, %v1507_v20, %v1315_v27  ;;  %v2035_v59 = vadd.f32 %v2034_v9, %v1945_v49  ;;  %v4719_v7 = vpop.f32.mrf.mxu0  ;;  %v2136_v26 = vpop.f32.mrf.mxu2 }
 0x155   : > { %v1350_v51 = vpop.permute.xlu1 %1349  ;;  %v1110_v35 = vsel %vm3942_vm2, %v3594_v10, %v1109_v47 }
 0x156   : > { %v4723_v60 = vadd.f32 %v2123_v41, %v2035_v59  ;;  %v1588_v29 = vsel %vm1550_vm8, %v1543_v14, %v1350_v51  ;;  %v1111_v41 = vrot.slane %v1109_v47, 4  ;;  %v1465_v8 = vunpack.c.l.b16 %v1110_v35 }
 0x157   : > { %1987 = vmatmul.bf16.gmra.mxu0 %v1588_v29  ;;  %v1460_v12 = vpop.permute.xlu2 %1459 }
 0x158   : > { %v1113_v5 = vsel %vm3942_vm2, %v1111_v41, %v1112_v46 }
 0x159   : > { %v1466_v23 = vunpack.c.l.b16 %v1113_v5 }
 0x15a   : > { %v1423_v38 = vpop.permute.xlu0 %1422 }
 0x15b   : > { %v1672_v53 = vsel %vm1517_vm7, %v1637_v3, %v1423_v38  ;;  %v4731_v6 = vpop.f32.mrf.mxu1  ;;  %v1467_v58 = vpack.c.b16 %v1466_v23, %v1465_v8 }
 0x15c   : > { %v1950_v48 = vpop.f32.mrf.mxu0  ;;  %v1716_v44 = vsel %vm1550_vm8, %v1672_v53, %v1458_v1  ;;  %v2138_v27 = vpop.f32.mrf.mxu2 }
 0x15d   : > { %v1390_v52 = vpop.permute.xlu1 %1389  ;;  %3754 = vmatmul.msk.bf16.gmra.mxu2 %vm1468_vm6, %v1467_v58 }
 0x15e   : > { %2076 = vmatmul.bf16.gmra.mxu1 %v1716_v44  ;;  %v1640_v56 = vsel %vm1468_vm6, %v4526_v54, %v1390_v52 }
 0x15f   : > { %v1319_v40 = vpop.permute.xlu2 %1318 }
 0x162   : > { %v1237_v11 = vpop.permute.xlu0 %1236 }
 0x163   : > { %v1510_v62 = vsel %vm1468_vm6, %v4464_v16, %v1237_v11  ;;  %v2039_v24 = vpop.f32.mrf.mxu1 }
 0x164   : > { %v1545_v13 = vsel %vm1517_vm7, %v1510_v62, %v1317_v37  ;;  %v4742_v31 = vadd.f32 %v2039_v24, %v1950_v48  ;;  %v1953_v2 = vpop.f32.mrf.mxu0  ;;  %v2141_v45 = vpop.f32.mrf.mxu2 }
 0x165   : > { %v1352_v0 = vpop.permute.xlu1 %1351 }
 0x166   : > { %v1591_v15 = vsel %vm1550_vm8, %v1545_v13, %v1352_v0 }
 0x167   : > { %1992 = vmatmul.bf16.gmra.mxu0 %v1591_v15  ;;  %v1462_v59 = vpop.permute.xlu2 %1461 }
 0x16a   : > { %v1425_v34 = vpop.permute.xlu0 %1424 }
 0x16b   : > { %v1674_v33 = vsel %vm1517_vm7, %v1640_v56, %v1425_v34  ;;  %v2042_v16 = vpop.f32.mrf.mxu1 }
 0x16c   : > { %v4749_v42 = vadd.f32 %v2042_v16, %v1953_v2  ;;  %v1955_v49 = vpop.f32.mrf.mxu0  ;;  %v1719_v50 = vsel %vm1550_vm8, %v1674_v33, %v1460_v12  ;;  %v2143_v29 = vpop.f32.mrf.mxu2 }
 0x16d   : > { %v1392_v1 = vpop.permute.xlu1 %1391 }
 0x16e   : > { %2081 = vmatmul.bf16.gmra.mxu1 %v1719_v50  ;;  %v1643_v47 = vsel %vm1468_vm6, %v4571_v25, %v1392_v1 }
 0x172   : > { %v1239_v4 = vpop.permute.xlu0 %1238 }
 0x173   : > { %v1513_v43 = vsel %vm1468_vm6, %v4510_v19, %v1239_v4  ;;  %v2044_v20 = vpop.f32.mrf.mxu1 }
 0x174   : > { %v1547_v54 = vsel %vm1517_vm7, %v1513_v43, %v1319_v40  ;;  %v2045_v9 = vadd.f32 %v2044_v20, %v1955_v49  ;;  %v1958_v14 = vpop.f32.mrf.mxu0  ;;  %v2146_v52 = vpop.f32.mrf.mxu2 }
 0x175   : > { %v1354_v51 = vpop.permute.xlu1 %1353 }
 0x176   : > { %v4756_v37 = vadd.f32 %v4714_v21, %v2045_v9  ;;  %v1594_v46 = vsel %vm1550_vm8, %v1547_v54, %v1354_v51  ;;  %v1321_v21 = vpop.permute.xlu2 %1320 }
 0x177   : > { %1997 = vmatmul.bf16.gmra.mxu0 %v1594_v46 }
 0x17a   : > { %v1427_v3 = vpop.permute.xlu0 %1426 }
 0x17b   : > { %v1676_v19 = vsel %vm1517_vm7, %v1643_v47, %v1427_v3  ;;  %v2047_v38 = vpop.f32.mrf.mxu1 }
 0x17c   : > { %v2048_v53 = vadd.f32 %v2047_v38, %v1958_v14  ;;  %v1960_v10 = vpop.f32.mrf.mxu0  ;;  %v1722_v41 = vsel %vm1550_vm8, %v1676_v19, %v1462_v59  ;;  %v2148_v24 = vpop.f32.mrf.mxu2 }
 0x17d   : > { %v1394_v48 = vpop.permute.xlu1 %1393 }
 0x17e   : > { %v4763_v44 = vadd.f32 %v2136_v26, %v2048_v53  ;;  %2086 = vmatmul.bf16.gmra.mxu1 %v1722_v41  ;;  %v1464_v26 = vpop.permute.xlu2 %1463  ;;  %v1646_v13 = vsel %vm1468_vm6, %v4627_v61, %v1394_v48 }
 0x182   : > { %v1241_v35 = vpop.permute.xlu0 %1240 }
 0x183   : > { %v1516_v5 = vsel %vm1468_vm6, %v4555_v55, %v1241_v35  ;;  %v2049_v8 = vpop.f32.mrf.mxu1 }
 0x184   : > { %v1549_v25 = vsel %vm1517_vm7, %v1516_v5, %v1321_v21  ;;  %v2050_v23 = vadd.f32 %v2049_v8, %v1960_v10  ;;  %v1963_v12 = vpop.f32.mrf.mxu0  ;;  %v2151_v33 = vpop.f32.mrf.mxu2 }
 0x185   : > { %v1356_v58 = vpop.permute.xlu1 %1355 }
 0x186   : > { %v4768_v11 = vadd.f32 %v2138_v27, %v2050_v23  ;;  %v1597_v62 = vsel %vm1550_vm8, %v1549_v25, %v1356_v58 }
 0x187   : > { %2002 = vmatmul.bf16.gmra.mxu0 %v1597_v62 }
 0x188   : > { %6237 = vst [vmem:[#allocation2_spill] sm:$0xff] %v4768_v11 }
 0x18a   : > { %v1429_v2 = vpop.permute.xlu0 %1428 }
 0x18b   : > { %v1678_v0 = vsel %vm1517_vm7, %v1646_v13, %v1429_v2  ;;  %v2052_v55 = vpop.f32.mrf.mxu1  ;;  %v2262_v13 = vsel %vm2260_vm9, %v4668_v36, 0.0 }
 0x18c   : > { %v2053_v15 = vadd.f32 %v2052_v55, %v1963_v12  ;;  %v1965_v56 = vpop.f32.mrf.mxu0  ;;  %v1725_v34 = vsel %vm1550_vm8, %v1678_v0, %v1464_v26  ;;  %v2153_v43 = vpop.f32.mrf.mxu2  ;;  %v2261_v0 = vsel %vm2260_vm9, %v4659_v22, 0.0  ;;  %v2264_v55 = vsel %vm2260_vm9, %v4676_v28, 0.0 }
 0x18e   : > { %v4775_v40 = vadd.f32 %v2141_v45, %v2053_v15  ;;  %2091 = vmatmul.bf16.gmra.mxu1 %v1725_v34  ;;  %v2266_v34 = vsel %vm2260_vm9, %v4684_v32, 0.0 }
 0x190   : > { %6238 = vst [vmem:[#allocation3_spill] sm:$0xff] %v4775_v40 }
 0x193   : > { %v2054_v27 = vpop.f32.mrf.mxu1 }
 0x194   : > { %v2055_v16 = vadd.f32 %v2054_v27, %v1965_v56  ;;  %v1968_v49 = vpop.f32.mrf.mxu0  ;;  %v2156_v45 = vpop.f32.mrf.mxu2  ;;  %v2263_v56 = vadd.f32 %v2262_v13, %v2261_v0  ;;  %v2282_v13 = vsel %vm2260_vm9, %v4756_v37, 0.0 }
 0x196   : > { %v4777_v50 = vadd.f32 %v2143_v29, %v2055_v16  ;;  %v2265_v27 = vadd.f32 %v2264_v55, %v2263_v56  ;;  %v2038_v16 = vadd.f32 %v4731_v6, %v4719_v7  ;;  %v4826_v7 = vadd.f32 %v4696_v18, %v4742_v31 }
 0x197   : > { %v2286_v55 = vsel %vm2260_vm9, %v4768_v11, 0.0 }
 0x198   : > { %6239 = vst [vmem:[#allocation4_spill] sm:$0xff] %v4777_v50 }
 0x19b   : > { %v2057_v1 = vpop.f32.mrf.mxu1 }
 0x19c   : > { %v2058_v4 = vadd.f32 %v2057_v1, %v1968_v49  ;;  %v1970_v61 = vpop.f32.mrf.mxu0  ;;  %v4785_v19 = vpop.f32.mrf.mxu2  ;;  %v2267_v49 = vadd.f32 %v2266_v34, %v2265_v27  ;;  %v2270_v1 = vsel %vm2260_vm9, %v4703_v57, 0.0  ;;  %v2288_v27 = vsel %vm2260_vm9, %v4775_v40, 0.0 }
 0x19e   : > { %v4779_v20 = vadd.f32 %v2146_v52, %v2058_v4 }
 0x1a0   : > { %6240 = vst [vmem:[#allocation5_spill] sm:$0xff] %v4779_v20 }
 0x1a3   : > { %v2059_v54 = vpop.f32.mrf.mxu1 }
 0x1a4   : > { %v2060_v9 = vadd.f32 %v2059_v54, %v1970_v61  ;;  %v1973_v14 = vpop.f32.mrf.mxu0  ;;  %v4789_v48 = vpop.f32.mrf.mxu2  ;;  %v2272_v54 = vsel %vm2260_vm9, %v4712_v17, 0.0 }
 0x1a6   : > { %v4781_v59 = vadd.f32 %v2148_v24, %v2060_v9  ;;  %v4820_v9 = vadd.f32 %v4687_v30, %v2038_v16  ;;  %v2278_v30 = vsel %vm2260_vm9, %v4826_v7, 0.0 }
 0x1a8   : > { %6241 = vst [vmem:[#allocation6_spill] sm:$0xff] %v4781_v59 }
 0x1ab   : > { %v2062_v51 = vpop.f32.mrf.mxu1 }
 0x1ac   : > { %v2063_v46 = vadd.f32 %v2062_v51, %v1973_v14  ;;  %v1975_v47 = vpop.f32.mrf.mxu0  ;;  %v4793_v25 = vpop.f32.mrf.mxu2  ;;  %v2274_v51 = vsel %vm2260_vm9, %v4723_v60, 0.0 }
 0x1ae   : > { %v4783_v3 = vadd.f32 %v2151_v33, %v2063_v46  ;;  %v2268_v33 = vsel %vm2260_vm9, %v4694_v63, 0.0  ;;  %v2276_v46 = vsel %vm2260_vm9, %v4820_v9, 0.0 }
 0x1af   : > { %v2269_v4 = vadd.f32 %v2268_v33, %v2267_v49  ;;  %v2290_v49 = vsel %vm2260_vm9, %v4777_v50, 0.0 }
 0x1b0   : > { %6242 = vst [vmem:[#allocation7_spill] sm:$0xff] %v4783_v3 }
 0x1b3   : > { %v2064_v29 = vpop.f32.mrf.mxu1 }
 0x1b4   : > { %v2065_v38 = vadd.f32 %v2064_v29, %v1975_v47  ;;  %v1978_v53 = vpop.f32.mrf.mxu0  ;;  %v4795_v58 = vpop.f32.mrf.mxu2  ;;  %v4832_v47 = vadd.f32 %v4706_v39, %v4749_v42  ;;  %v2284_v39 = vsel %vm2260_vm9, %v4763_v44, 0.0 }
 0x1b6   : > { %v4787_v10 = vadd.f32 %v2153_v43, %v2065_v38 }
 0x1b8   : > { %6243 = vst [vmem:[#allocation8_spill] sm:$0xff] %v4787_v10 }
 0x1bb   : > { %v2067_v41 = vpop.f32.mrf.mxu1 }
 0x1bc   : > { %v2068_v21 = vadd.f32 %v2067_v41, %v1978_v53  ;;  %v1980_v52 = vpop.f32.mrf.mxu0  ;;  %v4799_v24 = vpop.f32.mrf.mxu2  ;;  %v2280_v41 = vsel %vm2260_vm9, %v4832_v47, 0.0 }
 0x1be   : > { %v4791_v35 = vadd.f32 %v2156_v45, %v2068_v21  ;;  %v2271_v45 = vadd.f32 %v2270_v1, %v2269_v4 }
 0x1c0   : > { %6244 = vst [vmem:[#allocation9_spill] sm:$0xff] %v4791_v35  ;;  %v2273_v6 = vadd.f32 %v2272_v54, %v2271_v45  ;;  %v2292_v54 = vsel %vm2260_vm9, %v4779_v20, 0.0 }
 0x1c2   : > { %v2275_v29 = vadd.f32 %v2274_v51, %v2273_v6  ;;  %v2294_v51 = vsel %vm2260_vm9, %v4781_v59, 0.0 }
 0x1c3   : > { %v2069_v5 = vpop.f32.mrf.mxu1 }
 0x1c4   : > { %v1983_v8 = vpop.f32.mrf.mxu0  ;;  %v4815_v43 = vpop.f32.mrf.mxu2  ;;  %v2277_v38 = vadd.f32 %v2276_v46, %v2275_v29  ;;  %v2070_v6 = vadd.f32 %v2069_v5, %v1980_v52 }
 0x1c6   : > { %v2279_v18 = vadd.f32 %v2278_v30, %v2277_v38  ;;  %v2296_v30 = vsel %vm2260_vm9, %v4783_v3, 0.0 }
 0x1c8   : > { %v2281_v0 = vadd.f32 %v2280_v41, %v2279_v18  ;;  %v2298_v18 = vsel %vm2260_vm9, %v4787_v10, 0.0 }
 0x1ca   : > { %v2283_v42 = vadd.f32 %v2282_v13, %v2281_v0  ;;  %v4857_v13 = vadd.f32 %v4785_v19, %v2070_v6 }
 0x1cb   : > { %v2072_v23 = vpop.f32.mrf.mxu1 }
 0x1cc   : > { %v1985_v12 = vpop.f32.mrf.mxu0  ;;  %v2173_v31 = vpop.f32.mrf.mxu2  ;;  %v2285_v56 = vadd.f32 %v2284_v39, %v2283_v42  ;;  %v2073_v38 = vadd.f32 %v2072_v23, %v1983_v8  ;;  %6245 = vst [vmem:[#allocation10_spill] sm:$0xff] %v4857_v13  ;;  %v2302_v23 = vsel %vm2260_vm9, %v4857_v13, 0.0 }
 0x1ce   : > { %v2287_v33 = vadd.f32 %v2286_v55, %v2285_v56  ;;  %v2300_v55 = vsel %vm2260_vm9, %v4791_v35, 0.0  ;;  %v4862_v52 = vadd.f32 %v4789_v48, %v2073_v38 }
 0x1d0   : > { %v2289_v1 = vadd.f32 %v2288_v27, %v2287_v33  ;;  %6246 = vst [vmem:[#allocation11_spill] sm:$0xff] %v4862_v52  ;;  %v2304_v33 = vsel %vm2260_vm9, %v4862_v52, 0.0 }
 0x1d2   : > { %v2291_v45 = vadd.f32 %v2290_v49, %v2289_v1 }
 0x1d3   : > { %v2074_v62 = vpop.f32.mrf.mxu1 }
 0x1d4   : > { %v4797_v26 = vpop.f32.mrf.mxu0  ;;  %v2176_v4 = vpop.f32.mrf.mxu2  ;;  %v2293_v46 = vadd.f32 %v2292_v54, %v2291_v45  ;;  %v2075_v0 = vadd.f32 %v2074_v62, %v1985_v12 }
 0x1d6   : > { %v2295_v41 = vadd.f32 %v2294_v51, %v2293_v46  ;;  %v4868_v27 = vadd.f32 %v4793_v25, %v2075_v0 }
 0x1d8   : > { %v2297_v39 = vadd.f32 %v2296_v30, %v2295_v41  ;;  %6247 = vst [vmem:[#allocation12_spill] sm:$0xff] %v4868_v27 }
 0x1da   : > { %v2299_v56 = vadd.f32 %v2298_v18, %v2297_v39 }
 0x1db   : > { %v2077_v2 = vpop.f32.mrf.mxu1 }
 0x1dc   : > { %v1990_v15 = vpop.f32.mrf.mxu0  ;;  %v2078_v5 = vadd.f32 %v2077_v2, %v4797_v26  ;;  %v2178_v8 = vpop.f32.mrf.mxu2  ;;  %v2301_v12 = vadd.f32 %v2300_v55, %v2299_v56  ;;  %v2306_v26 = vsel %vm2260_vm9, %v4868_v27, 0.0 }
 0x1de   : > { %v4873_v49 = vadd.f32 %v4795_v58, %v2078_v5  ;;  %v2303_v1 = vadd.f32 %v2302_v23, %v2301_v12 }
 0x1e0   : > { %6248 = vst [vmem:[#allocation13_spill] sm:$0xff] %v4873_v49  ;;  %v2305_v25 = vadd.f32 %v2304_v33, %v2303_v1  ;;  %v2308_v58 = vsel %vm2260_vm9, %v4873_v49, 0.0 }
 0x1e3   : > { %v2079_v61 = vpop.f32.mrf.mxu1 }
 0x1e4   : > { %v1993_v14 = vpop.f32.mrf.mxu0  ;;  %v2080_v19 = vadd.f32 %v2079_v61, %v1990_v15  ;;  %v2257_v15 = vld [vmem:[%s6186_s5 + $0x8] sm:$0xff]  ;;  %v2256_v61 = vld [vmem:[%s6186_s5] sm:$0xff]  ;;  %v2181_v46 = vpop.f32.mrf.mxu2 }
 0x1e5   : > { %2350 = vmatpush.msra.mxu3 %v2257_v15 }
 0x1e6   : > { %v4878_v2 = vadd.f32 %v4799_v24, %v2080_v19  ;;  %v2307_v24 = vadd.f32 %v2306_v26, %v2305_v25 }
 0x1e7   : > { %2351 = vmatpush.msra.mxu3 %v2256_v61 }
 0x1e8   : > { %6249 = vst [vmem:[#allocation14_spill] sm:$0xff] %v4878_v2  ;;  %v2309_v6 = vadd.f32 %v2308_v58, %v2307_v24 }
 0x1eb   : > { %v2082_v53 = vpop.f32.mrf.mxu1 }
 0x1ec   : > { %v1995_v21 = vpop.f32.mrf.mxu0  ;;  %v2083_v48 = vadd.f32 %v2082_v53, %v1993_v14 }
 0x1ee   : > { %v4889_v14 = vadd.f32 %v4815_v43, %v2083_v48 }
 0x1f0   : > { %6250 = vst [vmem:[#allocation15_spill] sm:$0xff] %v4889_v14  ;;  %v2312_v38 = vsel %vm2260_vm9, %v4889_v14, 0.0 }
 0x1f3   : > { %v2084_v34 = vpop.f32.mrf.mxu1 }
 0x1f4   : > { %v1998_v16 = vpop.f32.mrf.mxu0  ;;  %v2085_v54 = vadd.f32 %v2084_v34, %v1995_v21  ;;  %v2310_v21 = vsel %vm2260_vm9, %v4878_v2, 0.0 }
 0x1f6   : > { %v4893_v34 = vadd.f32 %v2173_v31, %v2085_v54 }
 0x1f8   : > { %6251 = vst [vmem:[#allocation16_spill] sm:$0xff] %v4893_v34 }
 0x1fb   : > { %v2087_v29 = vpop.f32.mrf.mxu1 }
 0x1fc   : > { %v2000_v42 = vpop.f32.mrf.mxu0  ;;  %v2088_v53 = vadd.f32 %v2087_v29, %v1998_v16  ;;  %v2311_v16 = vadd.f32 %v2310_v21, %v2309_v6  ;;  %v2314_v29 = vsel %vm2260_vm9, %v4893_v34, 0.0  ;;  %v2258_v21 = vld [vmem:[%s6187_s6] sm:$0xff] }
 0x1fe   : > { %v4897_v41 = vadd.f32 %v2176_v4, %v2088_v53  ;;  %v2313_v0 = vadd.f32 %v2312_v38, %v2311_v16 }
 0x200   : > { %6252 = vst [vmem:[#allocation17_spill] sm:$0xff] %v4897_v41  ;;  %v2316_v31 = vsel %vm2260_vm9, %v4897_v41, 0.0 }
 0x203   : > { %v2089_v62 = vpop.f32.mrf.mxu1 }
 0x204   : > { %v2003_v45 = vpop.f32.mrf.mxu0  ;;  %v2090_v51 = vadd.f32 %v2089_v62, %v2000_v42  ;;  %v2315_v42 = vadd.f32 %v2314_v29, %v2313_v0 }
 0x206   : > { %v4901_v18 = vadd.f32 %v2178_v8, %v2090_v51  ;;  %v2317_v5 = vadd.f32 %v2316_v31, %v2315_v42  ;;  %v2183_v8 = vpop.f32.mrf.mxu2 }
 0x208   : > { %6253 = vst [vmem:[#allocation18_spill] sm:$0xff] %v4901_v18  ;;  %v2318_v55 = vsel %vm2260_vm9, %v4901_v18, 0.0 }
 0x209   : > { %v2319_v12 = vadd.f32 %v2318_v55, %v2317_v5 }
 0x20b   : > { %v2092_v30 = vpop.f32.mrf.mxu1 }
 0x20c   : > { %v2093_v43 = vadd.f32 %v2092_v30, %v2003_v45  ;;  %v2005_v4 = vpop.f32.mrf.mxu0  ;;  %v2259_v45 = vld [vmem:[%s6187_s6 + $0x8] sm:$0xff] }
 0x20d   : > { %2374 = vmatpush.msrb.mxu3 %v2259_v45 }
 0x20e   : > { %v4905_v39 = vadd.f32 %v2181_v46, %v2093_v43 }
 0x20f   : > { %2375 = vmatpush.msrb.mxu3 %v2258_v21 }
 0x210   : > { %6254 = vst [vmem:[#allocation19_spill] sm:$0xff] %v4905_v39  ;;  %v2320_v23 = vsel %vm2260_vm9, %v4905_v39, 0.0 }
 0x211   : > { %v2321_v33 = vadd.f32 %v2320_v23, %v2319_v12 }
 0x213   : > { %v2094_v56 = vpop.f32.mrf.mxu1 }
 0x214   : > { %v2095_v19 = vadd.f32 %v2094_v56, %v2005_v4 }
 0x216   : > { %v4911_v62 = vadd.f32 %v2183_v8, %v2095_v19 }
 0x218   : > { %6255 = vst [vmem:[#allocation20_spill] sm:$0xff] %v4911_v62  ;;  %v2322_v48 = vsel %vm2260_vm9, %v4911_v62, 0.0 }
 0x219   : > { %v2323_v1 = vadd.f32 %v2322_v48, %v2321_v33 }
 0x21b   : > { %v2324_v26 = vrot.slane %v2323_v1, 4 }
 0x21d   : > { %v2325_v54 = vadd.f32 %v2324_v26, %v2323_v1 }
 0x21f   : > { %v2326_v25 = vrot.slane %v2325_v54, 2 }
 0x221   : > { %v2327_v58 = vadd.f32 %v2326_v25, %v2325_v54 }
 0x223   : > { %v2328_v53 = vrot.slane %v2327_v58, 1 }
 0x225   : > { %v2329_v24 = vadd.f32 %v2328_v53, %v2327_v58 }
 0x227   : > { %2331 = vrot.lane.b32.xlu0 %v2329_v24, %s3853_s14 }
 0x299   : > { %v2332_v51 = vpop.permute.xlu0 %2331 }
 0x29a   : > { %3755 = vmatmul.msk.f32.vlgmr.msra.gmra.mxu3 %vm2333_vm10, %v2332_v51 }
 0x29b   : > { %2537 = vmatpush.msra.mxu3 %v2257_v15 }
 0x29d   : > { %2538 = vmatpush.msra.mxu3 %v2256_v61 }
 0x31d   : > { %v2353_v6 = vpop.f32.mrf.mxu3 }
 0x31e   : > { %v2356_v46 = vmul.f32 0.00390625, %v2353_v6 }
 0x320   : > { %3756 = vmatmul.msk.f32.vlgmr.msrb.gmra.mxu3 %vm2333_vm10, %v2356_v46 }
 0x321   : > { %2572 = vmatpush.msrb.mxu3 %v2259_v45 }
 0x323   : > { %2573 = vmatpush.msrb.mxu3 %v2258_v21 }
 0x3a3   : > { %v2377_v30 = vpop.f32.mrf.mxu3 }
 0x3a4   : > { %v2380_v38 = vperm.slane %v2377_v30, 0 }
 0x3a6   : > { %2382 = vrot.lane.b32.xlu1 %v2380_v38, %s3855_s16 }
 0x418   : > { %v4925_v43 = vpop.permute.xlu1 %2382 }
 0x419   : > { %v4929_v16 = vsub.f32 %v4659_v22, %v4925_v43  ;;  %v4933_v15 = vsub.f32 %v4668_v36, %v4925_v43  ;;  %v4937_v61 = vsub.f32 %v4676_v28, %v4925_v43  ;;  %v4941_v29 = vsub.f32 %v4684_v32, %v4925_v43 }
 0x41a   : > { %v4949_v42 = vsub.f32 %v4694_v63, %v4925_v43  ;;  %v4955_v5 = vsub.f32 %v4703_v57, %v4925_v43  ;;  %v4963_v12 = vsub.f32 %v4712_v17, %v4925_v43  ;;  %v4970_v1 = vsub.f32 %v4723_v60, %v4925_v43 }
 0x41b   : > { %v2417_v0 = vmul.f32 %v4929_v16, %v4929_v16  ;;  %v2418_v31 = vmul.f32 %v4933_v15, %v4933_v15  ;;  %v2419_v55 = vmul.f32 %v4937_v61, %v4937_v61  ;;  %v2420_v4 = vmul.f32 %v4941_v29, %v4941_v29 }
 0x41c   : > { %v2421_v8 = vmul.f32 %v4949_v42, %v4949_v42  ;;  %v2422_v26 = vmul.f32 %v4955_v5, %v4955_v5  ;;  %v4977_v58 = vsub.f32 %v4820_v9, %v4925_v43  ;;  %v2423_v53 = vmul.f32 %v4963_v12, %v4963_v12 }
 0x41d   : > { %v2449_v56 = vsel %vm2260_vm9, %v2417_v0, 0.0  ;;  %v2450_v23 = vsel %vm2260_vm9, %v2418_v31, 0.0  ;;  %v2452_v33 = vsel %vm2260_vm9, %v2419_v55, 0.0  ;;  %v2454_v54 = vsel %vm2260_vm9, %v2420_v4, 0.0 }
 0x41e   : > { %v2451_v19 = vadd.f32 %v2450_v23, %v2449_v56  ;;  %v2456_v24 = vsel %vm2260_vm9, %v2421_v8, 0.0  ;;  %v4984_v21 = vsub.f32 %v4826_v7, %v4925_v43  ;;  %v2424_v51 = vmul.f32 %v4970_v1, %v4970_v1 }
 0x41f   : > { %v2458_v6 = vsel %vm2260_vm9, %v2422_v26, 0.0  ;;  %v4991_v30 = vsub.f32 %v4832_v47, %v4925_v43  ;;  %v2425_v38 = vmul.f32 %v4977_v58, %v4977_v58  ;;  %v2460_v0 = vsel %vm2260_vm9, %v2423_v53, 0.0 }
 0x420   : > { %v2453_v48 = vadd.f32 %v2452_v33, %v2451_v19  ;;  %v4998_v55 = vsub.f32 %v4756_v37, %v4925_v43  ;;  %v2426_v4 = vmul.f32 %v4984_v21, %v4984_v21  ;;  %v2462_v56 = vsel %vm2260_vm9, %v2424_v51, 0.0 }
 0x421   : > { %v5005_v19 = vsub.f32 %v4763_v44, %v4925_v43  ;;  %v2427_v8 = vmul.f32 %v4991_v30, %v4991_v30  ;;  %v2464_v33 = vsel %vm2260_vm9, %v2425_v38, 0.0  ;;  %v5012_v26 = vsub.f32 %v4768_v11, %v4925_v43 }
 0x422   : > { %v2455_v25 = vadd.f32 %v2454_v54, %v2453_v48  ;;  %v2428_v54 = vmul.f32 %v4998_v55, %v4998_v55 }
 0x423   : > { %v2468_v51 = vsel %vm2260_vm9, %v2427_v8, 0.0  ;;  %v2430_v38 = vmul.f32 %v5012_v26, %v5012_v26 }
 0x424   : > { %v2457_v45 = vadd.f32 %v2456_v24, %v2455_v25  ;;  %v2466_v25 = vsel %vm2260_vm9, %v2426_v4, 0.0  ;;  %v5019_v24 = vsub.f32 %v4775_v40, %v4925_v43  ;;  %v5033_v4 = vsub.f32 %v4779_v20, %v4925_v43 }
 0x426   : > { %v2459_v46 = vadd.f32 %v2458_v6, %v2457_v45  ;;  %v2429_v45 = vmul.f32 %v5005_v19, %v5005_v19 }
 0x428   : > { %v2461_v31 = vadd.f32 %v2460_v0, %v2459_v46  ;;  %v5026_v46 = vsub.f32 %v4777_v50, %v4925_v43  ;;  %v2470_v0 = vsel %vm2260_vm9, %v2428_v54, 0.0  ;;  %v2474_v54 = vsel %vm2260_vm9, %v2430_v38, 0.0 }
 0x42a   : > { %v2463_v23 = vadd.f32 %v2462_v56, %v2461_v31  ;;  %v2431_v56 = vmul.f32 %v5019_v24, %v5019_v24 }
 0x42c   : > { %v2465_v48 = vadd.f32 %v2464_v33, %v2463_v23  ;;  %v2472_v23 = vsel %vm2260_vm9, %v2429_v45, 0.0  ;;  %v5040_v33 = vsub.f32 %v4781_v59, %v4925_v43  ;;  %v2476_v45 = vsel %vm2260_vm9, %v2431_v56, 0.0 }
 0x42e   : > { %v2467_v53 = vadd.f32 %v2466_v25, %v2465_v48  ;;  %v2432_v48 = vmul.f32 %v5026_v46, %v5026_v46 }
 0x430   : > { %v2469_v6 = vadd.f32 %v2468_v51, %v2467_v53  ;;  %v5047_v53 = vsub.f32 %v4783_v3, %v4925_v43  ;;  %v2433_v51 = vmul.f32 %v5033_v4, %v5033_v4  ;;  %v2478_v38 = vsel %vm2260_vm9, %v2432_v48, 0.0 }
 0x432   : > { %v2471_v31 = vadd.f32 %v2470_v0, %v2469_v6  ;;  %v5054_v0 = vsub.f32 %v4787_v10, %v4925_v43  ;;  %v2480_v56 = vsel %vm2260_vm9, %v2433_v51, 0.0 }
 0x434   : > { %v2473_v8 = vadd.f32 %v2472_v23, %v2471_v31  ;;  %v2434_v31 = vmul.f32 %v5040_v33, %v5040_v33  ;;  %v2436_v10 = vmul.f32 %v5054_v0, %v5054_v0 }
 0x436   : > { %v2475_v25 = vadd.f32 %v2474_v54, %v2473_v8  ;;  %v5061_v8 = vsub.f32 %v4791_v35, %v4925_v43  ;;  %v2435_v54 = vmul.f32 %v5047_v53, %v5047_v53  ;;  %v2482_v48 = vsel %vm2260_vm9, %v2434_v31, 0.0 }
 0x437   : > { %v2486_v31 = vsel %vm2260_vm9, %v2436_v10, 0.0 }
 0x438   : > { %v2477_v6 = vadd.f32 %v2476_v45, %v2475_v25  ;;  %v5068_v45 = vsub.f32 %v4857_v13, %v4925_v43  ;;  %v2437_v35 = vmul.f32 %v5061_v8, %v5061_v8  ;;  %v2484_v51 = vsel %vm2260_vm9, %v2435_v54, 0.0 }
 0x43a   : > { %v2479_v23 = vadd.f32 %v2478_v38, %v2477_v6  ;;  %v5075_v38 = vsub.f32 %v4862_v52, %v4925_v43  ;;  %v2438_v13 = vmul.f32 %v5068_v45, %v5068_v45  ;;  %v2488_v54 = vsel %vm2260_vm9, %v2437_v35, 0.0 }
 0x43c   : > { %v2481_v25 = vadd.f32 %v2480_v56, %v2479_v23  ;;  %v5082_v56 = vsub.f32 %v4868_v27, %v4925_v43  ;;  %v2439_v52 = vmul.f32 %v5075_v38, %v5075_v38  ;;  %v2490_v10 = vsel %vm2260_vm9, %v2438_v13, 0.0 }
 0x43e   : > { %v2483_v6 = vadd.f32 %v2482_v48, %v2481_v25  ;;  %v5089_v48 = vsub.f32 %v4873_v49, %v4925_v43  ;;  %v2440_v27 = vmul.f32 %v5082_v56, %v5082_v56  ;;  %v2492_v35 = vsel %vm2260_vm9, %v2439_v52, 0.0 }
 0x440   : > { %v2485_v23 = vadd.f32 %v2484_v51, %v2483_v6  ;;  %v5096_v51 = vsub.f32 %v4878_v2, %v4925_v43  ;;  %v2441_v49 = vmul.f32 %v5089_v48, %v5089_v48  ;;  %v2494_v13 = vsel %vm2260_vm9, %v2440_v27, 0.0 }
 0x442   : > { %v2487_v25 = vadd.f32 %v2486_v31, %v2485_v23  ;;  %v5103_v31 = vsub.f32 %v4889_v14, %v4925_v43  ;;  %v2442_v2 = vmul.f32 %v5096_v51, %v5096_v51  ;;  %v2496_v52 = vsel %vm2260_vm9, %v2441_v49, 0.0 }
 0x444   : > { %v2489_v6 = vadd.f32 %v2488_v54, %v2487_v25  ;;  %v5110_v54 = vsub.f32 %v4893_v34, %v4925_v43  ;;  %v2443_v14 = vmul.f32 %v5103_v31, %v5103_v31  ;;  %v2498_v27 = vsel %vm2260_vm9, %v2442_v2, 0.0 }
 0x446   : > { %v2491_v23 = vadd.f32 %v2490_v10, %v2489_v6  ;;  %v5117_v10 = vsub.f32 %v4897_v41, %v4925_v43  ;;  %v2444_v34 = vmul.f32 %v5110_v54, %v5110_v54  ;;  %v2500_v49 = vsel %vm2260_vm9, %v2443_v14, 0.0 }
 0x448   : > { %v2493_v25 = vadd.f32 %v2492_v35, %v2491_v23  ;;  %v5124_v35 = vsub.f32 %v4901_v18, %v4925_v43  ;;  %v2445_v41 = vmul.f32 %v5117_v10, %v5117_v10  ;;  %v2502_v2 = vsel %vm2260_vm9, %v2444_v34, 0.0 }
 0x44a   : > { %v2495_v6 = vadd.f32 %v2494_v13, %v2493_v25  ;;  %v5131_v13 = vsub.f32 %v4905_v39, %v4925_v43  ;;  %v2446_v18 = vmul.f32 %v5124_v35, %v5124_v35  ;;  %v2504_v39 = vsel %vm2260_vm9, %v2445_v41, 0.0 }
 0x44c   : > { %v2497_v23 = vadd.f32 %v2496_v52, %v2495_v6  ;;  %v5138_v52 = vsub.f32 %v4911_v62, %v4925_v43 }
 0x44e   : > { %v2499_v25 = vadd.f32 %v2498_v27, %v2497_v23  ;;  %v2447_v27 = vmul.f32 %v5131_v13, %v5131_v13  ;;  %v2448_v14 = vmul.f32 %v5138_v52, %v5138_v52 }
 0x450   : > { %v2501_v6 = vadd.f32 %v2500_v49, %v2499_v25  ;;  %v2506_v25 = vsel %vm2260_vm9, %v2446_v18, 0.0  ;;  %v2508_v43 = vsel %vm2260_vm9, %v2447_v27, 0.0  ;;  %v2510_v59 = vsel %vm2260_vm9, %v2448_v14, 0.0 }
 0x452   : > { %v2503_v23 = vadd.f32 %v2502_v2, %v2501_v6 }
 0x454   : > { %v2505_v3 = vadd.f32 %v2504_v39, %v2503_v23 }
 0x456   : > { %v2507_v49 = vadd.f32 %v2506_v25, %v2505_v3 }
 0x458   : > { %v2509_v62 = vadd.f32 %v2508_v43, %v2507_v49 }
 0x45a   : > { %v2511_v20 = vadd.f32 %v2510_v59, %v2509_v62 }
 0x45c   : > { %v2512_v34 = vrot.slane %v2511_v20, 4 }
 0x45e   : > { %v2513_v6 = vadd.f32 %v2512_v34, %v2511_v20 }
 0x460   : > { %v2514_v2 = vrot.slane %v2513_v6, 2 }
 0x462   : > { %v2515_v50 = vadd.f32 %v2514_v2, %v2513_v6 }
 0x464   : > { %v2516_v40 = vrot.slane %v2515_v50, 1 }
 0x466   : > { %v2517_v11 = vadd.f32 %v2516_v40, %v2515_v50  ;;  %v3837_v40 = vld [vmem:[%s6185_s4] ss:$0 sm:$0xff] }
 0x468   : > { %2519 = vrot.lane.b32.xlu2 %v2517_v11, %s3853_s14  ;;  %v3836_v11 = vld [vmem:[%s6184_s3] ss:$0 sm:$0xff] }
 0x469   : > { %2617 = vrot.lane.b32.xlu1 %v3836_v11, %s3855_s16 }
 0x470   : > { %2654 = vrot.lane.b32.xlu2 %v3837_v40, %s3855_s16 }
 0x4c2   : > { %v2520_v41 = vpop.permute.xlu2 %2519 }
 0x4c3   : > { %3757 = vmatmul.msk.f32.vlgmr.msra.gmra.mxu3 %vm2333_vm10, %v2520_v41 }
 0x4db   : > { %v5165_v34 = vpop.permute.xlu1 %2617 }
 0x546   : > { %v2540_v39 = vpop.f32.mrf.mxu3 }
 0x547   : > { %v2543_v18 = vmul.f32 0.00390625, %v2540_v39 }
 0x549   : > { %v2544_v3 = vadd.f32 1e-05, %v2543_v18  ;;  %v5175_v18 = vpop.permute.xlu2 %2654 }
 0x54b   : > { %3841 = vrsqrt.f32 %v2544_v3  ;;  %vm2551_vm12 = vweird.f32 %v2544_v3 }
 0x551   : > { %v3842_v23 = vpop.eup %3841 }
 0x552   : > { %v2546_v27 = vmul.f32 %v3842_v23, %v2544_v3  ;;  %vm2552_vm11 = vweird.f32 %v3842_v23 }
 0x553   : > { %vm2553_vm13 = vmor %vm2551_vm12, %vm2552_vm11 }
 0x554   : > { %v2547_v25 = vmul.f32 %v3842_v23, %v2546_v27 }
 0x556   : > { %v2548_v14 = vmul.f32 0.5, %v2547_v25 }
 0x558   : > { %v2549_v59 = vsub.f32 1.5, %v2548_v14 }
 0x55a   : > { %v2550_v20 = vmul.f32 %v3842_v23, %v2549_v59 }
 0x55c   : > { %v2554_v62 = vsel %vm2553_vm13, %v3842_v23, %v2550_v20 }
 0x55d   : > { %3758 = vmatmul.msk.f32.vlgmr.msrb.gmra.mxu3 %vm2333_vm10, %v2554_v62 }
 0x5e0   : > { %v2575_v50 = vpop.f32.mrf.mxu3 }
 0x5e1   : > { %v2578_v49 = vperm.slane %v2575_v50, 0 }
 0x5e3   : > { %2580 = vrot.lane.b32.xlu0 %v2578_v49, %s3855_s16 }
 0x655   : > { %v5163_v43 = vpop.permute.xlu0 %2580 }
 0x656   : > { %v2587_v6 = vmul.f32 %v5163_v43, %v4949_v42  ;;  %v2588_v2 = vmul.f32 %v5163_v43, %v4955_v5  ;;  %v2585_v41 = vmul.f32 %v5163_v43, %v4937_v61  ;;  %v2586_v39 = vmul.f32 %v5163_v43, %v4941_v29 }
 0x657   : > { %v2583_v3 = vmul.f32 %v5163_v43, %v4929_v16  ;;  %v2584_v23 = vmul.f32 %v5163_v43, %v4933_v15  ;;  %v2593_v42 = vmul.f32 %v5163_v43, %v4991_v30  ;;  %v2594_v5 = vmul.f32 %v5163_v43, %v4998_v55 }
 0x658   : > { %v2624_v27 = vmul.f32 %v5165_v34, %v2587_v6  ;;  %v2625_v61 = vmul.f32 %v5165_v34, %v2588_v2  ;;  %v2622_v29 = vmul.f32 %v5165_v34, %v2585_v41  ;;  %v2623_v25 = vmul.f32 %v5165_v34, %v2586_v39 }
 0x659   : > { %v2620_v14 = vmul.f32 %v5165_v34, %v2583_v3  ;;  %v2621_v16 = vmul.f32 %v5165_v34, %v2584_v23  ;;  %v2630_v15 = vmul.f32 %v5165_v34, %v2593_v42  ;;  %v2631_v59 = vmul.f32 %v5165_v34, %v2594_v5 }
 0x65a   : > { %v2661_v30 = vadd.f32 %v5175_v18, %v2624_v27  ;;  %v2662_v55 = vadd.f32 %v5175_v18, %v2625_v61  ;;  %v2659_v20 = vadd.f32 %v5175_v18, %v2622_v29  ;;  %v2660_v62 = vadd.f32 %v5175_v18, %v2623_v25 }
 0x65b   : > { %v2657_v11 = vadd.f32 %v5175_v18, %v2620_v14  ;;  %v2658_v40 = vadd.f32 %v5175_v18, %v2621_v16  ;;  %v2667_v50 = vadd.f32 %v5175_v18, %v2630_v15  ;;  %v2668_v49 = vadd.f32 %v5175_v18, %v2631_v59 }
 0x65c   : > { %v2693_v6 = vmax.f32 %v2661_v30, 0.0  ;;  %v2694_v2 = vmax.f32 %v2662_v55, 0.0  ;;  %v2691_v41 = vmax.f32 %v2659_v20, 0.0  ;;  %v2692_v39 = vmax.f32 %v2660_v62, 0.0 }
 0x65d   : > { %v2689_v3 = vmax.f32 %v2657_v11, 0.0  ;;  %v2690_v23 = vmax.f32 %v2658_v40, 0.0  ;;  %v2591_v27 = vmul.f32 %v5163_v43, %v4977_v58  ;;  %v2592_v61 = vmul.f32 %v5163_v43, %v4984_v21 }
 0x65e   : > { %v2723_v42 = vpack.c.bf16 %v2694_v2, %v2693_v6  ;;  %v2722_v5 = vpack.c.bf16 %v2692_v39, %v2691_v41  ;;  %v2699_v25 = vmax.f32 %v2667_v50, 0.0  ;;  %v2589_v14 = vmul.f32 %v5163_v43, %v4963_v12 }
 0x65f   : > { %v2721_v29 = vpack.c.bf16 %v2690_v23, %v2689_v3  ;;  %v2590_v16 = vmul.f32 %v5163_v43, %v4970_v1  ;;  %v2700_v15 = vmax.f32 %v2668_v49, 0.0  ;;  %v2628_v59 = vmul.f32 %v5165_v34, %v2591_v27 }
 0x660   : > { %2759 = vrot.lane.b32.xlu2 %v2723_v42, %s3853_s14  ;;  %2757 = vrot.lane.b32.xlu1 %v2722_v5, %s3853_s14  ;;  %v2629_v58 = vmul.f32 %v5165_v34, %v2592_v61  ;;  %v2599_v21 = vmul.f32 %v5163_v43, %v5033_v4  ;;  %v2626_v30 = vmul.f32 %v5165_v34, %v2589_v14 }
 0x661   : > { %2755 = vrot.lane.b32.xlu0 %v2721_v29, %s3853_s14  ;;  %v2627_v12 = vmul.f32 %v5165_v34, %v2590_v16  ;;  %v2600_v1 = vmul.f32 %v5163_v43, %v5040_v33  ;;  %v2597_v55 = vmul.f32 %v5163_v43, %v5019_v24  ;;  %v2665_v20 = vadd.f32 %v5175_v18, %v2628_v59 }
 0x662   : > { %v2666_v62 = vadd.f32 %v5175_v18, %v2629_v58  ;;  %v2636_v11 = vmul.f32 %v5165_v34, %v2599_v21  ;;  %v2598_v4 = vmul.f32 %v5163_v43, %v5026_v46  ;;  %v2663_v40 = vadd.f32 %v5175_v18, %v2626_v30 }
 0x663   : > { %v2664_v50 = vadd.f32 %v5175_v18, %v2627_v12  ;;  %v2637_v49 = vmul.f32 %v5165_v34, %v2600_v1  ;;  %v2634_v33 = vmul.f32 %v5165_v34, %v2597_v55  ;;  %v2697_v6 = vmax.f32 %v2665_v20, 0.0 }
 0x664   : > { %v2698_v2 = vmax.f32 %v2666_v62, 0.0  ;;  %v2673_v24 = vadd.f32 %v5175_v18, %v2636_v11  ;;  %v2635_v41 = vmul.f32 %v5165_v34, %v2598_v4  ;;  %v2695_v39 = vmax.f32 %v2663_v40, 0.0 }
 0x665   : > { %v2696_v3 = vmax.f32 %v2664_v50, 0.0  ;;  %v2674_v23 = vadd.f32 %v5175_v18, %v2637_v49  ;;  %v2671_v46 = vadd.f32 %v5175_v18, %v2634_v33  ;;  %v2726_v42 = vpack.c.bf16 %v2700_v15, %v2699_v25 }
 0x666   : > { %v2725_v5 = vpack.c.bf16 %v2698_v2, %v2697_v6  ;;  %v2672_v27 = vadd.f32 %v5175_v18, %v2635_v41  ;;  %v2595_v61 = vmul.f32 %v5163_v43, %v5005_v19  ;;  %v2705_v14 = vmax.f32 %v2673_v24, 0.0 }
 0x667   : > { %v2724_v29 = vpack.c.bf16 %v2696_v3, %v2695_v39  ;;  %v2596_v16 = vmul.f32 %v5163_v43, %v5012_v26  ;;  %v2706_v59 = vmax.f32 %v2674_v23, 0.0  ;;  %v2605_v25 = vmul.f32 %v5163_v43, %v5075_v38 }
 0x668   : > { %2765 = vrot.lane.b32.xlu2 %v2726_v42, %s3853_s14  ;;  %2763 = vrot.lane.b32.xlu1 %v2725_v5, %s3853_s14  ;;  %v2632_v58 = vmul.f32 %v5165_v34, %v2595_v61  ;;  %v2606_v15 = vmul.f32 %v5163_v43, %v5082_v56  ;;  %v2703_v19 = vmax.f32 %v2671_v46, 0.0  ;;  %v2603_v26 = vmul.f32 %v5163_v43, %v5061_v8 }
 0x669   : > { %2761 = vrot.lane.b32.xlu0 %v2724_v29, %s3853_s14  ;;  %v2633_v21 = vmul.f32 %v5165_v34, %v2596_v16  ;;  %v2604_v30 = vmul.f32 %v5163_v43, %v5068_v45  ;;  %v2704_v12 = vmax.f32 %v2672_v27, 0.0  ;;  %v2642_v55 = vmul.f32 %v5165_v34, %v2605_v25 }
 0x66a   : > { %v2669_v1 = vadd.f32 %v5175_v18, %v2632_v58  ;;  %v2643_v38 = vmul.f32 %v5165_v34, %v2606_v15  ;;  %v2640_v20 = vmul.f32 %v5165_v34, %v2603_v26  ;;  %v2601_v11 = vmul.f32 %v5163_v43, %v5047_v53 }
 0x66b   : > { %v2670_v56 = vadd.f32 %v5175_v18, %v2633_v21  ;;  %v2641_v62 = vmul.f32 %v5165_v34, %v2604_v30  ;;  %v2679_v4 = vadd.f32 %v5175_v18, %v2642_v55  ;;  %v2602_v40 = vmul.f32 %v5163_v43, %v5054_v0 }
 0x66c   : > { %v2701_v8 = vmax.f32 %v2669_v1, 0.0  ;;  %v2680_v45 = vadd.f32 %v5175_v18, %v2643_v38  ;;  %v2677_v49 = vadd.f32 %v5175_v18, %v2640_v20  ;;  %v2638_v6 = vmul.f32 %v5165_v34, %v2601_v11 }
 0x66d   : > { %v2702_v50 = vmax.f32 %v2670_v56, 0.0  ;;  %v2678_v33 = vadd.f32 %v5175_v18, %v2641_v62  ;;  %v2729_v2 = vpack.c.bf16 %v2706_v59, %v2705_v14  ;;  %v2728_v24 = vpack.c.bf16 %v2704_v12, %v2703_v19 }
 0x66e   : > { %v2639_v41 = vmul.f32 %v5165_v34, %v2602_v40  ;;  %v2611_v53 = vmul.f32 %v5163_v43, %v5117_v10  ;;  %v2675_v3 = vadd.f32 %v5175_v18, %v2638_v6  ;;  %v2711_v0 = vmax.f32 %v2679_v4, 0.0 }
 0x66f   : > { %v2727_v39 = vpack.c.bf16 %v2702_v50, %v2701_v8  ;;  %v2712_v23 = vmax.f32 %v2680_v45, 0.0  ;;  %v2612_v42 = vmul.f32 %v5163_v43, %v5124_v35  ;;  %v2709_v5 = vmax.f32 %v2677_v49, 0.0 }
 0x670   : > { %2771 = vrot.lane.b32.xlu2 %v2729_v2, %s3853_s14  ;;  %2769 = vrot.lane.b32.xlu1 %v2728_v24, %s3853_s14  ;;  %v2676_v46 = vadd.f32 %v5175_v18, %v2639_v41  ;;  %v2710_v27 = vmax.f32 %v2678_v33, 0.0  ;;  %v2648_v10 = vmul.f32 %v5165_v34, %v2611_v53  ;;  %v2609_v61 = vmul.f32 %v5163_v43, %v5103_v31 }
 0x671   : > { %2767 = vrot.lane.b32.xlu0 %v2727_v39, %s3853_s14  ;;  %v2649_v29 = vmul.f32 %v5165_v34, %v2612_v42  ;;  %v2610_v14 = vmul.f32 %v5163_v43, %v5110_v54  ;;  %v2607_v16 = vmul.f32 %v5163_v43, %v5089_v48  ;;  %v2707_v59 = vmax.f32 %v2675_v3, 0.0 }
 0x672   : > { %v2708_v58 = vmax.f32 %v2676_v46, 0.0  ;;  %v2646_v35 = vmul.f32 %v5165_v34, %v2609_v61  ;;  %v2608_v25 = vmul.f32 %v5163_v43, %v5096_v51  ;;  %v2732_v31 = vpack.c.bf16 %v2712_v23, %v2711_v0  ;;  %v5326_v46 = vld [vmem:[%s6191_s10 + $0x18] sm:$0xff] }
 0x673   : > { %v2647_v15 = vmul.f32 %v5165_v34, %v2610_v14  ;;  %v2644_v19 = vmul.f32 %v5165_v34, %v2607_v16  ;;  %v2731_v21 = vpack.c.bf16 %v2710_v27, %v2709_v5  ;;  %v2685_v26 = vadd.f32 %v5175_v18, %v2648_v10  ;;  %3022 = vmatpush.msrb.mxu2 %v5326_v46 }
 0x674   : > { %v2645_v54 = vmul.f32 %v5165_v34, %v2608_v25  ;;  %v2686_v30 = vadd.f32 %v5175_v18, %v2649_v29  ;;  %v2683_v48 = vadd.f32 %v5175_v18, %v2646_v35  ;;  %v2613_v1 = vmul.f32 %v5163_v43, %v5131_v13  ;;  %v5348_v35 = vld [vmem:[%s6191_s10 + $0x10] sm:$0xff] }
 0x675   : > { %v2684_v12 = vadd.f32 %v5175_v18, %v2647_v15  ;;  %v2730_v51 = vpack.c.bf16 %v2708_v58, %v2707_v59  ;;  %v2681_v55 = vadd.f32 %v5175_v18, %v2644_v19  ;;  %v2614_v56 = vmul.f32 %v5163_v43, %v5138_v52  ;;  %3023 = vmatpush.msrb.mxu2 %v5348_v35 }
 0x676   : > { %v2682_v38 = vadd.f32 %v5175_v18, %v2645_v54  ;;  %v2717_v20 = vmax.f32 %v2685_v26, 0.0  ;;  %v2718_v62 = vmax.f32 %v2686_v30, 0.0  ;;  %v2715_v11 = vmax.f32 %v2683_v48, 0.0 }
 0x677   : > { %v2716_v8 = vmax.f32 %v2684_v12, 0.0  ;;  %v2713_v4 = vmax.f32 %v2681_v55, 0.0  ;;  %v2650_v45 = vmul.f32 %v5165_v34, %v2613_v1  ;;  %v2651_v40 = vmul.f32 %v5165_v34, %v2614_v56  ;;  %v3822_v34 = vld [vmem:[%s6188_s7] sm:$0xff]  ;;  %v5374_v55 = vld [vmem:[%s6191_s10 + $0x8] sm:$0xff] }
 0x678   : > { %2777 = vrot.lane.b32.xlu2 %v2732_v31, %s3853_s14  ;;  %2775 = vrot.lane.b32.xlu1 %v2731_v21, %s3853_s14  ;;  %v2714_v13 = vmax.f32 %v2682_v38, 0.0  ;;  %v2735_v50 = vpack.c.bf16 %v2718_v62, %v2717_v20 }
 0x679   : > { %2773 = vrot.lane.b32.xlu0 %v2730_v51, %s3853_s14  ;;  %v2734_v49 = vpack.c.bf16 %v2716_v8, %v2715_v11  ;;  %v2687_v52 = vadd.f32 %v5175_v18, %v2650_v45  ;;  %v2688_v43 = vadd.f32 %v5175_v18, %v2651_v40  ;;  %2848 = vmatpush.bf16.msra.mxu3 %v3822_v34  ;;  %v5397_v40 = vld [vmem:[%s6191_s10] sm:$0xff] }
 0x67a   : > { %v2733_v33 = vpack.c.bf16 %v2714_v13, %v2713_v4  ;;  %3024 = vmatpush.msrb.mxu2 %v5374_v55 }
 0x67b   : > { %v2719_v6 = vmax.f32 %v2687_v52, 0.0  ;;  %v2720_v2 = vmax.f32 %v2688_v43, 0.0 }
 0x67c   : > { %3025 = vmatpush.msrb.mxu2 %v5397_v40 }
 0x67d   : > { %v2736_v24 = vpack.c.bf16 %v2720_v2, %v2719_v6 }
 0x680   : > { %2783 = vrot.lane.b32.xlu2 %v2735_v50, %s3853_s14  ;;  %2781 = vrot.lane.b32.xlu1 %v2734_v49, %s3853_s14 }
 0x681   : > { %2779 = vrot.lane.b32.xlu0 %v2733_v33, %s3853_s14 }
 0x689   : > { %2785 = vrot.lane.b32.xlu0 %v2736_v24, %s3853_s14 }
 0x6ba   : > { %v2760_v53 = vpop.permute.xlu2 %2759 }
 0x6c2   : > { %v2766_v0 = vpop.permute.xlu2 %2765 }
 0x6ca   : > { %v2772_v5 = vpop.permute.xlu2 %2771 }
 0x6d2   : > { %v2758_v18 = vpop.permute.xlu1 %2757  ;;  %v2778_v25 = vpop.permute.xlu2 %2777 }
 0x6d3   : > { %v2756_v41 = vpop.permute.xlu0 %2755 }
 0x6d4   : > { %3763 = vmatmul.msk.bf16.vlgmr.msra.gmra.mxu3 %vm2333_vm10, %v2756_v41 }
 0x6da   : > { %v2764_v3 = vpop.permute.xlu1 %2763  ;;  %v2784_v12 = vpop.permute.xlu2 %2783 }
 0x6db   : > { %v2762_v39 = vpop.permute.xlu0 %2761 }
 0x6e2   : > { %v2770_v42 = vpop.permute.xlu1 %2769 }
 0x6e3   : > { %v2768_v23 = vpop.permute.xlu0 %2767 }
 0x6e4   : > { %3764 = vmatmul.msk.bf16.gmra.mxu3 %vm2333_vm10, %v2758_v18 }
 0x6ea   : > { %v2776_v16 = vpop.permute.xlu1 %2775 }
 0x6eb   : > { %v2774_v61 = vpop.permute.xlu0 %2773 }
 0x6f2   : > { %v2782_v54 = vpop.permute.xlu1 %2781 }
 0x6f3   : > { %v2780_v31 = vpop.permute.xlu0 %2779 }
 0x6f4   : > { %3765 = vmatmul.msk.bf16.gmra.mxu3 %vm2333_vm10, %v2760_v53 }
 0x6fb   : > { %v2786_v38 = vpop.permute.xlu0 %2785 }
 0x704   : > { %3766 = vmatmul.msk.bf16.gmra.mxu3 %vm2333_vm10, %v2762_v39 }
 0x714   : > { %3767 = vmatmul.msk.bf16.gmra.mxu3 %vm2333_vm10, %v2764_v3 }
 0x724   : > { %3768 = vmatmul.msk.bf16.gmra.mxu3 %vm2333_vm10, %v2766_v0 }
 0x734   : > { %3769 = vmatmul.msk.bf16.gmra.mxu3 %vm2333_vm10, %v2768_v23 }
 0x744   : > { %3770 = vmatmul.msk.bf16.gmra.mxu3 %vm2333_vm10, %v2770_v42 }
 0x754   : > { %3771 = vmatmul.msk.bf16.gmra.mxu3 %vm2333_vm10, %v2772_v5 }
 0x757   : > { %v5331_v27 = vpop.f32.mrf.mxu3 }
 0x758   : > { %v2938_v52 = vsel %vm1468_vm6, %v5331_v27, 0.0 }
 0x75f   : > { %v5333_v10 = vpop.f32.mrf.mxu3 }
 0x760   : > { %v2939_v33 = vsel %vm1468_vm6, %v5333_v10, 0.0 }
 0x761   : > { %v2940_v6 = vadd.f32 %v2939_v33, %v2938_v52 }
 0x764   : > { %3772 = vmatmul.msk.bf16.gmra.mxu3 %vm2333_vm10, %v2774_v61 }
 0x767   : > { %v5336_v29 = vpop.f32.mrf.mxu3 }
 0x768   : > { %v2941_v43 = vsel %vm1468_vm6, %v5336_v29, 0.0 }
 0x769   : > { %v2942_v24 = vadd.f32 %v2941_v43, %v2940_v6 }
 0x76f   : > { %v5338_v14 = vpop.f32.mrf.mxu3 }
 0x770   : > { %v2943_v2 = vsel %vm1468_vm6, %v5338_v14, 0.0 }
 0x771   : > { %v2944_v18 = vadd.f32 %v2943_v2, %v2942_v24 }
 0x774   : > { %3773 = vmatmul.msk.bf16.gmra.mxu3 %vm2333_vm10, %v2776_v16 }
 0x777   : > { %v5341_v59 = vpop.f32.mrf.mxu3 }
 0x778   : > { %v2945_v41 = vsel %vm1468_vm6, %v5341_v59, 0.0 }
 0x779   : > { %v2946_v39 = vadd.f32 %v2945_v41, %v2944_v18 }
 0x77f   : > { %v5343_v58 = vpop.f32.mrf.mxu3 }
 0x780   : > { %v2947_v53 = vsel %vm1468_vm6, %v5343_v58, 0.0 }
 0x781   : > { %v2948_v0 = vadd.f32 %v2947_v53, %v2946_v39 }
 0x784   : > { %3774 = vmatmul.msk.bf16.gmra.mxu3 %vm2333_vm10, %v2778_v25 }
 0x787   : > { %v5352_v15 = vpop.f32.mrf.mxu3 }
 0x788   : > { %v2949_v3 = vsel %vm1468_vm6, %v5352_v15, 0.0 }
 0x789   : > { %v2950_v42 = vadd.f32 %v2949_v3, %v2948_v0 }
 0x78f   : > { %v5354_v19 = vpop.f32.mrf.mxu3 }
 0x790   : > { %v2951_v23 = vsel %vm1468_vm6, %v5354_v19, 0.0 }
 0x791   : > { %v2952_v16 = vadd.f32 %v2951_v23, %v2950_v42 }
 0x794   : > { %3775 = vmatmul.msk.bf16.gmra.mxu3 %vm2333_vm10, %v2780_v31 }
 0x797   : > { %v5357_v21 = vpop.f32.mrf.mxu3 }
 0x798   : > { %v2953_v61 = vsel %vm1468_vm6, %v5357_v21, 0.0 }
 0x799   : > { %v2954_v31 = vadd.f32 %v2953_v61, %v2952_v16 }
 0x79f   : > { %v5359_v26 = vpop.f32.mrf.mxu3 }
 0x7a0   : > { %v2955_v25 = vsel %vm1468_vm6, %v5359_v26, 0.0 }
 0x7a4   : > { %3776 = vmatmul.msk.bf16.gmra.mxu3 %vm2333_vm10, %v2782_v54 }
 0x7a7   : > { %v5362_v30 = vpop.f32.mrf.mxu3 }
 0x7a8   : > { %v2957_v54 = vsel %vm1468_vm6, %v5362_v30, 0.0 }
 0x7af   : > { %v5364_v48 = vpop.f32.mrf.mxu3 }
 0x7b4   : > { %3777 = vmatmul.msk.bf16.gmra.mxu3 %vm2333_vm10, %v2784_v12  ;;  %v2956_v12 = vadd.f32 %v2955_v25, %v2954_v31 }
 0x7b6   : > { %v2958_v33 = vadd.f32 %v2957_v54, %v2956_v12 }
 0x7b7   : > { %v5367_v1 = vpop.f32.mrf.mxu3 }
 0x7b8   : > { %v2961_v43 = vsel %vm1468_vm6, %v5367_v1, 0.0 }
 0x7bf   : > { %v5369_v51 = vpop.f32.mrf.mxu3 }
 0x7c0   : > { %v2963_v2 = vsel %vm1468_vm6, %v5369_v51, 0.0 }
 0x7c4   : > { %3778 = vmatmul.msk.bf16.gmra.mxu3 %vm2333_vm10, %v2786_v38  ;;  %v2959_v38 = vsel %vm1468_vm6, %v5364_v48, 0.0 }
 0x7c5   : > { %v2960_v6 = vadd.f32 %v2959_v38, %v2958_v33 }
 0x7c7   : > { %v5378_v56 = vpop.f32.mrf.mxu3  ;;  %v2962_v24 = vadd.f32 %v2961_v43, %v2960_v6 }
 0x7c8   : > { %v2965_v41 = vsel %vm1468_vm6, %v5378_v56, 0.0 }
 0x7c9   : > { %v2964_v18 = vadd.f32 %v2963_v2, %v2962_v24 }
 0x7cb   : > { %v2966_v39 = vadd.f32 %v2965_v41, %v2964_v18 }
 0x7cf   : > { %v5380_v20 = vpop.f32.mrf.mxu3 }
 0x7d0   : > { %v2967_v53 = vsel %vm1468_vm6, %v5380_v20, 0.0 }
 0x7d1   : > { %v2968_v23 = vadd.f32 %v2967_v53, %v2966_v39  ;;  %v2937_v39 = vld [vmem:[%s6192_s11 + $0x8] sm:$0xff] }
 0x7d2   : > { %3048 = vmatpush.msra.mxu2 %v2937_v39  ;;  %3240 = vmatpush.msrb.mxu0 %v2937_v39 }
 0x7d7   : > { %v5382_v62 = vpop.f32.mrf.mxu3 }
 0x7d8   : > { %v2969_v0 = vsel %vm1468_vm6, %v5382_v62, 0.0 }
 0x7d9   : > { %v2970_v61 = vadd.f32 %v2969_v0, %v2968_v23  ;;  %v2936_v0 = vld [vmem:[%s6192_s11] sm:$0xff] }
 0x7da   : > { %3049 = vmatpush.msra.mxu2 %v2936_v0  ;;  %3241 = vmatpush.msrb.mxu0 %v2936_v0 }
 0x7df   : > { %v5384_v11 = vpop.f32.mrf.mxu3 }
 0x7e0   : > { %v2971_v42 = vsel %vm1468_vm6, %v5384_v11, 0.0 }
 0x7e1   : > { %v2972_v25 = vadd.f32 %v2971_v42, %v2970_v61 }
 0x7e7   : > { %v5386_v8 = vpop.f32.mrf.mxu3 }
 0x7e8   : > { %v2973_v16 = vsel %vm1468_vm6, %v5386_v8, 0.0 }
 0x7e9   : > { %v2974_v54 = vadd.f32 %v2973_v16, %v2972_v25 }
 0x7ef   : > { %v5388_v4 = vpop.f32.mrf.mxu3 }
 0x7f0   : > { %v2975_v31 = vsel %vm1468_vm6, %v5388_v4, 0.0 }
 0x7f1   : > { %v2976_v33 = vadd.f32 %v2975_v31, %v2974_v54 }
 0x7f7   : > { %v5390_v13 = vpop.f32.mrf.mxu3 }
 0x7f8   : > { %v2977_v38 = vsel %vm1468_vm6, %v5390_v13, 0.0 }
 0x7f9   : > { %v2978_v6 = vadd.f32 %v2977_v38, %v2976_v33 }
 0x7ff   : > { %v5392_v45 = vpop.f32.mrf.mxu3 }
 0x800   : > { %v2979_v43 = vsel %vm1468_vm6, %v5392_v45, 0.0 }
 0x801   : > { %v2980_v24 = vadd.f32 %v2979_v43, %v2978_v6 }
 0x807   : > { %v5400_v50 = vpop.f32.mrf.mxu3 }
 0x808   : > { %v2981_v2 = vsel %vm1468_vm6, %v5400_v50, 0.0 }
 0x809   : > { %v2982_v18 = vadd.f32 %v2981_v2, %v2980_v24 }
 0x80f   : > { %v5402_v49 = vpop.f32.mrf.mxu3 }
 0x810   : > { %v2983_v41 = vsel %vm1468_vm6, %v5402_v49, 0.0 }
 0x811   : > { %v2984_v42 = vadd.f32 %v2983_v41, %v2982_v18 }
 0x817   : > { %v5412_v34 = vpop.f32.mrf.mxu3 }
 0x818   : > { %v2985_v23 = vsel %vm1468_vm6, %v5412_v34, 0.0 }
 0x819   : > { %v2986_v16 = vadd.f32 %v2985_v23, %v2984_v42 }
 0x81f   : > { %v5422_v5 = vpop.f32.mrf.mxu3 }
 0x820   : > { %v2987_v61 = vsel %vm1468_vm6, %v5422_v5, 0.0 }
 0x821   : > { %v2988_v31 = vadd.f32 %v2987_v61, %v2986_v16 }
 0x827   : > { %v5432_v52 = vpop.f32.mrf.mxu3 }
 0x828   : > { %v2989_v25 = vsel %vm1468_vm6, %v5432_v52, 0.0 }
 0x829   : > { %v2990_v38 = vadd.f32 %v2989_v25, %v2988_v31 }
 0x82f   : > { %v5442_v3 = vpop.f32.mrf.mxu3 }
 0x830   : > { %v2991_v54 = vsel %vm1468_vm6, %v5442_v3, 0.0 }
 0x831   : > { %v2992_v6 = vadd.f32 %v2991_v54, %v2990_v38 }
 0x837   : > { %v5452_v12 = vpop.f32.mrf.mxu3 }
 0x838   : > { %v2993_v43 = vsel %vm1468_vm6, %v5452_v12, 0.0 }
 0x839   : > { %v2994_v24 = vadd.f32 %v2993_v43, %v2992_v6 }
 0x83f   : > { %v5462_v53 = vpop.f32.mrf.mxu3 }
 0x840   : > { %v2995_v2 = vsel %vm1468_vm6, %v5462_v53, 0.0 }
 0x841   : > { %v2996_v18 = vadd.f32 %v2995_v2, %v2994_v24 }
 0x847   : > { %v5478_v33 = vpop.f32.mrf.mxu3 }
 0x848   : > { %v2997_v41 = vsel %vm1468_vm6, %v5478_v33, 0.0 }
 0x849   : > { %v2998_v39 = vadd.f32 %v2997_v41, %v2996_v18 }
 0x84f   : > { %v5486_v0 = vpop.f32.mrf.mxu3 }
 0x850   : > { %v2999_v23 = vsel %vm1468_vm6, %v5486_v0, 0.0 }
 0x851   : > { %v3000_v42 = vadd.f32 %v2999_v23, %v2998_v39 }
 0x853   : > { %v3001_v61 = vrot.slane %v3000_v42, 4 }
 0x855   : > { %v3002_v16 = vadd.f32 %v3001_v61, %v3000_v42 }
 0x857   : > { %v3003_v25 = vrot.slane %v3002_v16, 2 }
 0x859   : > { %v3004_v31 = vadd.f32 %v3003_v25, %v3002_v16 }
 0x85b   : > { %v3005_v54 = vrot.slane %v3004_v31, 1 }
 0x85d   : > { %v3006_v38 = vadd.f32 %v3005_v54, %v3004_v31 }
 0x85f   : > { %3779 = vmatmul.msk.f32.vlgmr.msrb.gmra.mxu2 %vm1468_vm6, %v3006_v38 }
 0x860   : > { %3203 = vmatpush.msrb.mxu2 %v5326_v46 }
 0x862   : > { %3204 = vmatpush.msrb.mxu2 %v5348_v35 }
 0x864   : > { %3205 = vmatpush.msrb.mxu2 %v5374_v55 }
 0x866   : > { %3206 = vmatpush.msrb.mxu2 %v5397_v40 }
 0x8e2   : > { %v3027_v43 = vpop.f32.mrf.mxu2 }
 0x8e3   : > { %v3030_v6 = vmul.f32 0.001953125, %v3027_v43 }
 0x8e5   : > { %3780 = vmatmul.msk.f32.vlgmr.msra.gmra.mxu2 %vm2333_vm10, %v3030_v6 }
 0x968   : > { %v3051_v2 = vpop.f32.mrf.mxu2 }
 0x969   : > { %v5496_v24 = vperm.slane %v3051_v2, 0 }
 0x96b   : > { %v5500_v41 = vsub.f32 %v5331_v27, %v5496_v24  ;;  %v5504_v46 = vsub.f32 %v5333_v10, %v5496_v24  ;;  %v5508_v35 = vsub.f32 %v5336_v29, %v5496_v24  ;;  %v5512_v55 = vsub.f32 %v5338_v14, %v5496_v24 }
 0x96c   : > { %v5520_v27 = vsub.f32 %v5341_v59, %v5496_v24  ;;  %v5526_v29 = vsub.f32 %v5343_v58, %v5496_v24  ;;  %v5534_v61 = vsub.f32 %v5352_v15, %v5496_v24  ;;  %v5541_v58 = vsub.f32 %v5354_v19, %v5496_v24 }
 0x96d   : > { %v3087_v40 = vmul.f32 %v5500_v41, %v5500_v41  ;;  %v3088_v18 = vmul.f32 %v5504_v46, %v5504_v46  ;;  %v3089_v10 = vmul.f32 %v5508_v35, %v5508_v35  ;;  %v3090_v14 = vmul.f32 %v5512_v55, %v5512_v55 }
 0x96e   : > { %v3091_v59 = vmul.f32 %v5520_v27, %v5520_v27  ;;  %v3092_v31 = vmul.f32 %v5526_v29, %v5526_v29  ;;  %v5548_v15 = vsub.f32 %v5357_v21, %v5496_v24  ;;  %v3093_v43 = vmul.f32 %v5534_v61, %v5534_v61 }
 0x96f   : > { %v3119_v39 = vsel %vm1468_vm6, %v3087_v40, 0.0  ;;  %v3120_v23 = vsel %vm1468_vm6, %v3088_v18, 0.0  ;;  %v3122_v16 = vsel %vm1468_vm6, %v3089_v10, 0.0  ;;  %v3124_v54 = vsel %vm1468_vm6, %v3090_v14, 0.0 }
 0x970   : > { %v3121_v42 = vadd.f32 %v3120_v23, %v3119_v39  ;;  %v3126_v6 = vsel %vm1468_vm6, %v3091_v59, 0.0  ;;  %v5555_v19 = vsub.f32 %v5359_v26, %v5496_v24  ;;  %v3094_v40 = vmul.f32 %v5541_v58, %v5541_v58 }
 0x971   : > { %v3128_v18 = vsel %vm1468_vm6, %v3092_v31, 0.0  ;;  %v5562_v21 = vsub.f32 %v5362_v30, %v5496_v24  ;;  %v3095_v14 = vmul.f32 %v5548_v15, %v5548_v15  ;;  %v3130_v39 = vsel %vm1468_vm6, %v3093_v43, 0.0 }
 0x972   : > { %v3123_v25 = vadd.f32 %v3122_v16, %v3121_v42  ;;  %v5569_v26 = vsub.f32 %v5364_v48, %v5496_v24  ;;  %v3096_v42 = vmul.f32 %v5555_v19, %v5555_v19  ;;  %v3132_v59 = vsel %vm1468_vm6, %v3094_v40, 0.0 }
 0x973   : > { %v5576_v30 = vsub.f32 %v5367_v1, %v5496_v24  ;;  %v3134_v31 = vsel %vm1468_vm6, %v3095_v14, 0.0  ;;  %v5583_v48 = vsub.f32 %v5369_v51, %v5496_v24  ;;  %v5590_v1 = vsub.f32 %v5378_v56, %v5496_v24 }
 0x974   : > { %v3125_v38 = vadd.f32 %v3124_v54, %v3123_v25  ;;  %v3097_v25 = vmul.f32 %v5562_v21, %v5562_v21  ;;  %v3136_v43 = vsel %vm1468_vm6, %v3096_v42, 0.0  ;;  %v5597_v51 = vsub.f32 %v5380_v20, %v5496_v24 }
 0x975   : > { %v5604_v56 = vsub.f32 %v5382_v62, %v5496_v24  ;;  %v5611_v20 = vsub.f32 %v5384_v11, %v5496_v24  ;;  %v5618_v62 = vsub.f32 %v5386_v8, %v5496_v24  ;;  %v5625_v11 = vsub.f32 %v5388_v4, %v5496_v24 }
 0x976   : > { %v3127_v2 = vadd.f32 %v3126_v6, %v3125_v38  ;;  %v3098_v38 = vmul.f32 %v5569_v26, %v5569_v26  ;;  %v3138_v40 = vsel %vm1468_vm6, %v3097_v25, 0.0  ;;  %v5632_v8 = vsub.f32 %v5390_v13, %v5496_v24 }
 0x977   : > { %v5639_v4 = vsub.f32 %v5392_v45, %v5496_v24  ;;  %v5646_v13 = vsub.f32 %v5400_v50, %v5496_v24  ;;  %v5653_v45 = vsub.f32 %v5402_v49, %v5496_v24  ;;  %v5660_v50 = vsub.f32 %v5412_v34, %v5496_v24 }
 0x978   : > { %v3129_v10 = vadd.f32 %v3128_v18, %v3127_v2  ;;  %v3099_v2 = vmul.f32 %v5576_v30, %v5576_v30  ;;  %v3140_v14 = vsel %vm1468_vm6, %v3098_v38, 0.0  ;;  %v5667_v49 = vsub.f32 %v5422_v5, %v5496_v24 }
 0x979   : > { %v5674_v34 = vsub.f32 %v5432_v52, %v5496_v24  ;;  %v5681_v5 = vsub.f32 %v5442_v3, %v5496_v24  ;;  %v5688_v52 = vsub.f32 %v5452_v12, %v5496_v24  ;;  %v5695_v3 = vsub.f32 %v5462_v53, %v5496_v24 }
 0x97a   : > { %v3131_v23 = vadd.f32 %v3130_v39, %v3129_v10  ;;  %v3100_v10 = vmul.f32 %v5583_v48, %v5583_v48  ;;  %v3142_v42 = vsel %vm1468_vm6, %v3099_v2, 0.0  ;;  %v5702_v12 = vsub.f32 %v5478_v33, %v5496_v24 }
 0x97b   : > { %v5709_v53 = vsub.f32 %v5486_v0, %v5496_v24 }
 0x97c   : > { %v3133_v16 = vadd.f32 %v3132_v59, %v3131_v23  ;;  %v3101_v23 = vmul.f32 %v5590_v1, %v5590_v1  ;;  %v3144_v25 = vsel %vm1468_vm6, %v3100_v10, 0.0  ;;  %v3117_v33 = vmul.f32 %v5702_v12, %v5702_v12 }
 0x97e   : > { %v3135_v54 = vadd.f32 %v3134_v31, %v3133_v16  ;;  %v3102_v16 = vmul.f32 %v5597_v51, %v5597_v51  ;;  %v3146_v38 = vsel %vm1468_vm6, %v3101_v23, 0.0  ;;  %v3178_v0 = vsel %vm1468_vm6, %v3117_v33, 0.0 }
 0x980   : > { %v3137_v6 = vadd.f32 %v3136_v43, %v3135_v54  ;;  %v3103_v54 = vmul.f32 %v5604_v56, %v5604_v56  ;;  %v3148_v2 = vsel %vm1468_vm6, %v3102_v16, 0.0 }
 0x982   : > { %v3139_v18 = vadd.f32 %v3138_v40, %v3137_v6  ;;  %v3104_v6 = vmul.f32 %v5611_v20, %v5611_v20  ;;  %v3150_v10 = vsel %vm1468_vm6, %v3103_v54, 0.0 }
 0x984   : > { %v3141_v39 = vadd.f32 %v3140_v14, %v3139_v18  ;;  %v3105_v18 = vmul.f32 %v5618_v62, %v5618_v62  ;;  %v3152_v23 = vsel %vm1468_vm6, %v3104_v6, 0.0 }
 0x986   : > { %v3143_v59 = vadd.f32 %v3142_v42, %v3141_v39  ;;  %v3106_v39 = vmul.f32 %v5625_v11, %v5625_v11  ;;  %v3154_v16 = vsel %vm1468_vm6, %v3105_v18, 0.0 }
 0x988   : > { %v3145_v31 = vadd.f32 %v3144_v25, %v3143_v59  ;;  %v3107_v59 = vmul.f32 %v5632_v8, %v5632_v8  ;;  %v3156_v54 = vsel %vm1468_vm6, %v3106_v39, 0.0 }
 0x98a   : > { %v3147_v43 = vadd.f32 %v3146_v38, %v3145_v31  ;;  %v3108_v31 = vmul.f32 %v5639_v4, %v5639_v4  ;;  %v3158_v6 = vsel %vm1468_vm6, %v3107_v59, 0.0 }
 0x98c   : > { %v3149_v40 = vadd.f32 %v3148_v2, %v3147_v43  ;;  %v3109_v43 = vmul.f32 %v5646_v13, %v5646_v13  ;;  %v3160_v18 = vsel %vm1468_vm6, %v3108_v31, 0.0 }
 0x98e   : > { %v3151_v14 = vadd.f32 %v3150_v10, %v3149_v40  ;;  %v3110_v40 = vmul.f32 %v5653_v45, %v5653_v45  ;;  %v3162_v39 = vsel %vm1468_vm6, %v3109_v43, 0.0 }
 0x990   : > { %v3153_v42 = vadd.f32 %v3152_v23, %v3151_v14  ;;  %v3111_v14 = vmul.f32 %v5660_v50, %v5660_v50  ;;  %v3164_v59 = vsel %vm1468_vm6, %v3110_v40, 0.0 }
 0x992   : > { %v3155_v25 = vadd.f32 %v3154_v16, %v3153_v42  ;;  %v3112_v42 = vmul.f32 %v5667_v49, %v5667_v49  ;;  %v3166_v31 = vsel %vm1468_vm6, %v3111_v14, 0.0 }
 0x994   : > { %v3157_v38 = vadd.f32 %v3156_v54, %v3155_v25  ;;  %v3113_v25 = vmul.f32 %v5674_v34, %v5674_v34  ;;  %v3168_v43 = vsel %vm1468_vm6, %v3112_v42, 0.0 }
 0x996   : > { %v3159_v2 = vadd.f32 %v3158_v6, %v3157_v38  ;;  %v3114_v38 = vmul.f32 %v5681_v5, %v5681_v5  ;;  %v3170_v40 = vsel %vm1468_vm6, %v3113_v25, 0.0 }
 0x998   : > { %v3161_v10 = vadd.f32 %v3160_v18, %v3159_v2  ;;  %v3115_v2 = vmul.f32 %v5688_v52, %v5688_v52  ;;  %v3172_v14 = vsel %vm1468_vm6, %v3114_v38, 0.0 }
 0x99a   : > { %v3163_v23 = vadd.f32 %v3162_v39, %v3161_v10  ;;  %v3116_v10 = vmul.f32 %v5695_v3, %v5695_v3 }
 0x99c   : > { %v3165_v16 = vadd.f32 %v3164_v59, %v3163_v23  ;;  %v3174_v23 = vsel %vm1468_vm6, %v3115_v2, 0.0  ;;  %v3118_v59 = vmul.f32 %v5709_v53, %v5709_v53 }
 0x99e   : > { %v3167_v54 = vadd.f32 %v3166_v31, %v3165_v16  ;;  %v3176_v16 = vsel %vm1468_vm6, %v3116_v10, 0.0  ;;  %v3180_v31 = vsel %vm1468_vm6, %v3118_v59, 0.0 }
 0x9a0   : > { %v3169_v6 = vadd.f32 %v3168_v43, %v3167_v54 }
 0x9a2   : > { %v3171_v18 = vadd.f32 %v3170_v40, %v3169_v6 }
 0x9a4   : > { %v3173_v39 = vadd.f32 %v3172_v14, %v3171_v18 }
 0x9a6   : > { %v3175_v42 = vadd.f32 %v3174_v23, %v3173_v39 }
 0x9a8   : > { %v3177_v25 = vadd.f32 %v3176_v16, %v3175_v42 }
 0x9aa   : > { %v3179_v24 = vadd.f32 %v3178_v0, %v3177_v25 }
 0x9ac   : > { %v3181_v54 = vadd.f32 %v3180_v31, %v3179_v24  ;;  %v5727_v24 = vld [vmem:[%s6183_s2] ss:$0 sm:$0xff] }
 0x9ad   : > { %6256 = vst [vmem:[#allocation21_spill] sm:$0xff] %v5727_v24  ;;  %v5731_v31 = vadd.f32 %v5727_v24, %v4659_v22  ;;  %v5751_v22 = vadd.f32 %v5727_v24, %v4703_v57  ;;  %v5771_v57 = vadd.f32 %v5727_v24, %v4832_v47  ;;  %v6272_v47 = vld [vmem:[#allocation8_spill] sm:$0xff] }
 0x9ae   : > { %v3182_v38 = vrot.slane %v3181_v54, 4 }
 0x9af   : > { %6257 = vst [vmem:[#allocation22_spill] sm:$0xff] %v5751_v22 }
 0x9b0   : > { %v3183_v43 = vadd.f32 %v3182_v38, %v3181_v54  ;;  %v5735_v54 = vadd.f32 %v5727_v24, %v4668_v36  ;;  %v5739_v38 = vadd.f32 %v5727_v24, %v4676_v28  ;;  %v5755_v36 = vadd.f32 %v5727_v24, %v4712_v17  ;;  %6262 = vst [vmem:[#allocation27_spill] sm:$0xff] %v5771_v57 }
 0x9b1   : > { %v5759_v28 = vadd.f32 %v5727_v24, %v4723_v60  ;;  %v5775_v17 = vadd.f32 %v5727_v24, %v4756_v37  ;;  %v5779_v60 = vadd.f32 %v5727_v24, %v4763_v44 }
 0x9b2   : > { %v3184_v6 = vrot.slane %v3183_v43, 2  ;;  %6258 = vst [vmem:[#allocation23_spill] sm:$0xff] %v5755_v36 }
 0x9b3   : > { %6259 = vst [vmem:[#allocation24_spill] sm:$0xff] %v5759_v28 }
 0x9b4   : > { %v3185_v40 = vadd.f32 %v3184_v6, %v3183_v43  ;;  %v5743_v43 = vadd.f32 %v5727_v24, %v4684_v32  ;;  %v5747_v6 = vadd.f32 %v5727_v24, %v4694_v63  ;;  %v5763_v32 = vadd.f32 %v5727_v24, %v4820_v9  ;;  %6263 = vst [vmem:[#allocation28_spill] sm:$0xff] %v5775_v17  ;;  %v6279_v9 = vld [vmem:[#allocation12_spill] sm:$0xff]  ;;  %v6285_v17 = vld [vmem:[#allocation15_spill] sm:$0xff] }
 0x9b5   : > { %v5767_v63 = vadd.f32 %v5727_v24, %v4826_v7  ;;  %6264 = vst [vmem:[#allocation29_spill] sm:$0xff] %v5779_v60  ;;  %v6275_v7 = vld [vmem:[#allocation10_spill] sm:$0xff] }
 0x9b6   : > { %v3186_v18 = vrot.slane %v3185_v40, 1  ;;  %6260 = vst [vmem:[#allocation25_spill] sm:$0xff] %v5763_v32  ;;  %v6283_v60 = vld [vmem:[#allocation14_spill] sm:$0xff] }
 0x9b7   : > { %6261 = vst [vmem:[#allocation26_spill] sm:$0xff] %v5767_v63  ;;  %v6287_v63 = vld [vmem:[#allocation16_spill] sm:$0xff] }
 0x9b8   : > { %v3187_v14 = vadd.f32 %v3186_v18, %v3185_v40  ;;  %v6277_v18 = vld [vmem:[#allocation11_spill] sm:$0xff]  ;;  %v6281_v40 = vld [vmem:[#allocation13_spill] sm:$0xff] }
 0x9ba   : > { %3781 = vmatmul.msk.f32.vlgmr.msrb.gmra.mxu2 %vm1468_vm6, %v3187_v14  ;;  %v6273_v14 = vld [vmem:[#allocation9_spill] sm:$0xff] }
 0xa3d   : > { %v3208_v2 = vpop.f32.mrf.mxu2 }
 0xa3e   : > { %v3211_v39 = vmul.f32 0.001953125, %v3208_v2 }
 0xa40   : > { %v3212_v23 = vadd.f32 1e-05, %v3211_v39  ;;  %v6268_v39 = vld [vmem:[#allocation5_spill] sm:$0xff] }
 0xa41   : > { %v5808_v44 = vadd.f32 %v5727_v24, %v6268_v39  ;;  %v5828_v39 = vadd.f32 %v5727_v24, %v6275_v7  ;;  %v5848_v7 = vadd.f32 %v5727_v24, %v6285_v17  ;;  %v6291_v17 = vld [vmem:[#allocation18_spill] sm:$0xff] }
 0xa42   : > { %3843 = vrsqrt.f32 %v3212_v23  ;;  %vm3219_vm15 = vweird.f32 %v3212_v23  ;;  %v5875_v22 = vadd.f32 %v5727_v24, %v6291_v17 }
 0xa43   : > { %6286 = vst [vmem:[#allocation9_spill] sm:$0xff] %v5848_v7 }
 0xa44   : > { %6292 = vst [vmem:[#allocation12_spill] sm:$0xff] %v5875_v22 }
 0xa48   : > { %v3844_v10 = vpop.eup %3843 }
 0xa49   : > { %v3214_v42 = vmul.f32 %v3844_v10, %v3212_v23  ;;  %vm3220_vm14 = vweird.f32 %v3844_v10  ;;  %v6269_v23 = vld [vmem:[#allocation6_spill] sm:$0xff] }
 0xa4a   : > { %vm3221_vm0 = vmor %vm3219_vm15, %vm3220_vm14 }
 0xa4b   : > { %v3215_v16 = vmul.f32 %v3844_v10, %v3214_v42  ;;  %v6271_v42 = vld [vmem:[#allocation7_spill] sm:$0xff] }
 0xa4d   : > { %v3216_v33 = vmul.f32 0.5, %v3215_v16  ;;  %v6265_v16 = vld [vmem:[#allocation2_spill] sm:$0xff] }
 0xa4f   : > { %v3217_v25 = vsub.f32 1.5, %v3216_v33  ;;  %v5796_v33 = vadd.f32 %v5727_v24, %v6265_v16  ;;  %v5816_v16 = vadd.f32 %v5727_v24, %v6271_v42  ;;  %v5836_v42 = vadd.f32 %v5727_v24, %v6279_v9 }
 0xa50   : > { %v5854_v9 = vadd.f32 %v5727_v24, %v6287_v63 }
 0xa51   : > { %v3218_v59 = vmul.f32 %v3844_v10, %v3217_v25  ;;  %v6266_v25 = vld [vmem:[#allocation3_spill] sm:$0xff]  ;;  %6280 = vst [vmem:[#allocation6_spill] sm:$0xff] %v5836_v42 }
 0xa52   : > { %6288 = vst [vmem:[#allocation10_spill] sm:$0xff] %v5854_v9 }
 0xa53   : > { %v3222_v0 = vsel %vm3221_vm0, %v3844_v10, %v3218_v59  ;;  %v5800_v59 = vadd.f32 %v5727_v24, %v6266_v25  ;;  %v5812_v10 = vadd.f32 %v5727_v24, %v6269_v23  ;;  %v5820_v25 = vadd.f32 %v5727_v24, %v6272_v47 }
 0xa54   : > { %3782 = vmatmul.msk.f32.vlgmr.msrb.gmra.mxu0 %vm2333_vm10, %v3222_v0  ;;  %v6267_v0 = vld [vmem:[#allocation4_spill] sm:$0xff]  ;;  %v5832_v23 = vadd.f32 %v5727_v24, %v6277_v18  ;;  %v5840_v47 = vadd.f32 %v5727_v24, %v6281_v40 }
 0xa55   : > { %v5804_v37 = vadd.f32 %v5727_v24, %v6267_v0  ;;  %6270 = vst [vmem:[#allocation2_spill] sm:$0xff] %v5812_v10  ;;  %v5824_v0 = vadd.f32 %v5727_v24, %v6273_v14  ;;  %v5844_v14 = vadd.f32 %v5727_v24, %v6283_v60  ;;  %v6289_v10 = vld [vmem:[#allocation17_spill] sm:$0xff] }
 0xa56   : > { %6276 = vst [vmem:[#allocation4_spill] sm:$0xff] %v5828_v39  ;;  %v5871_v36 = vadd.f32 %v5727_v24, %v6289_v10 }
 0xa57   : > { %6274 = vst [vmem:[#allocation3_spill] sm:$0xff] %v5824_v0 }
 0xa58   : > { %6278 = vst [vmem:[#allocation5_spill] sm:$0xff] %v5832_v23 }
 0xa59   : > { %6282 = vst [vmem:[#allocation7_spill] sm:$0xff] %v5840_v47 }
 0xa5a   : > { %6284 = vst [vmem:[#allocation8_spill] sm:$0xff] %v5844_v14 }
 0xa5b   : > { %6290 = vst [vmem:[#allocation11_spill] sm:$0xff] %v5871_v36 }
 0xad1   : > { %v3243_v2 = vpop.f32.mrf.mxu0 }
 0xad2   : > { %v3246_v32 = vperm.slane %v3243_v2, 0 }
 0xad4   : > { %v3247_v18 = vmul.f32 %v3246_v32, %v5500_v41  ;;  %v3248_v63 = vmul.f32 %v3246_v32, %v5504_v46  ;;  %v3249_v2 = vmul.f32 %v3246_v32, %v5508_v35  ;;  %v3250_v40 = vmul.f32 %v3246_v32, %v5512_v55 }
 0xad5   : > { %v3251_v28 = vmul.f32 %v3246_v32, %v5520_v27  ;;  %v3252_v60 = vmul.f32 %v3246_v32, %v5526_v29  ;;  %v3253_v57 = vmul.f32 %v3246_v32, %v5534_v61  ;;  %v3254_v10 = vmul.f32 %v3246_v32, %v5541_v58  ;;  %v3838_v58 = vld [vmem:[%s6189_s8] ss:$0 sm:$0xff] }
 0xad6   : > { %v3255_v9 = vmul.f32 %v3246_v32, %v5548_v15  ;;  %v3256_v17 = vmul.f32 %v3246_v32, %v5555_v19  ;;  %v3257_v41 = vmul.f32 %v3246_v32, %v5562_v21  ;;  %v3258_v46 = vmul.f32 %v3246_v32, %v5569_v26 }
 0xad7   : > { %v3259_v35 = vmul.f32 %v3246_v32, %v5576_v30  ;;  %v3260_v55 = vmul.f32 %v3246_v32, %v5583_v48  ;;  %v3261_v27 = vmul.f32 %v3246_v32, %v5590_v1  ;;  %v3262_v29 = vmul.f32 %v3246_v32, %v5597_v51 }
 0xad8   : > { %v3263_v61 = vmul.f32 %v3246_v32, %v5604_v56  ;;  %v3264_v15 = vmul.f32 %v3246_v32, %v5611_v20  ;;  %v3265_v19 = vmul.f32 %v3246_v32, %v5618_v62  ;;  %v3266_v21 = vmul.f32 %v3246_v32, %v5625_v11 }
 0xad9   : > { %v3267_v26 = vmul.f32 %v3246_v32, %v5632_v8  ;;  %v3268_v30 = vmul.f32 %v3246_v32, %v5639_v4  ;;  %v3269_v48 = vmul.f32 %v3246_v32, %v5646_v13  ;;  %v3270_v1 = vmul.f32 %v3246_v32, %v5653_v45 }
 0xada   : > { %v3271_v51 = vmul.f32 %v3246_v32, %v5660_v50  ;;  %v3272_v56 = vmul.f32 %v3246_v32, %v5667_v49  ;;  %v3273_v22 = vmul.f32 %v3246_v32, %v5674_v34  ;;  %v3274_v20 = vmul.f32 %v3246_v32, %v5681_v5 }
 0xadb   : > { %v3275_v62 = vmul.f32 %v3246_v32, %v5688_v52  ;;  %v3276_v11 = vmul.f32 %v3246_v32, %v5695_v3  ;;  %v3277_v8 = vmul.f32 %v3246_v32, %v5702_v12  ;;  %v3278_v4 = vmul.f32 %v3246_v32, %v5709_v53  ;;  %v5915_v52 = vld [vmem:[%s6190_s9] ss:$0 sm:$0xff] }
 0xadc   : > { %v3282_v7 = vmul.f32 %v3838_v58, %v3247_v18  ;;  %v3283_v13 = vmul.f32 %v3838_v58, %v3248_v63  ;;  %v3284_v36 = vmul.f32 %v3838_v58, %v3249_v2  ;;  %v3285_v45 = vmul.f32 %v3838_v58, %v3250_v40 }
 0xadd   : > { %v3286_v14 = vmul.f32 %v3838_v58, %v3251_v28  ;;  %v3287_v50 = vmul.f32 %v3838_v58, %v3252_v60  ;;  %v3288_v47 = vmul.f32 %v3838_v58, %v3253_v57  ;;  %v3289_v49 = vmul.f32 %v3838_v58, %v3254_v10 }
 0xade   : > { %v3290_v24 = vmul.f32 %v3838_v58, %v3255_v9  ;;  %v3291_v34 = vmul.f32 %v3838_v58, %v3256_v17  ;;  %v3292_v42 = vmul.f32 %v3838_v58, %v3257_v41  ;;  %v3293_v5 = vmul.f32 %v3838_v58, %v3258_v46 }
 0xadf   : > { %v3294_v23 = vmul.f32 %v3838_v58, %v3259_v35  ;;  %v3295_v3 = vmul.f32 %v3838_v58, %v3260_v55  ;;  %v3296_v12 = vmul.f32 %v3838_v58, %v3261_v27  ;;  %v3297_v53 = vmul.f32 %v3838_v58, %v3262_v29 }
 0xae0   : > { %v3298_v32 = vmul.f32 %v3838_v58, %v3263_v61  ;;  %v3299_v18 = vmul.f32 %v3838_v58, %v3264_v15  ;;  %v3300_v40 = vmul.f32 %v3838_v58, %v3265_v19  ;;  %v3301_v28 = vmul.f32 %v3838_v58, %v3266_v21 }
 0xae1   : > { %v3302_v60 = vmul.f32 %v3838_v58, %v3267_v26  ;;  %v3303_v57 = vmul.f32 %v3838_v58, %v3268_v30  ;;  %v3304_v63 = vmul.f32 %v3838_v58, %v3269_v48  ;;  %v3305_v9 = vmul.f32 %v3838_v58, %v3270_v1 }
 0xae2   : > { %v3306_v2 = vmul.f32 %v3838_v58, %v3271_v51  ;;  %v3307_v10 = vmul.f32 %v3838_v58, %v3272_v56  ;;  %v3308_v17 = vmul.f32 %v3838_v58, %v3273_v22  ;;  %v3309_v41 = vmul.f32 %v3838_v58, %v3274_v20 }
 0xae3   : > { %v3317_v46 = vadd.f32 %v5915_v52, %v3282_v7  ;;  %v3310_v35 = vmul.f32 %v3838_v58, %v3275_v62  ;;  %v3311_v39 = vmul.f32 %v3838_v58, %v3276_v11  ;;  %v3312_v0 = vmul.f32 %v3838_v58, %v3277_v8 }
 0xae4   : > { %v3318_v55 = vadd.f32 %v5915_v52, %v3283_v13  ;;  %v3313_v27 = vmul.f32 %v3838_v58, %v3278_v4  ;;  %v3319_v29 = vadd.f32 %v5915_v52, %v3284_v36  ;;  %v3320_v61 = vadd.f32 %v5915_v52, %v3285_v45  ;;  %v5932_v36 = vld [vmem:[%s6193_s12] ss:$0 sm:$0xff] }
 0xae5   : > { %v3321_v15 = vadd.f32 %v5915_v52, %v3286_v14  ;;  %v3322_v19 = vadd.f32 %v5915_v52, %v3287_v50  ;;  %v3323_v21 = vadd.f32 %v5915_v52, %v3288_v47  ;;  %v3324_v22 = vadd.f32 %v5915_v52, %v3289_v49 }
 0xae6   : > { %v3325_v7 = vadd.f32 %v5915_v52, %v3290_v24  ;;  %v3326_v26 = vadd.f32 %v5915_v52, %v3291_v34  ;;  %v3327_v30 = vadd.f32 %v5915_v52, %v3292_v42  ;;  %v3328_v58 = vadd.f32 %v5915_v52, %v3293_v5 }
 0xae7   : > { %v3349_v48 = vmax.f32 %v3317_v46, 0.0  ;;  %v5935_v14 = vadd.f32 %v5915_v52, %v3294_v23  ;;  %v5938_v47 = vadd.f32 %v5915_v52, %v3295_v3  ;;  %v5941_v24 = vadd.f32 %v5915_v52, %v3296_v12 }
 0xae8   : > { %v3350_v1 = vmax.f32 %v3318_v55, 0.0  ;;  %v5944_v42 = vadd.f32 %v5915_v52, %v3297_v53  ;;  %v5947_v51 = vadd.f32 %v5915_v52, %v3298_v32  ;;  %v5950_v56 = vadd.f32 %v5915_v52, %v3299_v18 }
 0xae9   : > { %v3351_v20 = vmax.f32 %v3319_v29, 0.0  ;;  %v5953_v23 = vadd.f32 %v5915_v52, %v3300_v40  ;;  %v5956_v62 = vadd.f32 %v5915_v52, %v3301_v28  ;;  %v5959_v11 = vadd.f32 %v5915_v52, %v3302_v60 }
 0xaea   : > { %v3352_v8 = vmax.f32 %v3320_v61, 0.0  ;;  %v5962_v4 = vadd.f32 %v5915_v52, %v3303_v57  ;;  %v5965_v13 = vadd.f32 %v5915_v52, %v3304_v63  ;;  %v3353_v45 = vmax.f32 %v3321_v15, 0.0 }
 0xaeb   : > { %v3385_v50 = vmul.f32 %v5932_v36, %v3349_v48  ;;  %v5969_v49 = vadd.f32 %v5915_v52, %v3305_v9  ;;  %v5972_v34 = vadd.f32 %v5915_v52, %v3306_v2  ;;  %v3354_v5 = vmax.f32 %v3322_v19, 0.0 }
 0xaec   : > { %v3386_v3 = vmul.f32 %v5932_v36, %v3350_v1  ;;  %v5976_v12 = vadd.f32 %v5915_v52, %v3307_v10  ;;  %v5979_v53 = vadd.f32 %v5915_v52, %v3308_v17  ;;  %v3355_v32 = vmax.f32 %v3323_v21, 0.0 }
 0xaed   : > { %v3387_v18 = vmul.f32 %v5932_v36, %v3351_v20  ;;  %v5983_v40 = vadd.f32 %v5915_v52, %v3309_v41  ;;  %v5986_v28 = vadd.f32 %v5915_v52, %v3310_v35  ;;  %v3356_v60 = vmax.f32 %v3324_v22, 0.0 }
 0xaee   : > { %v3388_v57 = vmul.f32 %v5932_v36, %v3352_v8  ;;  %v5990_v63 = vadd.f32 %v5915_v52, %v3311_v39  ;;  %v3357_v9 = vmax.f32 %v3325_v7, 0.0  ;;  %v3389_v2 = vmul.f32 %v5932_v36, %v3353_v45  ;;  %v6300_v8 = vld [vmem:[#allocation23_spill] sm:$0xff] }
 0xaef   : > { %v6293_v10 = vmax.f32 %v5731_v31, 0.0  ;;  %v5996_v46 = vadd.f32 %v5915_v52, %v3312_v0  ;;  %v3358_v41 = vmax.f32 %v3326_v26, 0.0  ;;  %v3390_v55 = vmul.f32 %v5932_v36, %v3354_v5 }
 0xaf0   : > { %v6294_v35 = vmax.f32 %v5735_v54, 0.0  ;;  %v6003_v61 = vadd.f32 %v5915_v52, %v3313_v27  ;;  %v3359_v39 = vmax.f32 %v3327_v30, 0.0  ;;  %v3391_v15 = vmul.f32 %v5932_v36, %v3355_v32  ;;  %v6302_v32 = vld [vmem:[#allocation24_spill] sm:$0xff] }
 0xaf1   : > { %v3417_v17 = vadd.f32 %v3385_v50, %v6293_v10  ;;  %v6295_v19 = vmax.f32 %v5739_v38, 0.0  ;;  %v3360_v21 = vmax.f32 %v3328_v58, 0.0  ;;  %v3361_v0 = vmax.f32 %v5935_v14, 0.0 }
 0xaf2   : > { %v3418_v29 = vadd.f32 %v3386_v3, %v6294_v35  ;;  %v3392_v22 = vmul.f32 %v5932_v36, %v3356_v60  ;;  %v6296_v7 = vmax.f32 %v5743_v43, 0.0  ;;  %v3362_v54 = vmax.f32 %v5938_v47, 0.0  ;;  %v6298_v43 = vld [vmem:[#allocation22_spill] sm:$0xff] }
 0xaf3   : > { %v3419_v31 = vadd.f32 %v3387_v18, %v6295_v19  ;;  %v3393_v48 = vmul.f32 %v5932_v36, %v3357_v9  ;;  %v6297_v52 = vmax.f32 %v5747_v6, 0.0  ;;  %v3449_v30 = vpack.c.bf16 %v3417_v17, %v3417_v17  ;;  %v6306_v35 = vld [vmem:[#allocation26_spill] sm:$0xff] }
 0xaf4   : > { %v3420_v26 = vadd.f32 %v3388_v57, %v6296_v7  ;;  %v3363_v38 = vmax.f32 %v5941_v24, 0.0  ;;  %v3394_v58 = vmul.f32 %v5932_v36, %v3358_v41  ;;  %v6299_v14 = vmax.f32 %v6298_v43, 0.0 }
 0xaf5   : > { %v3421_v27 = vadd.f32 %v3389_v2, %v6297_v52  ;;  %v3450_v47 = vpack.c.bf16 %v3418_v29, %v3418_v29  ;;  %v3364_v20 = vmax.f32 %v5944_v42, 0.0  ;;  %v3395_v6 = vmul.f32 %v5932_v36, %v3359_v39  ;;  %v6304_v42 = vld [vmem:[#allocation25_spill] sm:$0xff]  ;;  %3482 = vst.msk [vmem:[%s6019_s24] sm:$0xf] %vm3481_vm1, %v3449_v30 }
 0xaf6   : > { %v3422_v1 = vadd.f32 %v3390_v55, %v6299_v14  ;;  %v6301_v45 = vmax.f32 %v6300_v8, 0.0  ;;  %v3451_v5 = vpack.c.bf16 %v3419_v31, %v3419_v31  ;;  %v3396_v3 = vmul.f32 %v5932_v36, %v3360_v21  ;;  %v6308_v31 = vld [vmem:[#allocation27_spill] sm:$0xff]  ;;  %v6312_v30 = vld [vmem:[#allocation29_spill] sm:$0xff] }
 0xaf7   : > { %v6303_v24 = vmax.f32 %v6302_v32, 0.0  ;;  %v3452_v60 = vpack.c.bf16 %v3420_v26, %v3420_v26  ;;  %v3365_v57 = vmax.f32 %v5947_v51, 0.0  ;;  %v3397_v9 = vmul.f32 %v5932_v36, %v3361_v0  ;;  %3483 = vst.msk [vmem:[%s6019_s24 + $0x4] sm:$0xf] %vm3481_vm1, %v3450_v47  ;;  %v6310_v26 = vld [vmem:[#allocation28_spill] sm:$0xff] }
 0xaf8   : > { %v3423_v50 = vadd.f32 %v3391_v15, %v6301_v45  ;;  %v6305_v2 = vmax.f32 %v6304_v42, 0.0  ;;  %v3453_v17 = vpack.c.bf16 %v3421_v27, %v3421_v27  ;;  %v3366_v41 = vmax.f32 %v5950_v56, 0.0  ;;  %3484 = vst.msk [vmem:[%s6019_s24 + $0x8] sm:$0xf] %vm3481_vm1, %v3451_v5 }
 0xaf9   : > { %v3424_v18 = vadd.f32 %v3392_v22, %v6303_v24  ;;  %v3398_v55 = vmul.f32 %v5932_v36, %v3362_v54  ;;  %v6307_v29 = vmax.f32 %v6306_v35, 0.0  ;;  %v3454_v15 = vpack.c.bf16 %v3422_v1, %v3422_v1  ;;  %3485 = vst.msk [vmem:[%s6019_s24 + $0xc] sm:$0xf] %vm3481_vm1, %v3452_v60 }
 0xafa   : > { %v3425_v10 = vadd.f32 %v3393_v48, %v6305_v2  ;;  %v3367_v51 = vmax.f32 %v5953_v23, 0.0  ;;  %v3399_v19 = vmul.f32 %v5932_v36, %v3363_v38  ;;  %v6309_v21 = vmax.f32 %v6308_v31, 0.0  ;;  %3486 = vst.msk [vmem:[%s6019_s24 + $0x10] sm:$0xf] %vm3481_vm1, %v3453_v17 }
 0xafb   : > { %v3426_v39 = vadd.f32 %v3394_v58, %v6307_v29  ;;  %v3455_v22 = vpack.c.bf16 %v3423_v50, %v3423_v50  ;;  %v3368_v56 = vmax.f32 %v5956_v62, 0.0  ;;  %v3400_v7 = vmul.f32 %v5932_v36, %v3364_v20  ;;  %3487 = vst.msk [vmem:[%s6019_s24 + $0x14] sm:$0xf] %vm3481_vm1, %v3454_v15  ;;  %v6322_v15 = vld [vmem:[#allocation3_spill] sm:$0xff] }
 0xafc   : > { %v3427_v0 = vadd.f32 %v3395_v6, %v6309_v21  ;;  %v6311_v54 = vmax.f32 %v6310_v26, 0.0  ;;  %v3456_v52 = vpack.c.bf16 %v3424_v18, %v3424_v18  ;;  %v3369_v23 = vmax.f32 %v5959_v11, 0.0  ;;  %v6324_v21 = vld [vmem:[#allocation4_spill] sm:$0xff]  ;;  %v6326_v26 = vld [vmem:[#allocation5_spill] sm:$0xff] }
 0xafd   : > { %v3401_v27 = vmul.f32 %v5932_v36, %v3365_v57  ;;  %v6313_v38 = vmax.f32 %v6312_v30, 0.0  ;;  %v3457_v43 = vpack.c.bf16 %v3425_v10, %v3425_v10  ;;  %v3370_v62 = vmax.f32 %v5962_v4, 0.0  ;;  %3488 = vst.msk [vmem:[%s6019_s24 + $0x18] sm:$0xf] %vm3481_vm1, %v3455_v22  ;;  %v6318_v57 = vld [vmem:[#allocation2_spill] sm:$0xff] }
 0xafe   : > { %v3428_v48 = vadd.f32 %v3396_v3, %v6311_v54  ;;  %v3402_v14 = vmul.f32 %v5932_v36, %v3366_v41  ;;  %v6314_v1 = vmax.f32 %v5796_v33, 0.0  ;;  %v3458_v20 = vpack.c.bf16 %v3426_v39, %v3426_v39  ;;  %3489 = vst.msk [vmem:[%s6019_s24 + $0x1c] sm:$0xf] %vm3481_vm1, %v3456_v52 }
 0xaff   : > { %v3429_v58 = vadd.f32 %v3397_v9, %v6313_v38  ;;  %v3371_v11 = vmax.f32 %v5965_v13, 0.0  ;;  %v3403_v6 = vmul.f32 %v5932_v36, %v3367_v51  ;;  %v6315_v8 = vmax.f32 %v5800_v59, 0.0  ;;  %3490 = vst.msk [vmem:[%s6019_s24 + $0x20] sm:$0xf] %vm3481_vm1, %v3457_v43  ;;  %v6331_v43 = vld [vmem:[#allocation21_spill] sm:$0xff] }
 0xb00   : > { %v3430_v47 = vadd.f32 %v3398_v55, %v6314_v1  ;;  %v3459_v50 = vpack.c.bf16 %v3427_v0, %v3427_v0  ;;  %v3372_v4 = vmax.f32 %v5969_v49, 0.0  ;;  %v3404_v33 = vmul.f32 %v5932_v36, %v3368_v56  ;;  %3491 = vst.msk [vmem:[%s6019_s24 + $0x24] sm:$0xf] %vm3481_vm1, %v3458_v20  ;;  %v6332_v1 = vld [vmem:[#allocation7_spill] sm:$0xff] }
 0xb01   : > { %v3431_v45 = vadd.f32 %v3399_v19, %v6315_v8  ;;  %v6316_v5 = vmax.f32 %v5804_v37, 0.0  ;;  %v3460_v32 = vpack.c.bf16 %v3428_v48, %v3428_v48  ;;  %v3373_v13 = vmax.f32 %v5972_v34, 0.0 }
 0xb02   : > { %v3405_v59 = vmul.f32 %v5932_v36, %v3369_v23  ;;  %v6317_v24 = vmax.f32 %v5808_v44, 0.0  ;;  %v3461_v60 = vpack.c.bf16 %v3429_v58, %v3429_v58  ;;  %v3374_v49 = vmax.f32 %v5976_v12, 0.0  ;;  %3492 = vst.msk [vmem:[%s6019_s24 + $0x28] sm:$0xf] %vm3481_vm1, %v3459_v50 }
 0xb03   : > { %v3432_v3 = vadd.f32 %v3400_v7, %v6316_v5  ;;  %v3406_v37 = vmul.f32 %v5932_v36, %v3370_v62  ;;  %v6319_v9 = vmax.f32 %v6318_v57, 0.0  ;;  %v3462_v2 = vpack.c.bf16 %v3430_v47, %v3430_v47  ;;  %3493 = vst.msk [vmem:[%s6019_s24 + $0x2c] sm:$0xf] %vm3481_vm1, %v3460_v32  ;;  %v6337_v5 = vld [vmem:[#allocation11_spill] sm:$0xff]  ;;  %v6341_v57 = vld [vmem:[#allocation10_spill] sm:$0xff] }
 0xb04   : > { %v3433_v18 = vadd.f32 %v3401_v27, %v6317_v24  ;;  %v3375_v34 = vmax.f32 %v5979_v53, 0.0  ;;  %v3407_v44 = vmul.f32 %v5932_v36, %v3371_v11  ;;  %v6320_v10 = vmax.f32 %v5816_v16, 0.0  ;;  %3494 = vst.msk [vmem:[%s6019_s24 + $0x30] sm:$0xf] %vm3481_vm1, %v3461_v60  ;;  %v6328_v27 = vld [vmem:[#allocation6_spill] sm:$0xff]  ;;  %v6340_v60 = vld [vmem:[#allocation12_spill] sm:$0xff] }
 0xb05   : > { %v3434_v42 = vadd.f32 %v3402_v14, %v6319_v9  ;;  %v3463_v41 = vpack.c.bf16 %v3431_v45, %v3431_v45  ;;  %v3376_v12 = vmax.f32 %v5983_v40, 0.0  ;;  %v3408_v55 = vmul.f32 %v5932_v36, %v3372_v4  ;;  %3495 = vst.msk [vmem:[%s6019_s24 + $0x34] sm:$0xf] %vm3481_vm1, %v3462_v2  ;;  %v6335_v45 = vld [vmem:[#allocation8_spill] sm:$0xff] }
 0xb06   : > { %v3435_v17 = vadd.f32 %v3403_v6, %v6320_v10  ;;  %v6321_v35 = vmax.f32 %v5820_v25, 0.0  ;;  %v3464_v39 = vpack.c.bf16 %v3432_v3, %v3432_v3  ;;  %v3377_v53 = vmax.f32 %v5986_v28, 0.0 }
 0xb07   : > { %v3409_v16 = vmul.f32 %v5932_v36, %v3373_v13  ;;  %v6323_v51 = vmax.f32 %v6322_v15, 0.0  ;;  %v3465_v31 = vpack.c.bf16 %v3433_v18, %v3433_v18  ;;  %v3378_v40 = vmax.f32 %v5990_v63, 0.0  ;;  %3496 = vst.msk [vmem:[%s6019_s24 + $0x38] sm:$0xf] %vm3481_vm1, %v3463_v41  ;;  %v6338_v13 = vld [vmem:[#allocation9_spill] sm:$0xff] }
 0xb08   : > { %v3436_v29 = vadd.f32 %v3404_v33, %v6321_v35  ;;  %v3410_v25 = vmul.f32 %v5932_v36, %v3374_v49  ;;  %v6325_v0 = vmax.f32 %v6324_v21, 0.0  ;;  %v3466_v56 = vpack.c.bf16 %v3434_v42, %v3434_v42  ;;  %3497 = vst.msk [vmem:[%s6019_s24 + $0x3c] sm:$0xf] %vm3481_vm1, %v3464_v39 }
 0xb09   : > { %v3437_v19 = vadd.f32 %v3405_v59, %v6323_v51  ;;  %v3379_v28 = vmax.f32 %v5996_v46, 0.0  ;;  %v3411_v7 = vmul.f32 %v5932_v36, %v3375_v34  ;;  %v6327_v54 = vmax.f32 %v6326_v26, 0.0  ;;  %v6330_v46 = vld [vmem:[#allocation19_spill] sm:$0xff]  ;;  %3498 = vst.msk [vmem:[%s6019_s24 + $0x40] sm:$0xf] %vm3481_vm1, %v3465_v31 }
 0xb0a   : > { %v3438_v22 = vadd.f32 %v3406_v37, %v6325_v0  ;;  %v3467_v52 = vpack.c.bf16 %v3435_v17, %v3435_v17  ;;  %v3380_v63 = vmax.f32 %v6003_v61, 0.0  ;;  %v3412_v23 = vmul.f32 %v5932_v36, %v3376_v12  ;;  %v6334_v61 = vld [vmem:[#allocation20_spill] sm:$0xff]  ;;  %3499 = vst.msk [vmem:[%s6019_s24 + $0x44] sm:$0xf] %vm3481_vm1, %v3466_v56 }
 0xb0b   : > { %v3439_v48 = vadd.f32 %v3407_v44, %v6327_v54  ;;  %v6329_v30 = vmax.f32 %v6328_v27, 0.0  ;;  %v3468_v58 = vpack.c.bf16 %v3436_v29, %v3436_v29  ;;  %v2220_v62 = vadd.f32 %v6331_v43, %v6330_v46 }
 0xb0c   : > { %v3413_v14 = vmul.f32 %v5932_v36, %v3377_v53  ;;  %v6333_v47 = vmax.f32 %v6332_v1, 0.0  ;;  %v3469_v11 = vpack.c.bf16 %v3437_v19, %v3437_v19  ;;  %v2221_v6 = vadd.f32 %v6331_v43, %v6334_v61  ;;  %3500 = vst.msk [vmem:[%s6019_s24 + $0x48] sm:$0xf] %vm3481_vm1, %v3467_v52 }
 0xb0d   : > { %v3440_v38 = vadd.f32 %v3408_v55, %v6329_v30  ;;  %v3414_v8 = vmul.f32 %v5932_v36, %v3378_v40  ;;  %v6336_v50 = vmax.f32 %v6335_v45, 0.0  ;;  %v3470_v33 = vpack.c.bf16 %v3438_v22, %v3438_v22  ;;  %3501 = vst.msk [vmem:[%s6019_s24 + $0x4c] sm:$0xf] %vm3481_vm1, %v3468_v58 }
 0xb0e   : > { %v3441_v20 = vadd.f32 %v3409_v16, %v6333_v47  ;;  %v2250_v3 = vmax.f32 %v6337_v5, 0.0  ;;  %v3415_v32 = vmul.f32 %v5932_v36, %v3379_v28  ;;  %v6339_v59 = vmax.f32 %v6338_v13, 0.0  ;;  %3502 = vst.msk [vmem:[%s6019_s24 + $0x50] sm:$0xf] %vm3481_vm1, %v3469_v11 }
 0xb0f   : > { %v3442_v4 = vadd.f32 %v3410_v25, %v6336_v50  ;;  %v3471_v18 = vpack.c.bf16 %v3439_v48, %v3439_v48  ;;  %v2251_v49 = vmax.f32 %v6340_v60, 0.0  ;;  %v3416_v37 = vmul.f32 %v5932_v36, %v3380_v63  ;;  %3503 = vst.msk [vmem:[%s6019_s24 + $0x54] sm:$0xf] %vm3481_vm1, %v3470_v33 }
 0xb10   : > { %v3443_v24 = vadd.f32 %v3411_v7, %v6339_v59  ;;  %v6342_v9 = vmax.f32 %v6341_v57, 0.0  ;;  %v3472_v2 = vpack.c.bf16 %v3440_v38, %v3440_v38  ;;  %v2252_v34 = vmax.f32 %v2220_v62, 0.0 }
 0xb11   : > { %v3445_v44 = vadd.f32 %v3413_v14, %v2250_v3  ;;  %v3473_v10 = vpack.c.bf16 %v3441_v20, %v3441_v20  ;;  %v2253_v17 = vmax.f32 %v2221_v6, 0.0  ;;  %v3446_v41 = vadd.f32 %v3414_v8, %v2251_v49  ;;  %3504 = vst.msk [vmem:[%s6019_s24 + $0x58] sm:$0xf] %vm3481_vm1, %v3471_v18 }
 0xb12   : > { %v3444_v42 = vadd.f32 %v3412_v23, %v6342_v9  ;;  %v3474_v12 = vpack.c.bf16 %v3442_v4, %v3442_v4  ;;  %v3447_v36 = vadd.f32 %v3415_v32, %v2252_v34  ;;  %v3475_v55 = vpack.c.bf16 %v3443_v24, %v3443_v24  ;;  %3505 = vst.msk [vmem:[%s6019_s24 + $0x5c] sm:$0xf] %vm3481_vm1, %v3472_v2 }
 0xb13   : > { %v3448_v35 = vadd.f32 %v3416_v37, %v2253_v17  ;;  %v3477_v39 = vpack.c.bf16 %v3445_v44, %v3445_v44  ;;  %3506 = vst.msk [vmem:[%s6019_s24 + $0x60] sm:$0xf] %vm3481_vm1, %v3473_v10  ;;  %v3478_v53 = vpack.c.bf16 %v3446_v41, %v3446_v41 }
 0xb14   : > { %v3476_v29 = vpack.c.bf16 %v3444_v42, %v3444_v42  ;;  %3507 = vst.msk [vmem:[%s6019_s24 + $0x64] sm:$0xf] %vm3481_vm1, %v3474_v12  ;;  %v3479_v16 = vpack.c.bf16 %v3447_v36, %v3447_v36 }
 0xb15   : > { %3508 = vst.msk [vmem:[%s6019_s24 + $0x68] sm:$0xf] %vm3481_vm1, %v3475_v55  ;;  %v3480_v15 = vpack.c.bf16 %v3448_v35, %v3448_v35 }
 0xb16   : > { %3509 = vst.msk [vmem:[%s6019_s24 + $0x6c] sm:$0xf] %vm3481_vm1, %v3476_v29 }
 0xb17   : > { %3510 = vst.msk [vmem:[%s6019_s24 + $0x70] sm:$0xf] %vm3481_vm1, %v3477_v39 }
 0xb18   : > { %3511 = vst.msk [vmem:[%s6019_s24 + $0x74] sm:$0xf] %vm3481_vm1, %v3478_v53 }
 0xb19   : > { %3512 = vst.msk [vmem:[%s6019_s24 + $0x78] sm:$0xf] %vm3481_vm1, %v3479_v16 }
 0xb1a   : > { %3513 = vst.msk [vmem:[%s6019_s24 + $0x7c] sm:$0xf] %vm3481_vm1, %v3480_v15 }
 0xb1b PF: > { %s23_s25 = sadd.s32 1, %s3851_s25  }
 0xb1c   : > { %p20_p4 = scmp.ge.s32.totalorder %s23_s25, 4  }
 0xb1e   :  { %22 = sbr.rel (!%p20_p4) target bundleno = 1 (0x1), region = 102 }

</bundles_post_ra>
